<compile_context>
chip_gen: v7x
topology: tpu7x:2x2x1
jax: 0.10.0
libtpu: 0.0.40
codegen_flags: <defaults>
</compile_context>

<pallas_src>
import numpy as np
import jax
import jax.numpy as jnp
from jax.experimental import pallas as pl
from jax.experimental.pallas import tpu as pltpu

# ----------------------------------------------------------------------------- config
NS, NV = 16, 4                       # TensorProductConvBlock defaults
NUM_CONV_LAYERS = 2
CG_MAX_RADIUS = 6.0
DIST_EMBED_DIM = 8
NODE_IN_DIM = 32                     # cg_node_embedding = Linear(32, ns) ...
SH_DIM = 9                           # lmax = 2
SH_PAD = 16                          # sublane-aligned K dim for the sh expansion matmul
MAX_ROW_TILE = 512                   # edge/node row tile target (multiple of 128)
VMEM_LIMIT = 48 * 1024 * 1024        # fits v7x 64MiB physical; >> v5e 16MiB scoped default

GS_OFFSETS = np.linspace(0.0, CG_MAX_RADIUS, DIST_EMBED_DIM).astype(np.float32)
GS_COEFF = float(-0.5 / (GS_OFFSETS[1] - GS_OFFSETS[0]) ** 2)

# irreps as (multiplicity, l, parity)
IRREPS_SEQ = [
    [(NS, 0, 1)],
    [(NS, 0, 1), (NV, 1, -1)],
    [(NS, 0, 1), (NV, 1, -1), (NV, 1, 1)],
    [(NS, 0, 1), (NV, 1, -1), (NV, 1, 1), (NS, 0, -1)],
]
SH_IRREPS = [(1, 0, 1), (1, 1, -1), (1, 2, 1)]


def irreps_dim(irreps):
    return sum(m * (2 * l + 1) for m, l, _ in irreps)


def irrep_offset(irreps, idx):
    return sum(m * (2 * l + 1) for m, l, _ in irreps[:idx])


def round_up(n, m):
    return ((n + m - 1) // m) * m


# ----------------------------------------------------------------------------- wigner 3j (real basis, Frobenius norm 1)
def w3j(l1, l2, l3):
    if (l1, l2, l3) == (0, 0, 0):
        return np.ones((1, 1, 1))
    if (l1, l2, l3) == (0, 1, 1):
        return np.eye(3)[None, :, :] / np.sqrt(3.0)
    if (l1, l2, l3) == (1, 0, 1):
        return np.eye(3)[:, None, :] / np.sqrt(3.0)
    if (l1, l2, l3) == (1, 1, 0):
        return np.eye(3)[:, :, None] / np.sqrt(3.0)
    if (l1, l2, l3) == (1, 1, 1):
        eps = np.zeros((3, 3, 3))
        for a, b, c, s in [(0, 1, 2, 1), (1, 2, 0, 1), (2, 0, 1, 1),
                           (0, 2, 1, -1), (2, 1, 0, -1), (1, 0, 2, -1)]:
            eps[a, b, c] = s
        return eps / np.sqrt(6.0)
    if (l1, l2, l3) == (1, 2, 1):
        s3 = np.sqrt(3.0)
        A = np.zeros((5, 3, 3))
        A[0, 0, 2] = A[0, 2, 0] = s3 / 2
        A[1, 0, 1] = A[1, 1, 0] = s3 / 2
        A[2] = np.diag([-0.5, 1.0, -0.5])
        A[3, 1, 2] = A[3, 2, 1] = s3 / 2
        A[4] = np.diag([-s3 / 2, 0.0, s3 / 2])
        C = np.transpose(A, (1, 0, 2))
        return C / np.sqrt(7.5)
    raise ValueError((l1, l2, l3))


# ----------------------------------------------------------------------------- static tensor-product matrices
def build_layer_meta(ir_in, ir_out):
    d_in, d_out = irreps_dim(ir_in), irreps_dim(ir_out)
    d_in_pad, d_out_pad = round_up(d_in, 8), round_up(d_out, 8)

    instructions, w_off, t_off = [], 0, 0
    for i1, (m1, l1, p1) in enumerate(ir_in):
        for i2, (m2, l2, p2) in enumerate(SH_IRREPS):
            for io, (mo, lo, po) in enumerate(ir_out):
                if po == p1 * p2 and abs(l1 - l2) <= lo <= l1 + l2:
                    instructions.append(dict(
                        i1=i1, i2=i2, io=io, m1=m1, l1=l1, l2=l2, mo=mo, lo=lo,
                        w_off=w_off, t_off=t_off,
                        x_off=irrep_offset(ir_in, i1),
                        sh_off=irrep_offset(SH_IRREPS, i2),
                        o_off=irrep_offset(ir_out, io)))
                    w_off += m1 * mo
                    t_off += m1 * (2 * lo + 1)
    weight_numel, tmp_width = w_off, t_off

    for ins in instructions:
        # e3nn defaults: irrep_normalization='component', path_normalization='element'
        fan = sum(j['m1'] for j in instructions if j['io'] == ins['io'])
        ins['coeff'] = float(np.sqrt((2 * ins['lo'] + 1) / fan))

    # static CG matrix over the (sh (x) x) outer-product space, k-major custom x layout,
    # feature width padded to d_in_pad (zero rows for padding columns).
    M = np.zeros((SH_DIM * d_in_pad, tmp_width), np.float32)
    for ins in instructions:
        C = w3j(ins['l1'], ins['l2'], ins['lo'])
        d1, d2, d3 = 2 * ins['l1'] + 1, 2 * ins['l2'] + 1, 2 * ins['lo'] + 1
        m1 = ins['m1']
        for u in range(m1):
            for i in range(d1):
                for j in range(d2):
                    for k in range(d3):
                        c = float(C[i, j, k])
                        if c == 0.0:
                            continue
                        row = (ins['sh_off'] + j) * d_in_pad + (ins['x_off'] + i * m1 + u)
                        col = ins['t_off'] + u * d3 + k
                        M[row, col] += ins['coeff'] * c

    # Path-space expansion (Rw, Rt) and reduction (S) matrices so the whole weighted
    # contraction is out = ((w @ Rw) * (tmp @ Rt)) @ S  ->  three MXU matmuls.
    n_paths = sum(ins['m1'] * ins['mo'] * (2 * ins['lo'] + 1) for ins in instructions)
    p_pad = round_up(n_paths, 128)
    Rw = np.zeros((weight_numel, p_pad), np.float32)
    Rt = np.zeros((tmp_width, p_pad), np.float32)
    S = np.zeros((p_pad, d_out_pad), np.float32)
    p = 0
    for ins in instructions:
        m1, mo, d3 = ins['m1'], ins['mo'], 2 * ins['lo'] + 1
        for u in range(m1):
            for v in range(mo):
                for k in range(d3):
                    Rw[ins['w_off'] + u * mo + v, p] = 1.0
                    Rt[ins['t_off'] + u * d3 + k, p] = 1.0
                    S[p, ins['o_off'] + k * mo + v] = 1.0
                    p += 1
    MRt = (M @ Rt).astype(np.float32)            # CG matmul folded with path expansion

    # op = (sh_pad @ RepSh) * (xd @ TileX):  op[:, j*d_in_pad + c] = sh_j * x_c
    RepSh = np.zeros((SH_PAD, SH_DIM * d_in_pad), np.float32)
    TileX = np.zeros((d_in_pad, SH_DIM * d_in_pad), np.float32)
    for j in range(SH_DIM):
        for c in range(d_in_pad):
            RepSh[j, j * d_in_pad + c] = 1.0
            TileX[c, j * d_in_pad + c] = 1.0

    return dict(wn=weight_numel, p_pad=p_pad,
                d_in=d_in, d_in_pad=d_in_pad, d_out=d_out, d_out_pad=d_out_pad,
                Rw=Rw, MRt=MRt, S=S, RepSh=RepSh, TileX=TileX)


LAYER_META = []
for _l in range(NUM_CONV_LAYERS):
    _ir_in = IRREPS_SEQ[min(_l, len(IRREPS_SEQ) - 1)]
    _ir_out = IRREPS_SEQ[min(_l + 1, len(IRREPS_SEQ) - 1)]
    LAYER_META.append(build_layer_meta(_ir_in, _ir_out))


# ----------------------------------------------------------------------------- tiling helpers
def node_tiling(n):
    """(padded_rows, row_tile); split into >=2 grid steps when possible (v7x megacore)."""
    p8 = round_up(max(n, 1), 8)
    if p8 <= MAX_ROW_TILE:
        tile = max(8, round_up((p8 + 1) // 2, 8))
        return round_up(p8, tile), tile
    return round_up(p8, MAX_ROW_TILE), MAX_ROW_TILE


def edge_tiling(n):
    """(padded_edges, row_tile, scatter_k_tile). k_tile is full or a multiple of 128."""
    p8 = round_up(max(n, 1), 8)
    if p8 <= MAX_ROW_TILE:
        row_tile = max(8, round_up((p8 + 1) // 2, 8))
        e_pad = round_up(p8, row_tile)
        return e_pad, row_tile, e_pad            # single K step for small graphs
    e_pad = round_up(p8, MAX_ROW_TILE)
    return e_pad, MAX_ROW_TILE, MAX_ROW_TILE


# ----------------------------------------------------------------------------- Pallas kernels
def node_embed(x, w1, b1, w2, b2, tile):
    """cg_node_embedding: Linear(32,ns) -> Tanh -> Linear(ns,ns)."""
    rows, din = x.shape
    hid, out_d = w1.shape[1], w2.shape[1]

    def kernel(x_ref, w1_ref, b1_ref, w2_ref, b2_ref, o_ref):
        h = jnp.tanh(jnp.dot(x_ref[...], w1_ref[...],
                             preferred_element_type=jnp.float32) + b1_ref[...])
        o_ref[...] = jnp.dot(h, w2_ref[...],
                             preferred_element_type=jnp.float32) + b2_ref[...]

    return pl.pallas_call(
        kernel,
        out_shape=jax.ShapeDtypeStruct((rows, out_d), jnp.float32),
        grid=(rows // tile,),
        in_specs=[pl.BlockSpec((tile, din), lambda i: (i, 0)),
                  pl.BlockSpec((din, hid), lambda i: (0, 0)),
                  pl.BlockSpec((1, hid), lambda i: (0, 0)),
                  pl.BlockSpec((hid, out_d), lambda i: (0, 0)),
                  pl.BlockSpec((1, out_d), lambda i: (0, 0))],
        out_specs=pl.BlockSpec((tile, out_d), lambda i: (i, 0)),
        compiler_params=pltpu.CompilerParams(dimension_semantics=("parallel",)),
    )(x, w1, b1, w2, b2)


def tp_conv_layer(meta, r, hsrc, xdst, offs, ew1, eb1, ew2, eb2,
                  w1a, w1b, w1c, fb1, w2r, b2r, repsh, tilex, mrt, s_red, row_tile):
    """Fully fused per-layer edge pipeline.

    Edge featurization (dist + Gaussian smearing + edge MLP + real SH), fc MLP, and the
    FullyConnectedTensorProduct are all evaluated on the MXU via static matrices.
    xdst is in the k-major custom irrep layout (width d_in_pad); output uses the same
    layout at width d_out_pad, stored lane-dense in one shot.
    """
    e_pad = r.shape[0]
    d_in_pad, d_out_pad = meta['d_in_pad'], meta['d_out_pad']
    s3, s5, s15 = float(np.sqrt(3.0)), float(np.sqrt(5.0)), float(np.sqrt(15.0))

    def kernel(r_ref, hs_ref, xd_ref, offs_ref, ew1_ref, eb1_ref, ew2_ref, eb2_ref,
               w1a_ref, w1b_ref, w1c_ref, b1_ref, w2r_ref, b2r_ref,
               rep_ref, tx_ref, mrt_ref, s_ref, o_ref):
        rv = r_ref[...]
        t_rows = rv.shape[0]

        # ---- edge featurization (recomputed per layer: negligible FLOPs, saves HBM) --
        d = jnp.sqrt(jnp.maximum(jnp.sum(rv * rv, axis=1, keepdims=True), 1e-12))
        diff = d - offs_ref[...]                                   # (T,1)-(1,8)
        g = jnp.exp(GS_COEFF * diff * diff)                        # Gaussian smearing
        eh = jnp.maximum(jnp.dot(g, ew1_ref[...],
                                 preferred_element_type=jnp.float32) + eb1_ref[...], 0.0)
        ef = jnp.dot(eh, ew2_ref[...],
                     preferred_element_type=jnp.float32) + eb2_ref[...]    # (T, NS)

        u = rv / d
        x, y, z = u[:, 0:1], u[:, 1:2], u[:, 2:3]
        x2, y2, z2 = x * x, y * y, z * z
        sh = jnp.concatenate(
            [jnp.ones_like(x), s3 * x, s3 * y, s3 * z,
             s15 * x * z, s15 * x * y, s5 * (y2 - 0.5 * (x2 + z2)),
             s15 * y * z, 0.5 * s15 * (z2 - x2),
             jnp.zeros((t_rows, SH_PAD - SH_DIM), jnp.float32)], axis=1)   # (T, 16)

        hs, xd = hs_ref[...], xd_ref[...]

        # ---- fc MLP -> per-edge TP weights, already expanded to path space ----------
        # (e_cat concat removed: fw1 pre-split; Rw folded into fw2 outside the kernel)
        h = jnp.maximum(
            jnp.dot(ef, w1a_ref[...], preferred_element_type=jnp.float32)
            + jnp.dot(hs, w1b_ref[...], preferred_element_type=jnp.float32)
            + jnp.dot(xd, w1c_ref[...], preferred_element_type=jnp.float32)
            + b1_ref[...], 0.0)                                            # (T, 3*NS)
        wex = jnp.dot(h, w2r_ref[...],
                      preferred_element_type=jnp.float32) + b2r_ref[...]   # (T, P)

        # ---- CG contraction, all on the MXU ------------------------------------------
        shext = jnp.dot(sh, rep_ref[...], preferred_element_type=jnp.float32)
        xext = jnp.dot(xd, tx_ref[...], preferred_element_type=jnp.float32)
        tex = jnp.dot(shext * xext, mrt_ref[...],
                      preferred_element_type=jnp.float32)                  # (T, P)

        # ---- per-path weight * CG, reduce to output irreps: one lane-dense store ----
        o_ref[...] = jnp.dot(wex * tex, s_ref[...],
                             preferred_element_type=jnp.float32)           # (T, d_out)

    def full(a):
        return pl.BlockSpec(a.shape, lambda i: (0, 0))

    return pl.pallas_call(
        kernel,
        out_shape=jax.ShapeDtypeStruct((e_pad, d_out_pad), jnp.float32),
        grid=(e_pad // row_tile,),
        in_specs=[pl.BlockSpec((row_tile, 3), lambda i: (i, 0)),
                  pl.BlockSpec((row_tile, NS), lambda i: (i, 0)),
                  pl.BlockSpec((row_tile, d_in_pad), lambda i: (i, 0)),
                  full(offs), full(ew1), full(eb1), full(ew2), full(eb2),
                  full(w1a), full(w1b), full(w1c), full(fb1),
                  full(w2r), full(b2r), full(repsh), full(tilex), full(mrt), full(s_red)],
        out_specs=pl.BlockSpec((row_tile, d_out_pad), lambda i: (i, 0)),
        compiler_params=pltpu.CompilerParams(
            dimension_semantics=("parallel",), vmem_limit_bytes=VMEM_LIMIT),
    )(r, hsrc, xdst, offs, ew1, eb1, ew2, eb2, w1a, w1b, w1c, fb1,
      w2r, b2r, repsh, tilex, mrt, s_red)


def scatter_residual(smat, tp_edge, inv_counts, res, n_tile, k_tile):
    """scatter-mean over edge source nodes (K-tiled matmul, bf16 0/1 scatter matrix)
    with the f32 1/count normalization + residual applied in the last-K epilogue."""
    n_pad, e_pad = smat.shape
    d_out_pad = tp_edge.shape[1]
    kgrid = e_pad // k_tile

    def kernel(s_ref, t_ref, inv_ref, r_ref, o_ref, acc_ref):
        @pl.when(pl.program_id(1) == 0)
        def _():
            acc_ref[...] = jnp.zeros_like(acc_ref)

        acc_ref[...] += jnp.dot(s_ref[...].astype(jnp.float32), t_ref[...],
                                preferred_element_type=jnp.float32)

        @pl.when(pl.program_id(1) == kgrid - 1)
        def _():
            o_ref[...] = acc_ref[...] * inv_ref[...] + r_ref[...]

    return pl.pallas_call(
        kernel,
        out_shape=jax.ShapeDtypeStruct((n_pad, d_out_pad), jnp.float32),
        grid=(n_pad // n_tile, kgrid),
        in_specs=[pl.BlockSpec((n_tile, k_tile), lambda i, k: (i, k)),
                  pl.BlockSpec((k_tile, d_out_pad), lambda i, k: (k, 0)),
                  pl.BlockSpec((n_tile, 1), lambda i, k: (i, 0)),
                  pl.BlockSpec((n_tile, d_out_pad), lambda i, k: (i, 0))],
        out_specs=pl.BlockSpec((n_tile, d_out_pad), lambda i, k: (i, 0)),
        scratch_shapes=[pltpu.VMEM((n_tile, d_out_pad), jnp.float32)],
        compiler_params=pltpu.CompilerParams(
            dimension_semantics=("parallel", "arbitrary"),
            vmem_limit_bytes=VMEM_LIMIT),
    )(smat, tp_edge, inv_counts, res)


# ----------------------------------------------------------------------------- layout glue (k-major custom -> e3nn mul-major)
def from_custom(y, irreps):
    pieces, off = [], 0
    for mul, l, _p in irreps:
        d = 2 * l + 1
        blk = y[:, off:off + mul * d].reshape(y.shape[0], d, mul)
        pieces.append(jnp.transpose(blk, (0, 2, 1)).reshape(y.shape[0], mul * d))
        off += mul * d
    return jnp.concatenate(pieces, axis=1)


# ----------------------------------------------------------------------------- parameters
def linear_init(key, din, dout):
    k1, k2 = jax.random.split(key)
    w = jax.random.normal(k1, (din, dout), jnp.float32) * (0.5 / np.sqrt(din))
    b = jax.random.normal(k2, (1, dout), jnp.float32) * 0.01
    return w, b


def init_params(key):
    keys = jax.random.split(key, 4 + 2 * NUM_CONV_LAYERS)
    params = {}
    params['node_mlp'] = (*linear_init(keys[0], NODE_IN_DIM, NS),
                          *linear_init(keys[1], NS, NS))
    params['edge_mlp'] = (*linear_init(keys[2], DIST_EMBED_DIM, NS),
                          *linear_init(keys[3], NS, NS))
    fc = []
    for l in range(NUM_CONV_LAYERS):
        wn = LAYER_META[l]['wn']
        fc.append((*linear_init(keys[4 + 2 * l], 3 * NS, 3 * NS),
                   *linear_init(keys[5 + 2 * l], 3 * NS, wn)))
    params['fc'] = fc
    return params


# ----------------------------------------------------------------------------- forward
def tensor_product_conv_block_forward(params, cg_z, cg_xyz, cg_nbr_list):
    # make_directed: provided neighbor list holds undirected pairs
    nbr = jnp.concatenate([cg_nbr_list, cg_nbr_list[:, ::-1]], axis=0)
    src, dst = nbr[:, 0], nbr[:, 1]
    n_edges, n_nodes = nbr.shape[0], cg_z.shape[0]
    e_pad, e_row_tile, e_k_tile = edge_tiling(n_edges)
    n_pad, n_tile = node_tiling(n_nodes)

    src_p = jnp.pad(src, (0, e_pad - n_edges))
    dst_p = jnp.pad(dst, (0, e_pad - n_edges))
    valid = jnp.arange(e_pad) < n_edges            # padded edges neutralized in scatter

    r_ij = cg_xyz[dst] - cg_xyz[src]
    r_p = jnp.pad(r_ij, ((0, e_pad - n_edges), (0, 0)))

    # cg_node_embedding (kernel)
    z_pad = jnp.pad(cg_z.astype(jnp.float32), ((0, n_pad - n_nodes), (0, 0)))
    nw1, nb1, nw2, nb2 = params['node_mlp']
    node_attr = node_embed(z_pad, nw1, nb1, nw2, nb2, n_tile)       # (n_pad, NS)

    # scatter-mean structure: bf16 0/1 matrix (exact), f32 1/count kept separate.
    # TODO(synk): replace with an edges-sorted-by-src segment-sum kernel for large graphs.
    onehot = (src_p[None, :] == jnp.arange(n_pad)[:, None]) & valid[None, :]
    counts = jnp.sum(onehot, axis=1, keepdims=True).astype(jnp.float32)
    inv_counts = 1.0 / jnp.maximum(counts, 1.0)
    smat = onehot.astype(jnp.bfloat16)

    offs = jnp.asarray(GS_OFFSETS.reshape(1, -1), jnp.float32)
    ew1, eb1, ew2, eb2 = params['edge_mlp']

    for l in range(NUM_CONV_LAYERS):
        meta = LAYER_META[l]
        d_in_pad, d_out_pad = meta['d_in_pad'], meta['d_out_pad']

        # TODO(synk): these gathers stay in XLA; DMA row gathers in-kernel would remove
        #             the (E, d_in)/(E, NS) HBM round trip.
        hsrc = node_attr[src_p, :NS]          # scalar block: same cols in both layouts
        xdst = node_attr[dst_p]               # custom (k-major) layout, width d_in_pad

        fw1, fb1, fw2, fb2 = params['fc'][l]
        w1a, w1b = fw1[:NS], fw1[NS:2 * NS]
        w1c = jnp.pad(fw1[2 * NS:3 * NS], ((0, d_in_pad - NS), (0, 0)))
        rw = jnp.asarray(meta['Rw'])
        w2r = jnp.dot(fw2, rw)                # fold TP-weight expansion into fc2
        b2r = jnp.dot(fb2, rw)

        tp_out = tp_conv_layer(meta, r_p, hsrc, xdst, offs, ew1, eb1, ew2, eb2,
                               w1a, w1b, w1c, fb1, w2r, b2r,
                               jnp.asarray(meta['RepSh']), jnp.asarray(meta['TileX']),
                               jnp.asarray(meta['MRt']), jnp.asarray(meta['S']),
                               e_row_tile)

        res = jnp.pad(node_attr, ((0, 0), (0, d_out_pad - node_attr.shape[1])))
        node_attr = scatter_residual(smat, tp_out, inv_counts, res, n_tile, e_k_tile)

    ir_final = IRREPS_SEQ[min(NUM_CONV_LAYERS, len(IRREPS_SEQ) - 1)]
    d_final = irreps_dim(ir_final)
    return from_custom(node_attr[:n_nodes, :d_final], ir_final)


# ----------------------------------------------------------------------------- main
if __name__ == "__main__":
    key = jax.random.PRNGKey(0)
    k_z, k_xyz, k_par = jax.random.split(key, 3)

    n_nodes = 8
    cg_z = jax.random.normal(k_z, (n_nodes, NODE_IN_DIM), jnp.float32)   # (N, 32)
    cg_xyz = jax.random.normal(k_xyz, (n_nodes, 3), jnp.float32) * 2.0
    cg_nbr_list = jnp.array([[i, i + 1] for i in range(n_nodes - 1)]
                            + [[0, 3], [2, 5], [1, 6]], dtype=jnp.int32)  # undirected pairs

    params = init_params(k_par)

    fwd = jax.jit(tensor_product_conv_block_forward)
    out = fwd(params, cg_z, cg_xyz, cg_nbr_list)
    jax.block_until_ready(out)

    d_final = irreps_dim(IRREPS_SEQ[min(NUM_CONV_LAYERS, len(IRREPS_SEQ) - 1)])
    assert out.shape == (n_nodes, d_final)
    assert bool(jnp.all(jnp.isfinite(out)))
    print("KERNEL_OK")
</pallas_src>

<mosaic_0001>
module attributes {stable_mosaic.version = 11 : i64} {
  func.func @kernel(%arg0: i32, %arg1: memref<8x32xf32, #tpu.memory_space<vmem>>, %arg2: memref<32x16xf32, #tpu.memory_space<vmem>>, %arg3: memref<1x16xf32, #tpu.memory_space<vmem>>, %arg4: memref<16x16xf32, #tpu.memory_space<vmem>>, %arg5: memref<1x16xf32, #tpu.memory_space<vmem>>, %arg6: memref<8x16xf32, #tpu.memory_space<vmem>>) attributes {dimension_semantics = [#tpu.dimension_semantics<parallel>], iteration_bounds = array<i64: 1>, scalar_prefetch = 0 : i64, scratch_operands = 0 : i64, tpu.core_type = #tpu.core_type<tc>, window_params = [{transform_indices = @transform_0, window_bounds = array<i64: 8, 32>}, {pipeline_mode = #tpu.pipeline_mode<synchronous>, transform_indices = @transform_1, window_bounds = array<i64: 32, 16>}, {pipeline_mode = #tpu.pipeline_mode<synchronous>, transform_indices = @transform_2, window_bounds = array<i64: 1, 16>}, {pipeline_mode = #tpu.pipeline_mode<synchronous>, transform_indices = @transform_3, window_bounds = array<i64: 16, 16>}, {pipeline_mode = #tpu.pipeline_mode<synchronous>, transform_indices = @transform_4, window_bounds = array<i64: 1, 16>}, {transform_indices = @transform_5, window_bounds = array<i64: 8, 16>}]} {
    %c0 = arith.constant 0 : index
    %c0_0 = arith.constant 0 : index
    %0 = vector.load %arg1[%c0, %c0_0] : memref<8x32xf32, #tpu.memory_space<vmem>>, vector<8x32xf32>
    %c0_1 = arith.constant 0 : index
    %c0_2 = arith.constant 0 : index
    %1 = vector.load %arg2[%c0_1, %c0_2] : memref<32x16xf32, #tpu.memory_space<vmem>>, vector<32x16xf32>
    %cst = arith.constant dense<0.000000e+00> : vector<8x16xf32>
    %2 = tpu.matmul %0, %1, %cst {dimension_numbers = #tpu.dot_dimension_numbers<[1], [0], [0], [1], [0, 0, 1, 1], [], []>} : vector<8x32xf32>, vector<32x16xf32>, vector<8x16xf32> -> vector<8x16xf32>
    %c0_3 = arith.constant 0 : index
    %c0_4 = arith.constant 0 : index
    %3 = vector.load %arg3[%c0_3, %c0_4] : memref<1x16xf32, #tpu.memory_space<vmem>>, vector<1x16xf32>
    %4 = vector.broadcast %3 : vector<1x16xf32> to vector<8x16xf32>
    %5 = arith.addf %2, %4 : vector<8x16xf32>
    %6 = math.tanh %5 : vector<8x16xf32>
    %c0_5 = arith.constant 0 : index
    %c0_6 = arith.constant 0 : index
    %7 = vector.load %arg4[%c0_5, %c0_6] : memref<16x16xf32, #tpu.memory_space<vmem>>, vector<16x16xf32>
    %cst_7 = arith.constant dense<0.000000e+00> : vector<8x16xf32>
    %8 = tpu.matmul %6, %7, %cst_7 {dimension_numbers = #tpu.dot_dimension_numbers<[1], [0], [0], [1], [0, 0, 1, 1], [], []>} : vector<8x16xf32>, vector<16x16xf32>, vector<8x16xf32> -> vector<8x16xf32>
    %c0_8 = arith.constant 0 : index
    %c0_9 = arith.constant 0 : index
    %9 = vector.load %arg5[%c0_8, %c0_9] : memref<1x16xf32, #tpu.memory_space<vmem>>, vector<1x16xf32>
    %10 = vector.broadcast %9 : vector<1x16xf32> to vector<8x16xf32>
    %11 = arith.addf %8, %10 : vector<8x16xf32>
    %c0_10 = arith.constant 0 : index
    %c0_11 = arith.constant 0 : index
    %12 = vector.load %arg6[%c0_10, %c0_11] : memref<8x16xf32, #tpu.memory_space<vmem>>, vector<8x16xf32>
    tpu.vector_store %arg6[%c0_10, %c0_11], %11 {strides = array<i32>} : memref<8x16xf32, #tpu.memory_space<vmem>>, vector<8x16xf32>,
    return
  }
  func.func @transform_0(%arg0: i32) -> (i32, i32) {
    %c0_i32 = arith.constant 0 : i32
    %c0_i32_0 = arith.constant 0 : i32
    return %arg0, %c0_i32 : i32, i32
  }
  func.func @transform_1(%arg0: i32) -> (i32, i32) {
    %c0_i32 = arith.constant 0 : i32
    %c0_i32_0 = arith.constant 0 : i32
    %c0_i32_1 = arith.constant 0 : i32
    return %c0_i32, %c0_i32_0 : i32, i32
  }
  func.func @transform_2(%arg0: i32) -> (i32, i32) {
    %c0_i32 = arith.constant 0 : i32
    %c0_i32_0 = arith.constant 0 : i32
    %c0_i32_1 = arith.constant 0 : i32
    return %c0_i32, %c0_i32_0 : i32, i32
  }
  func.func @transform_3(%arg0: i32) -> (i32, i32) {
    %c0_i32 = arith.constant 0 : i32
    %c0_i32_0 = arith.constant 0 : i32
    %c0_i32_1 = arith.constant 0 : i32
    return %c0_i32, %c0_i32_0 : i32, i32
  }
  func.func @transform_4(%arg0: i32) -> (i32, i32) {
    %c0_i32 = arith.constant 0 : i32
    %c0_i32_0 = arith.constant 0 : i32
    %c0_i32_1 = arith.constant 0 : i32
    return %c0_i32, %c0_i32_0 : i32, i32
  }
  func.func @transform_5(%arg0: i32) -> (i32, i32) {
    %c0_i32 = arith.constant 0 : i32
    %c0_i32_0 = arith.constant 0 : i32
    return %arg0, %c0_i32 : i32, i32
  }
}

module attributes {stable_mosaic.version = 11 : i64} {
  func.func @kernel(%arg0: i32, %arg1: memref<16x3xf32, #tpu.memory_space<vmem>>, %arg2: memref<16x16xf32, #tpu.memory_space<vmem>>, %arg3: memref<16x16xf32, #tpu.memory_space<vmem>>, %arg4: memref<1x8xf32, #tpu.memory_space<vmem>>, %arg5: memref<8x16xf32, #tpu.memory_space<vmem>>, %arg6: memref<1x16xf32, #tpu.memory_space<vmem>>, %arg7: memref<16x16xf32, #tpu.memory_space<vmem>>, %arg8: memref<1x16xf32, #tpu.memory_space<vmem>>, %arg9: memref<16x48xf32, #tpu.memory_space<vmem>>, %arg10: memref<16x48xf32, #tpu.memory_space<vmem>>, %arg11: memref<16x48xf32, #tpu.memory_space<vmem>>, %arg12: memref<1x48xf32, #tpu.memory_space<vmem>>, %arg13: memref<48x512xf32, #tpu.memory_space<vmem>>, %arg14: memref<1x512xf32, #tpu.memory_space<vmem>>, %arg15: memref<16x144xf32, #tpu.memory_space<vmem>>, %arg16: memref<16x144xf32, #tpu.memory_space<vmem>>, %arg17: memref<144x512xf32, #tpu.memory_space<vmem>>, %arg18: memref<512x32xf32, #tpu.memory_space<vmem>>, %arg19: memref<16x32xf32, #tpu.memory_space<vmem>>) attributes {dimension_semantics = [#tpu.dimension_semantics<parallel>], iteration_bounds = array<i64: 2>, scalar_prefetch = 0 : i64, scratch_operands = 0 : i64, tpu.core_type = #tpu.core_type<tc>, window_params = [{transform_indices = @transform_0, window_bounds = array<i64: 16, 3>}, {transform_indices = @transform_1, window_bounds = array<i64: 16, 16>}, {transform_indices = @transform_2, window_bounds = array<i64: 16, 16>}, {pipeline_mode = #tpu.pipeline_mode<synchronous>, transform_indices = @transform_3, window_bounds = array<i64: 1, 8>}, {pipeline_mode = #tpu.pipeline_mode<synchronous>, transform_indices = @transform_4, window_bounds = array<i64: 8, 16>}, {pipeline_mode = #tpu.pipeline_mode<synchronous>, transform_indices = @transform_5, window_bounds = array<i64: 1, 16>}, {pipeline_mode = #tpu.pipeline_mode<synchronous>, transform_indices = @transform_6, window_bounds = array<i64: 16, 16>}, {pipeline_mode = #tpu.pipeline_mode<synchronous>, transform_indices = @transform_7, window_bounds = array<i64: 1, 16>}, {pipeline_mode = #tpu.pipeline_mode<synchronous>, transform_indices = @transform_8, window_bounds = array<i64: 16, 48>}, {pipeline_mode = #tpu.pipeline_mode<synchronous>, transform_indices = @transform_9, window_bounds = array<i64: 16, 48>}, {pipeline_mode = #tpu.pipeline_mode<synchronous>, transform_indices = @transform_10, window_bounds = array<i64: 16, 48>}, {pipeline_mode = #tpu.pipeline_mode<synchronous>, transform_indices = @transform_11, window_bounds = array<i64: 1, 48>}, {pipeline_mode = #tpu.pipeline_mode<synchronous>, transform_indices = @transform_12, window_bounds = array<i64: 48, 512>}, {pipeline_mode = #tpu.pipeline_mode<synchronous>, transform_indices = @transform_13, window_bounds = array<i64: 1, 512>}, {pipeline_mode = #tpu.pipeline_mode<synchronous>, transform_indices = @transform_14, window_bounds = array<i64: 16, 144>}, {pipeline_mode = #tpu.pipeline_mode<synchronous>, transform_indices = @transform_15, window_bounds = array<i64: 16, 144>}, {pipeline_mode = #tpu.pipeline_mode<synchronous>, transform_indices = @transform_16, window_bounds = array<i64: 144, 512>}, {pipeline_mode = #tpu.pipeline_mode<synchronous>, transform_indices = @transform_17, window_bounds = array<i64: 512, 32>}, {transform_indices = @transform_18, window_bounds = array<i64: 16, 32>}]} {
    %c0 = arith.constant 0 : index
    %c0_0 = arith.constant 0 : index
    %0 = vector.load %arg1[%c0, %c0_0] : memref<16x3xf32, #tpu.memory_space<vmem>>, vector<16x3xf32>
    %1 = arith.mulf %0, %0 : vector<16x3xf32>
    %cst = arith.constant dense<0.000000e+00> : vector<16xf32>
    %2 = vector.multi_reduction <add>, %1, %cst [1] : vector<16x3xf32> to vector<16xf32>
    %3 = vector.shape_cast %2 : vector<16xf32> to vector<16x1xf32>
    %cst_1 = arith.constant 9.99999996E-13 : f32
    %4 = vector.broadcast %cst_1 : f32 to vector<16x1xf32>
    %5 = arith.maximumf %3, %4 : vector<16x1xf32>
    %6 = math.sqrt %5 : vector<16x1xf32>
    %c0_2 = arith.constant 0 : index
    %c0_3 = arith.constant 0 : index
    %7 = vector.load %arg4[%c0_2, %c0_3] : memref<1x8xf32, #tpu.memory_space<vmem>>, vector<1x8xf32>
    %8 = vector.broadcast %6 : vector<16x1xf32> to vector<16x8xf32>
    %9 = vector.broadcast %7 : vector<1x8xf32> to vector<16x8xf32>
    %10 = arith.subf %8, %9 : vector<16x8xf32>
    %cst_4 = arith.constant -0.680555522 : f32
    %11 = vector.broadcast %cst_4 : f32 to vector<16x8xf32>
    %12 = arith.mulf %11, %10 : vector<16x8xf32>
    %13 = arith.mulf %12, %10 : vector<16x8xf32>
    %14 = math.exp %13 : vector<16x8xf32>
    %c0_5 = arith.constant 0 : index
    %c0_6 = arith.constant 0 : index
    %15 = vector.load %arg5[%c0_5, %c0_6] : memref<8x16xf32, #tpu.memory_space<vmem>>, vector<8x16xf32>
    %cst_7 = arith.constant dense<0.000000e+00> : vector<16x16xf32>
    %16 = tpu.matmul %14, %15, %cst_7 {dimension_numbers = #tpu.dot_dimension_numbers<[1], [0], [0], [1], [0, 0, 1, 1], [], []>} : vector<16x8xf32>, vector<8x16xf32>, vector<16x16xf32> -> vector<16x16xf32>
    %c0_8 = arith.constant 0 : index
    %c0_9 = arith.constant 0 : index
    %17 = vector.load %arg6[%c0_8, %c0_9] : memref<1x16xf32, #tpu.memory_space<vmem>>, vector<1x16xf32>
    %18 = vector.broadcast %17 : vector<1x16xf32> to vector<16x16xf32>
    %19 = arith.addf %16, %18 : vector<16x16xf32>
    %cst_10 = arith.constant 0.000000e+00 : f32
    %20 = vector.broadcast %cst_10 : f32 to vector<16x16xf32>
    %21 = arith.maximumf %19, %20 : vector<16x16xf32>
    %c0_11 = arith.constant 0 : index
    %c0_12 = arith.constant 0 : index
    %22 = vector.load %arg7[%c0_11, %c0_12] : memref<16x16xf32, #tpu.memory_space<vmem>>, vector<16x16xf32>
    %cst_13 = arith.constant dense<0.000000e+00> : vector<16x16xf32>
    %23 = tpu.matmul %21, %22, %cst_13 {dimension_numbers = #tpu.dot_dimension_numbers<[1], [0], [0], [1], [0, 0, 1, 1], [], []>} : vector<16x16xf32>, vector<16x16xf32>, vector<16x16xf32> -> vector<16x16xf32>
    %c0_14 = arith.constant 0 : index
    %c0_15 = arith.constant 0 : index
    %24 = vector.load %arg8[%c0_14, %c0_15] : memref<1x16xf32, #tpu.memory_space<vmem>>, vector<1x16xf32>
    %25 = vector.broadcast %24 : vector<1x16xf32> to vector<16x16xf32>
    %26 = arith.addf %23, %25 : vector<16x16xf32>
    %27 = vector.broadcast %6 : vector<16x1xf32> to vector<16x3xf32>
    %28 = arith.divf %0, %27 : vector<16x3xf32>
    %29 = vector.extract_strided_slice %28 {offsets = [0, 0], sizes = [16, 1], strides = [1, 1]} : vector<16x3xf32> to vector<16x1xf32>
    %30 = vector.extract_strided_slice %28 {offsets = [0, 1], sizes = [16, 1], strides = [1, 1]} : vector<16x3xf32> to vector<16x1xf32>
    %31 = vector.extract_strided_slice %28 {offsets = [0, 2], sizes = [16, 1], strides = [1, 1]} : vector<16x3xf32> to vector<16x1xf32>
    %32 = arith.mulf %29, %29 : vector<16x1xf32>
    %33 = arith.mulf %30, %30 : vector<16x1xf32>
    %34 = arith.mulf %31, %31 : vector<16x1xf32>
    %cst_16 = arith.constant 1.000000e+00 : f32
    %35 = vector.broadcast %cst_16 : f32 to vector<16x1xf32>
    %cst_17 = arith.constant 1.73205078 : f32
    %36 = vector.broadcast %cst_17 : f32 to vector<16x1xf32>
    %37 = arith.mulf %36, %29 : vector<16x1xf32>
    %cst_18 = arith.constant 1.73205078 : f32
    %38 = vector.broadcast %cst_18 : f32 to vector<16x1xf32>
    %39 = arith.mulf %38, %30 : vector<16x1xf32>
    %cst_19 = arith.constant 1.73205078 : f32
    %40 = vector.broadcast %cst_19 : f32 to vector<16x1xf32>
    %41 = arith.mulf %40, %31 : vector<16x1xf32>
    %cst_20 = arith.constant 3.87298346 : f32
    %42 = vector.broadcast %cst_20 : f32 to vector<16x1xf32>
    %43 = arith.mulf %42, %29 : vector<16x1xf32>
    %44 = arith.mulf %43, %31 : vector<16x1xf32>
    %cst_21 = arith.constant 3.87298346 : f32
    %45 = vector.broadcast %cst_21 : f32 to vector<16x1xf32>
    %46 = arith.mulf %45, %29 : vector<16x1xf32>
    %47 = arith.mulf %46, %30 : vector<16x1xf32>
    %48 = arith.addf %32, %34 : vector<16x1xf32>
    %cst_22 = arith.constant 5.000000e-01 : f32
    %49 = vector.broadcast %cst_22 : f32 to vector<16x1xf32>
    %50 = arith.mulf %49, %48 : vector<16x1xf32>
    %51 = arith.subf %33, %50 : vector<16x1xf32>
    %cst_23 = arith.constant 2.23606801 : f32
    %52 = vector.broadcast %cst_23 : f32 to vector<16x1xf32>
    %53 = arith.mulf %52, %51 : vector<16x1xf32>
    %cst_24 = arith.constant 3.87298346 : f32
    %54 = vector.broadcast %cst_24 : f32 to vector<16x1xf32>
    %55 = arith.mulf %54, %30 : vector<16x1xf32>
    %56 = arith.mulf %55, %31 : vector<16x1xf32>
    %57 = arith.subf %34, %32 : vector<16x1xf32>
    %cst_25 = arith.constant 1.93649173 : f32
    %58 = vector.broadcast %cst_25 : f32 to vector<16x1xf32>
    %59 = arith.mulf %58, %57 : vector<16x1xf32>
    %cst_26 = arith.constant 0.000000e+00 : f32
    %60 = vector.broadcast %cst_26 : f32 to vector<16x7xf32>
    %61 = tpu.concatenate %35, %37, %39, %41, %44, %47, %53, %56, %59, %60 in 1 : vector<16x1xf32>, vector<16x1xf32>, vector<16x1xf32>, vector<16x1xf32>, vector<16x1xf32>, vector<16x1xf32>, vector<16x1xf32>, vector<16x1xf32>, vector<16x1xf32>, vector<16x7xf32> -> vector<16x16xf32>
    %c0_27 = arith.constant 0 : index
    %c0_28 = arith.constant 0 : index
    %62 = vector.load %arg2[%c0_27, %c0_28] : memref<16x16xf32, #tpu.memory_space<vmem>>, vector<16x16xf32>
    %c0_29 = arith.constant 0 : index
    %c0_30 = arith.constant 0 : index
    %63 = vector.load %arg3[%c0_29, %c0_30] : memref<16x16xf32, #tpu.memory_space<vmem>>, vector<16x16xf32>
    %c0_31 = arith.constant 0 : index
    %c0_32 = arith.constant 0 : index
    %64 = vector.load %arg9[%c0_31, %c0_32] : memref<16x48xf32, #tpu.memory_space<vmem>>, vector<16x48xf32>
    %cst_33 = arith.constant dense<0.000000e+00> : vector<16x48xf32>
    %65 = tpu.matmul %26, %64, %cst_33 {dimension_numbers = #tpu.dot_dimension_numbers<[1], [0], [0], [1], [0, 0, 1, 1], [], []>} : vector<16x16xf32>, vector<16x48xf32>, vector<16x48xf32> -> vector<16x48xf32>
    %c0_34 = arith.constant 0 : index
    %c0_35 = arith.constant 0 : index
    %66 = vector.load %arg10[%c0_34, %c0_35] : memref<16x48xf32, #tpu.memory_space<vmem>>, vector<16x48xf32>
    %cst_36 = arith.constant dense<0.000000e+00> : vector<16x48xf32>
    %67 = tpu.matmul %62, %66, %cst_36 {dimension_numbers = #tpu.dot_dimension_numbers<[1], [0], [0], [1], [0, 0, 1, 1], [], []>} : vector<16x16xf32>, vector<16x48xf32>, vector<16x48xf32> -> vector<16x48xf32>
    %68 = arith.addf %65, %67 : vector<16x48xf32>
    %c0_37 = arith.constant 0 : index
    %c0_38 = arith.constant 0 : index
    %69 = vector.load %arg11[%c0_37, %c0_38] : memref<16x48xf32, #tpu.memory_space<vmem>>, vector<16x48xf32>
    %cst_39 = arith.constant dense<0.000000e+00> : vector<16x48xf32>
    %70 = tpu.matmul %63, %69, %cst_39 {dimension_numbers = #tpu.dot_dimension_numbers<[1], [0], [0], [1], [0, 0, 1, 1], [], []>} : vector<16x16xf32>, vector<16x48xf32>, vector<16x48xf32> -> vector<16x48xf32>
    %71 = arith.addf %68, %70 : vector<16x48xf32>
    %c0_40 = arith.constant 0 : index
    %c0_41 = arith.constant 0 : index
    %72 = vector.load %arg12[%c0_40, %c0_41] : memref<1x48xf32, #tpu.memory_space<vmem>>, vector<1x48xf32>
    %73 = vector.broadcast %72 : vector<1x48xf32> to vector<16x48xf32>
    %74 = arith.addf %71, %73 : vector<16x48xf32>
    %cst_42 = arith.constant 0.000000e+00 : f32
    %75 = vector.broadcast %cst_42 : f32 to vector<16x48xf32>
    %76 = arith.maximumf %74, %75 : vector<16x48xf32>
    %c0_43 = arith.constant 0 : index
    %c0_44 = arith.constant 0 : index
    %77 = vector.load %arg13[%c0_43, %c0_44] : memref<48x512xf32, #tpu.memory_space<vmem>>, vector<48x512xf32>
    %cst_45 = arith.constant dense<0.000000e+00> : vector<16x512xf32>
    %78 = tpu.matmul %76, %77, %cst_45 {dimension_numbers = #tpu.dot_dimension_numbers<[1], [0], [0], [1], [0, 0, 1, 1], [], []>} : vector<16x48xf32>, vector<48x512xf32>, vector<16x512xf32> -> vector<16x512xf32>
    %c0_46 = arith.constant 0 : index
    %c0_47 = arith.constant 0 : index
    %79 = vector.load %arg14[%c0_46, %c0_47] : memref<1x512xf32, #tpu.memory_space<vmem>>, vector<1x512xf32>
    %80 = vector.broadcast %79 : vector<1x512xf32> to vector<16x512xf32>
    %81 = arith.addf %78, %80 : vector<16x512xf32>
    %c0_48 = arith.constant 0 : index
    %c0_49 = arith.constant 0 : index
    %82 = vector.load %arg15[%c0_48, %c0_49] : memref<16x144xf32, #tpu.memory_space<vmem>>, vector<16x144xf32>
    %cst_50 = arith.constant dense<0.000000e+00> : vector<16x144xf32>
    %83 = tpu.matmul %61, %82, %cst_50 {dimension_numbers = #tpu.dot_dimension_numbers<[1], [0], [0], [1], [0, 0, 1, 1], [], []>} : vector<16x16xf32>, vector<16x144xf32>, vector<16x144xf32> -> vector<16x144xf32>
    %c0_51 = arith.constant 0 : index
    %c0_52 = arith.constant 0 : index
    %84 = vector.load %arg16[%c0_51, %c0_52] : memref<16x144xf32, #tpu.memory_space<vmem>>, vector<16x144xf32>
    %cst_53 = arith.constant dense<0.000000e+00> : vector<16x144xf32>
    %85 = tpu.matmul %63, %84, %cst_53 {dimension_numbers = #tpu.dot_dimension_numbers<[1], [0], [0], [1], [0, 0, 1, 1], [], []>} : vector<16x16xf32>, vector<16x144xf32>, vector<16x144xf32> -> vector<16x144xf32>
    %86 = arith.mulf %83, %85 : vector<16x144xf32>
    %c0_54 = arith.constant 0 : index
    %c0_55 = arith.constant 0 : index
    %87 = vector.load %arg17[%c0_54, %c0_55] : memref<144x512xf32, #tpu.memory_space<vmem>>, vector<144x512xf32>
    %cst_56 = arith.constant dense<0.000000e+00> : vector<16x512xf32>
    %88 = tpu.matmul %86, %87, %cst_56 {dimension_numbers = #tpu.dot_dimension_numbers<[1], [0], [0], [1], [0, 0, 1, 1], [], []>} : vector<16x144xf32>, vector<144x512xf32>, vector<16x512xf32> -> vector<16x512xf32>
    %89 = arith.mulf %81, %88 : vector<16x512xf32>
    %c0_57 = arith.constant 0 : index
    %c0_58 = arith.constant 0 : index
    %90 = vector.load %arg18[%c0_57, %c0_58] : memref<512x32xf32, #tpu.memory_space<vmem>>, vector<512x32xf32>
    %cst_59 = arith.constant dense<0.000000e+00> : vector<16x32xf32>
    %91 = tpu.matmul %89, %90, %cst_59 {dimension_numbers = #tpu.dot_dimension_numbers<[1], [0], [0], [1], [0, 0, 1, 1], [], []>} : vector<16x512xf32>, vector<512x32xf32>, vector<16x32xf32> -> vector<16x32xf32>
    %c0_60 = arith.constant 0 : index
    %c0_61 = arith.constant 0 : index
    %92 = vector.load %arg19[%c0_60, %c0_61] : memref<16x32xf32, #tpu.memory_space<vmem>>, vector<16x32xf32>
    tpu.vector_store %arg19[%c0_60, %c0_61], %91 {strides = array<i32>} : memref<16x32xf32, #tpu.memory_space<vmem>>, vector<16x32xf32>,
    return
  }
  func.func @transform_0(%arg0: i32) -> (i32, i32) {
    %c0_i32 = arith.constant 0 : i32
    %c0_i32_0 = arith.constant 0 : i32
    return %arg0, %c0_i32 : i32, i32
  }
  func.func @transform_1(%arg0: i32) -> (i32, i32) {
    %c0_i32 = arith.constant 0 : i32
    %c0_i32_0 = arith.constant 0 : i32
    return %arg0, %c0_i32 : i32, i32
  }
  func.func @transform_2(%arg0: i32) -> (i32, i32) {
    %c0_i32 = arith.constant 0 : i32
    %c0_i32_0 = arith.constant 0 : i32
    return %arg0, %c0_i32 : i32, i32
  }
  func.func @transform_3(%arg0: i32) -> (i32, i32) {
    %c0_i32 = arith.constant 0 : i32
    %c0_i32_0 = arith.constant 0 : i32
    %c0_i32_1 = arith.constant 0 : i32
    return %c0_i32, %c0_i32_0 : i32, i32
  }
  func.func @transform_4(%arg0: i32) -> (i32, i32) {
    %c0_i32 = arith.constant 0 : i32
    %c0_i32_0 = arith.constant 0 : i32
    %c0_i32_1 = arith.constant 0 : i32
    return %c0_i32, %c0_i32_0 : i32, i32
  }
  func.func @transform_5(%arg0: i32) -> (i32, i32) {
    %c0_i32 = arith.constant 0 : i32
    %c0_i32_0 = arith.constant 0 : i32
    %c0_i32_1 = arith.constant 0 : i32
    return %c0_i32, %c0_i32_0 : i32, i32
  }
  func.func @transform_6(%arg0: i32) -> (i32, i32) {
    %c0_i32 = arith.constant 0 : i32
    %c0_i32_0 = arith.constant 0 : i32
    %c0_i32_1 = arith.constant 0 : i32
    return %c0_i32, %c0_i32_0 : i32, i32
  }
  func.func @transform_7(%arg0: i32) -> (i32, i32) {
    %c0_i32 = arith.constant 0 : i32
    %c0_i32_0 = arith.constant 0 : i32
    %c0_i32_1 = arith.constant 0 : i32
    return %c0_i32, %c0_i32_0 : i32, i32
  }
  func.func @transform_8(%arg0: i32) -> (i32, i32) {
    %c0_i32 = arith.constant 0 : i32
    %c0_i32_0 = arith.constant 0 : i32
    %c0_i32_1 = arith.constant 0 : i32
    return %c0_i32, %c0_i32_0 : i32, i32
  }
  func.func @transform_9(%arg0: i32) -> (i32, i32) {
    %c0_i32 = arith.constant 0 : i32
    %c0_i32_0 = arith.constant 0 : i32
    %c0_i32_1 = arith.constant 0 : i32
    return %c0_i32, %c0_i32_0 : i32, i32
  }
  func.func @transform_10(%arg0: i32) -> (i32, i32) {
    %c0_i32 = arith.constant 0 : i32
    %c0_i32_0 = arith.constant 0 : i32
    %c0_i32_1 = arith.constant 0 : i32
    return %c0_i32, %c0_i32_0 : i32, i32
  }
  func.func @transform_11(%arg0: i32) -> (i32, i32) {
    %c0_i32 = arith.constant 0 : i32
    %c0_i32_0 = arith.constant 0 : i32
    %c0_i32_1 = arith.constant 0 : i32
    return %c0_i32, %c0_i32_0 : i32, i32
  }
  func.func @transform_12(%arg0: i32) -> (i32, i32) {
    %c0_i32 = arith.constant 0 : i32
    %c0_i32_0 = arith.constant 0 : i32
    %c0_i32_1 = arith.constant 0 : i32
    return %c0_i32, %c0_i32_0 : i32, i32
  }
  func.func @transform_13(%arg0: i32) -> (i32, i32) {
    %c0_i32 = arith.constant 0 : i32
    %c0_i32_0 = arith.constant 0 : i32
    %c0_i32_1 = arith.constant 0 : i32
    return %c0_i32, %c0_i32_0 : i32, i32
  }
  func.func @transform_14(%arg0: i32) -> (i32, i32) {
    %c0_i32 = arith.constant 0 : i32
    %c0_i32_0 = arith.constant 0 : i32
    %c0_i32_1 = arith.constant 0 : i32
    return %c0_i32, %c0_i32_0 : i32, i32
  }
  func.func @transform_15(%arg0: i32) -> (i32, i32) {
    %c0_i32 = arith.constant 0 : i32
    %c0_i32_0 = arith.constant 0 : i32
    %c0_i32_1 = arith.constant 0 : i32
    return %c0_i32, %c0_i32_0 : i32, i32
  }
  func.func @transform_16(%arg0: i32) -> (i32, i32) {
    %c0_i32 = arith.constant 0 : i32
    %c0_i32_0 = arith.constant 0 : i32
    %c0_i32_1 = arith.constant 0 : i32
    return %c0_i32, %c0_i32_0 : i32, i32
  }
  func.func @transform_17(%arg0: i32) -> (i32, i32) {
    %c0_i32 = arith.constant 0 : i32
    %c0_i32_0 = arith.constant 0 : i32
    %c0_i32_1 = arith.constant 0 : i32
    return %c0_i32, %c0_i32_0 : i32, i32
  }
  func.func @transform_18(%arg0: i32) -> (i32, i32) {
    %c0_i32 = arith.constant 0 : i32
    %c0_i32_0 = arith.constant 0 : i32
    return %arg0, %c0_i32 : i32, i32
  }
}

module attributes {stable_mosaic.version = 11 : i64} {
  func.func @kernel(%arg0: i32, %arg1: i32, %arg2: memref<8x32xbf16, #tpu.memory_space<vmem>>, %arg3: memref<32x32xf32, #tpu.memory_space<vmem>>, %arg4: memref<8x1xf32, #tpu.memory_space<vmem>>, %arg5: memref<8x32xf32, #tpu.memory_space<vmem>>, %arg6: memref<8x32xf32, #tpu.memory_space<vmem>>, %arg7: memref<8x32xf32, #tpu.memory_space<vmem>>) attributes {dimension_semantics = [#tpu.dimension_semantics<parallel>, #tpu.dimension_semantics<arbitrary>], iteration_bounds = array<i64: 1, 1>, scalar_prefetch = 0 : i64, scratch_operands = 1 : i64, tpu.core_type = #tpu.core_type<tc>, window_params = [{transform_indices = @transform_0, window_bounds = array<i64: 8, 32>}, {transform_indices = @transform_1, window_bounds = array<i64: 32, 32>}, {transform_indices = @transform_2, window_bounds = array<i64: 8, 1>}, {transform_indices = @transform_3, window_bounds = array<i64: 8, 32>}, {transform_indices = @transform_4, window_bounds = array<i64: 8, 32>}]} {
    %c0_i32 = arith.constant 0 : i32
    %0 = arith.cmpi eq, %arg1, %c0_i32 : i32
    %1 = arith.extui %0 : i1 to i32
    %c0_i32_0 = arith.constant 0 : i32
    %2 = arith.cmpi ne, %1, %c0_i32_0 : i32
    scf.if %2 {
      %cst_10 = arith.constant 0.000000e+00 : f32
      %13 = vector.broadcast %cst_10 : f32 to vector<8x32xf32>
      %c0_11 = arith.constant 0 : index
      %c0_12 = arith.constant 0 : index
      %14 = vector.load %arg7[%c0_11, %c0_12] : memref<8x32xf32, #tpu.memory_space<vmem>>, vector<8x32xf32>
      tpu.vector_store %arg7[%c0_11, %c0_12], %13 {strides = array<i32>} : memref<8x32xf32, #tpu.memory_space<vmem>>, vector<8x32xf32>,
    } else {
    }
    %c0 = arith.constant 0 : index
    %c0_1 = arith.constant 0 : index
    %3 = vector.load %arg7[%c0, %c0_1] : memref<8x32xf32, #tpu.memory_space<vmem>>, vector<8x32xf32>
    %c0_2 = arith.constant 0 : index
    %c0_3 = arith.constant 0 : index
    %4 = vector.load %arg2[%c0_2, %c0_3] : memref<8x32xbf16, #tpu.memory_space<vmem>>, vector<8x32xbf16>
    %5 = arith.extf %4 : vector<8x32xbf16> to vector<8x32xf32>
    %c0_4 = arith.constant 0 : index
    %c0_5 = arith.constant 0 : index
    %6 = vector.load %arg3[%c0_4, %c0_5] : memref<32x32xf32, #tpu.memory_space<vmem>>, vector<32x32xf32>
    %cst = arith.constant dense<0.000000e+00> : vector<8x32xf32>
    %7 = tpu.matmul %5, %6, %cst {dimension_numbers = #tpu.dot_dimension_numbers<[1], [0], [0], [1], [0, 0, 1, 1], [], []>} : vector<8x32xf32>, vector<32x32xf32>, vector<8x32xf32> -> vector<8x32xf32>
    %8 = arith.addf %3, %7 : vector<8x32xf32>
    %c0_6 = arith.constant 0 : index
    %c0_7 = arith.constant 0 : index
    %9 = vector.load %arg7[%c0_6, %c0_7] : memref<8x32xf32, #tpu.memory_space<vmem>>, vector<8x32xf32>
    tpu.vector_store %arg7[%c0_6, %c0_7], %8 {strides = array<i32>} : memref<8x32xf32, #tpu.memory_space<vmem>>, vector<8x32xf32>,
    %c0_i32_8 = arith.constant 0 : i32
    %10 = arith.cmpi eq, %arg1, %c0_i32_8 : i32
    %11 = arith.extui %10 : i1 to i32
    %c0_i32_9 = arith.constant 0 : i32
    %12 = arith.cmpi ne, %11, %c0_i32_9 : i32
    scf.if %12 {
      %c0_10 = arith.constant 0 : index
      %c0_11 = arith.constant 0 : index
      %13 = vector.load %arg7[%c0_10, %c0_11] : memref<8x32xf32, #tpu.memory_space<vmem>>, vector<8x32xf32>
      %c0_12 = arith.constant 0 : index
      %c0_13 = arith.constant 0 : index
      %14 = vector.load %arg4[%c0_12, %c0_13] : memref<8x1xf32, #tpu.memory_space<vmem>>, vector<8x1xf32>
      %15 = vector.broadcast %14 : vector<8x1xf32> to vector<8x32xf32>
      %16 = arith.mulf %13, %15 : vector<8x32xf32>
      %c0_14 = arith.constant 0 : index
      %c0_15 = arith.constant 0 : index
      %17 = vector.load %arg5[%c0_14, %c0_15] : memref<8x32xf32, #tpu.memory_space<vmem>>, vector<8x32xf32>
      %18 = arith.addf %16, %17 : vector<8x32xf32>
      %c0_16 = arith.constant 0 : index
      %c0_17 = arith.constant 0 : index
      %19 = vector.load %arg6[%c0_16, %c0_17] : memref<8x32xf32, #tpu.memory_space<vmem>>, vector<8x32xf32>
      tpu.vector_store %arg6[%c0_16, %c0_17], %18 {strides = array<i32>} : memref<8x32xf32, #tpu.memory_space<vmem>>, vector<8x32xf32>,
    } else {
    }
    return
  }
  func.func @transform_0(%arg0: i32, %arg1: i32) -> (i32, i32) {
    %c0_i32 = arith.constant 0 : i32
    return %arg0, %arg1 : i32, i32
  }
  func.func @transform_1(%arg0: i32, %arg1: i32) -> (i32, i32) {
    %c0_i32 = arith.constant 0 : i32
    %c0_i32_0 = arith.constant 0 : i32
    return %arg1, %c0_i32 : i32, i32
  }
  func.func @transform_2(%arg0: i32, %arg1: i32) -> (i32, i32) {
    %c0_i32 = arith.constant 0 : i32
    %c0_i32_0 = arith.constant 0 : i32
    return %arg0, %c0_i32 : i32, i32
  }
  func.func @transform_3(%arg0: i32, %arg1: i32) -> (i32, i32) {
    %c0_i32 = arith.constant 0 : i32
    %c0_i32_0 = arith.constant 0 : i32
    return %arg0, %c0_i32 : i32, i32
  }
  func.func @transform_4(%arg0: i32, %arg1: i32) -> (i32, i32) {
    %c0_i32 = arith.constant 0 : i32
    %c0_i32_0 = arith.constant 0 : i32
    return %arg0, %c0_i32 : i32, i32
  }
}

module attributes {stable_mosaic.version = 11 : i64} {
  func.func @kernel(%arg0: i32, %arg1: memref<16x3xf32, #tpu.memory_space<vmem>>, %arg2: memref<16x16xf32, #tpu.memory_space<vmem>>, %arg3: memref<16x32xf32, #tpu.memory_space<vmem>>, %arg4: memref<1x8xf32, #tpu.memory_space<vmem>>, %arg5: memref<8x16xf32, #tpu.memory_space<vmem>>, %arg6: memref<1x16xf32, #tpu.memory_space<vmem>>, %arg7: memref<16x16xf32, #tpu.memory_space<vmem>>, %arg8: memref<1x16xf32, #tpu.memory_space<vmem>>, %arg9: memref<16x48xf32, #tpu.memory_space<vmem>>, %arg10: memref<16x48xf32, #tpu.memory_space<vmem>>, %arg11: memref<32x48xf32, #tpu.memory_space<vmem>>, %arg12: memref<1x48xf32, #tpu.memory_space<vmem>>, %arg13: memref<48x768xf32, #tpu.memory_space<vmem>>, %arg14: memref<1x768xf32, #tpu.memory_space<vmem>>, %arg15: memref<16x288xf32, #tpu.memory_space<vmem>>, %arg16: memref<32x288xf32, #tpu.memory_space<vmem>>, %arg17: memref<288x768xf32, #tpu.memory_space<vmem>>, %arg18: memref<768x40xf32, #tpu.memory_space<vmem>>, %arg19: memref<16x40xf32, #tpu.memory_space<vmem>>) attributes {dimension_semantics = [#tpu.dimension_semantics<parallel>], iteration_bounds = array<i64: 2>, scalar_prefetch = 0 : i64, scratch_operands = 0 : i64, tpu.core_type = #tpu.core_type<tc>, window_params = [{transform_indices = @transform_0, window_bounds = array<i64: 16, 3>}, {transform_indices = @transform_1, window_bounds = array<i64: 16, 16>}, {transform_indices = @transform_2, window_bounds = array<i64: 16, 32>}, {pipeline_mode = #tpu.pipeline_mode<synchronous>, transform_indices = @transform_3, window_bounds = array<i64: 1, 8>}, {pipeline_mode = #tpu.pipeline_mode<synchronous>, transform_indices = @transform_4, window_bounds = array<i64: 8, 16>}, {pipeline_mode = #tpu.pipeline_mode<synchronous>, transform_indices = @transform_5, window_bounds = array<i64: 1, 16>}, {pipeline_mode = #tpu.pipeline_mode<synchronous>, transform_indices = @transform_6, window_bounds = array<i64: 16, 16>}, {pipeline_mode = #tpu.pipeline_mode<synchronous>, transform_indices = @transform_7, window_bounds = array<i64: 1, 16>}, {pipeline_mode = #tpu.pipeline_mode<synchronous>, transform_indices = @transform_8, window_bounds = array<i64: 16, 48>}, {pipeline_mode = #tpu.pipeline_mode<synchronous>, transform_indices = @transform_9, window_bounds = array<i64: 16, 48>}, {pipeline_mode = #tpu.pipeline_mode<synchronous>, transform_indices = @transform_10, window_bounds = array<i64: 32, 48>}, {pipeline_mode = #tpu.pipeline_mode<synchronous>, transform_indices = @transform_11, window_bounds = array<i64: 1, 48>}, {pipeline_mode = #tpu.pipeline_mode<synchronous>, transform_indices = @transform_12, window_bounds = array<i64: 48, 768>}, {pipeline_mode = #tpu.pipeline_mode<synchronous>, transform_indices = @transform_13, window_bounds = array<i64: 1, 768>}, {pipeline_mode = #tpu.pipeline_mode<synchronous>, transform_indices = @transform_14, window_bounds = array<i64: 16, 288>}, {pipeline_mode = #tpu.pipeline_mode<synchronous>, transform_indices = @transform_15, window_bounds = array<i64: 32, 288>}, {pipeline_mode = #tpu.pipeline_mode<synchronous>, transform_indices = @transform_16, window_bounds = array<i64: 288, 768>}, {pipeline_mode = #tpu.pipeline_mode<synchronous>, transform_indices = @transform_17, window_bounds = array<i64: 768, 40>}, {transform_indices = @transform_18, window_bounds = array<i64: 16, 40>}]} {
    %c0 = arith.constant 0 : index
    %c0_0 = arith.constant 0 : index
    %0 = vector.load %arg1[%c0, %c0_0] : memref<16x3xf32, #tpu.memory_space<vmem>>, vector<16x3xf32>
    %1 = arith.mulf %0, %0 : vector<16x3xf32>
    %cst = arith.constant dense<0.000000e+00> : vector<16xf32>
    %2 = vector.multi_reduction <add>, %1, %cst [1] : vector<16x3xf32> to vector<16xf32>
    %3 = vector.shape_cast %2 : vector<16xf32> to vector<16x1xf32>
    %cst_1 = arith.constant 9.99999996E-13 : f32
    %4 = vector.broadcast %cst_1 : f32 to vector<16x1xf32>
    %5 = arith.maximumf %3, %4 : vector<16x1xf32>
    %6 = math.sqrt %5 : vector<16x1xf32>
    %c0_2 = arith.constant 0 : index
    %c0_3 = arith.constant 0 : index
    %7 = vector.load %arg4[%c0_2, %c0_3] : memref<1x8xf32, #tpu.memory_space<vmem>>, vector<1x8xf32>
    %8 = vector.broadcast %6 : vector<16x1xf32> to vector<16x8xf32>
    %9 = vector.broadcast %7 : vector<1x8xf32> to vector<16x8xf32>
    %10 = arith.subf %8, %9 : vector<16x8xf32>
    %cst_4 = arith.constant -0.680555522 : f32
    %11 = vector.broadcast %cst_4 : f32 to vector<16x8xf32>
    %12 = arith.mulf %11, %10 : vector<16x8xf32>
    %13 = arith.mulf %12, %10 : vector<16x8xf32>
    %14 = math.exp %13 : vector<16x8xf32>
    %c0_5 = arith.constant 0 : index
    %c0_6 = arith.constant 0 : index
    %15 = vector.load %arg5[%c0_5, %c0_6] : memref<8x16xf32, #tpu.memory_space<vmem>>, vector<8x16xf32>
    %cst_7 = arith.constant dense<0.000000e+00> : vector<16x16xf32>
    %16 = tpu.matmul %14, %15, %cst_7 {dimension_numbers = #tpu.dot_dimension_numbers<[1], [0], [0], [1], [0, 0, 1, 1], [], []>} : vector<16x8xf32>, vector<8x16xf32>, vector<16x16xf32> -> vector<16x16xf32>
    %c0_8 = arith.constant 0 : index
    %c0_9 = arith.constant 0 : index
    %17 = vector.load %arg6[%c0_8, %c0_9] : memref<1x16xf32, #tpu.memory_space<vmem>>, vector<1x16xf32>
    %18 = vector.broadcast %17 : vector<1x16xf32> to vector<16x16xf32>
    %19 = arith.addf %16, %18 : vector<16x16xf32>
    %cst_10 = arith.constant 0.000000e+00 : f32
    %20 = vector.broadcast %cst_10 : f32 to vector<16x16xf32>
    %21 = arith.maximumf %19, %20 : vector<16x16xf32>
    %c0_11 = arith.constant 0 : index
    %c0_12 = arith.constant 0 : index
    %22 = vector.load %arg7[%c0_11, %c0_12] : memref<16x16xf32, #tpu.memory_space<vmem>>, vector<16x16xf32>
    %cst_13 = arith.constant dense<0.000000e+00> : vector<16x16xf32>
    %23 = tpu.matmul %21, %22, %cst_13 {dimension_numbers = #tpu.dot_dimension_numbers<[1], [0], [0], [1], [0, 0, 1, 1], [], []>} : vector<16x16xf32>, vector<16x16xf32>, vector<16x16xf32> -> vector<16x16xf32>
    %c0_14 = arith.constant 0 : index
    %c0_15 = arith.constant 0 : index
    %24 = vector.load %arg8[%c0_14, %c0_15] : memref<1x16xf32, #tpu.memory_space<vmem>>, vector<1x16xf32>
    %25 = vector.broadcast %24 : vector<1x16xf32> to vector<16x16xf32>
    %26 = arith.addf %23, %25 : vector<16x16xf32>
    %27 = vector.broadcast %6 : vector<16x1xf32> to vector<16x3xf32>
    %28 = arith.divf %0, %27 : vector<16x3xf32>
    %29 = vector.extract_strided_slice %28 {offsets = [0, 0], sizes = [16, 1], strides = [1, 1]} : vector<16x3xf32> to vector<16x1xf32>
    %30 = vector.extract_strided_slice %28 {offsets = [0, 1], sizes = [16, 1], strides = [1, 1]} : vector<16x3xf32> to vector<16x1xf32>
    %31 = vector.extract_strided_slice %28 {offsets = [0, 2], sizes = [16, 1], strides = [1, 1]} : vector<16x3xf32> to vector<16x1xf32>
    %32 = arith.mulf %29, %29 : vector<16x1xf32>
    %33 = arith.mulf %30, %30 : vector<16x1xf32>
    %34 = arith.mulf %31, %31 : vector<16x1xf32>
    %cst_16 = arith.constant 1.000000e+00 : f32
    %35 = vector.broadcast %cst_16 : f32 to vector<16x1xf32>
    %cst_17 = arith.constant 1.73205078 : f32
    %36 = vector.broadcast %cst_17 : f32 to vector<16x1xf32>
    %37 = arith.mulf %36, %29 : vector<16x1xf32>
    %cst_18 = arith.constant 1.73205078 : f32
    %38 = vector.broadcast %cst_18 : f32 to vector<16x1xf32>
    %39 = arith.mulf %38, %30 : vector<16x1xf32>
    %cst_19 = arith.constant 1.73205078 : f32
    %40 = vector.broadcast %cst_19 : f32 to vector<16x1xf32>
    %41 = arith.mulf %40, %31 : vector<16x1xf32>
    %cst_20 = arith.constant 3.87298346 : f32
    %42 = vector.broadcast %cst_20 : f32 to vector<16x1xf32>
    %43 = arith.mulf %42, %29 : vector<16x1xf32>
    %44 = arith.mulf %43, %31 : vector<16x1xf32>
    %cst_21 = arith.constant 3.87298346 : f32
    %45 = vector.broadcast %cst_21 : f32 to vector<16x1xf32>
    %46 = arith.mulf %45, %29 : vector<16x1xf32>
    %47 = arith.mulf %46, %30 : vector<16x1xf32>
    %48 = arith.addf %32, %34 : vector<16x1xf32>
    %cst_22 = arith.constant 5.000000e-01 : f32
    %49 = vector.broadcast %cst_22 : f32 to vector<16x1xf32>
    %50 = arith.mulf %49, %48 : vector<16x1xf32>
    %51 = arith.subf %33, %50 : vector<16x1xf32>
    %cst_23 = arith.constant 2.23606801 : f32
    %52 = vector.broadcast %cst_23 : f32 to vector<16x1xf32>
    %53 = arith.mulf %52, %51 : vector<16x1xf32>
    %cst_24 = arith.constant 3.87298346 : f32
    %54 = vector.broadcast %cst_24 : f32 to vector<16x1xf32>
    %55 = arith.mulf %54, %30 : vector<16x1xf32>
    %56 = arith.mulf %55, %31 : vector<16x1xf32>
    %57 = arith.subf %34, %32 : vector<16x1xf32>
    %cst_25 = arith.constant 1.93649173 : f32
    %58 = vector.broadcast %cst_25 : f32 to vector<16x1xf32>
    %59 = arith.mulf %58, %57 : vector<16x1xf32>
    %cst_26 = arith.constant 0.000000e+00 : f32
    %60 = vector.broadcast %cst_26 : f32 to vector<16x7xf32>
    %61 = tpu.concatenate %35, %37, %39, %41, %44, %47, %53, %56, %59, %60 in 1 : vector<16x1xf32>, vector<16x1xf32>, vector<16x1xf32>, vector<16x1xf32>, vector<16x1xf32>, vector<16x1xf32>, vector<16x1xf32>, vector<16x1xf32>, vector<16x1xf32>, vector<16x7xf32> -> vector<16x16xf32>
    %c0_27 = arith.constant 0 : index
    %c0_28 = arith.constant 0 : index
    %62 = vector.load %arg2[%c0_27, %c0_28] : memref<16x16xf32, #tpu.memory_space<vmem>>, vector<16x16xf32>
    %c0_29 = arith.constant 0 : index
    %c0_30 = arith.constant 0 : index
    %63 = vector.load %arg3[%c0_29, %c0_30] : memref<16x32xf32, #tpu.memory_space<vmem>>, vector<16x32xf32>
    %c0_31 = arith.constant 0 : index
    %c0_32 = arith.constant 0 : index
    %64 = vector.load %arg9[%c0_31, %c0_32] : memref<16x48xf32, #tpu.memory_space<vmem>>, vector<16x48xf32>
    %cst_33 = arith.constant dense<0.000000e+00> : vector<16x48xf32>
    %65 = tpu.matmul %26, %64, %cst_33 {dimension_numbers = #tpu.dot_dimension_numbers<[1], [0], [0], [1], [0, 0, 1, 1], [], []>} : vector<16x16xf32>, vector<16x48xf32>, vector<16x48xf32> -> vector<16x48xf32>
    %c0_34 = arith.constant 0 : index
    %c0_35 = arith.constant 0 : index
    %66 = vector.load %arg10[%c0_34, %c0_35] : memref<16x48xf32, #tpu.memory_space<vmem>>, vector<16x48xf32>
    %cst_36 = arith.constant dense<0.000000e+00> : vector<16x48xf32>
    %67 = tpu.matmul %62, %66, %cst_36 {dimension_numbers = #tpu.dot_dimension_numbers<[1], [0], [0], [1], [0, 0, 1, 1], [], []>} : vector<16x16xf32>, vector<16x48xf32>, vector<16x48xf32> -> vector<16x48xf32>
    %68 = arith.addf %65, %67 : vector<16x48xf32>
    %c0_37 = arith.constant 0 : index
    %c0_38 = arith.constant 0 : index
    %69 = vector.load %arg11[%c0_37, %c0_38] : memref<32x48xf32, #tpu.memory_space<vmem>>, vector<32x48xf32>
    %cst_39 = arith.constant dense<0.000000e+00> : vector<16x48xf32>
    %70 = tpu.matmul %63, %69, %cst_39 {dimension_numbers = #tpu.dot_dimension_numbers<[1], [0], [0], [1], [0, 0, 1, 1], [], []>} : vector<16x32xf32>, vector<32x48xf32>, vector<16x48xf32> -> vector<16x48xf32>
    %71 = arith.addf %68, %70 : vector<16x48xf32>
    %c0_40 = arith.constant 0 : index
    %c0_41 = arith.constant 0 : index
    %72 = vector.load %arg12[%c0_40, %c0_41] : memref<1x48xf32, #tpu.memory_space<vmem>>, vector<1x48xf32>
    %73 = vector.broadcast %72 : vector<1x48xf32> to vector<16x48xf32>
    %74 = arith.addf %71, %73 : vector<16x48xf32>
    %cst_42 = arith.constant 0.000000e+00 : f32
    %75 = vector.broadcast %cst_42 : f32 to vector<16x48xf32>
    %76 = arith.maximumf %74, %75 : vector<16x48xf32>
    %c0_43 = arith.constant 0 : index
    %c0_44 = arith.constant 0 : index
    %77 = vector.load %arg13[%c0_43, %c0_44] : memref<48x768xf32, #tpu.memory_space<vmem>>, vector<48x768xf32>
    %cst_45 = arith.constant dense<0.000000e+00> : vector<16x768xf32>
    %78 = tpu.matmul %76, %77, %cst_45 {dimension_numbers = #tpu.dot_dimension_numbers<[1], [0], [0], [1], [0, 0, 1, 1], [], []>} : vector<16x48xf32>, vector<48x768xf32>, vector<16x768xf32> -> vector<16x768xf32>
    %c0_46 = arith.constant 0 : index
    %c0_47 = arith.constant 0 : index
    %79 = vector.load %arg14[%c0_46, %c0_47] : memref<1x768xf32, #tpu.memory_space<vmem>>, vector<1x768xf32>
    %80 = vector.broadcast %79 : vector<1x768xf32> to vector<16x768xf32>
    %81 = arith.addf %78, %80 : vector<16x768xf32>
    %c0_48 = arith.constant 0 : index
    %c0_49 = arith.constant 0 : index
    %82 = vector.load %arg15[%c0_48, %c0_49] : memref<16x288xf32, #tpu.memory_space<vmem>>, vector<16x288xf32>
    %cst_50 = arith.constant dense<0.000000e+00> : vector<16x288xf32>
    %83 = tpu.matmul %61, %82, %cst_50 {dimension_numbers = #tpu.dot_dimension_numbers<[1], [0], [0], [1], [0, 0, 1, 1], [], []>} : vector<16x16xf32>, vector<16x288xf32>, vector<16x288xf32> -> vector<16x288xf32>
    %c0_51 = arith.constant 0 : index
    %c0_52 = arith.constant 0 : index
    %84 = vector.load %arg16[%c0_51, %c0_52] : memref<32x288xf32, #tpu.memory_space<vmem>>, vector<32x288xf32>
    %cst_53 = arith.constant dense<0.000000e+00> : vector<16x288xf32>
    %85 = tpu.matmul %63, %84, %cst_53 {dimension_numbers = #tpu.dot_dimension_numbers<[1], [0], [0], [1], [0, 0, 1, 1], [], []>} : vector<16x32xf32>, vector<32x288xf32>, vector<16x288xf32> -> vector<16x288xf32>
    %86 = arith.mulf %83, %85 : vector<16x288xf32>
    %c0_54 = arith.constant 0 : index
    %c0_55 = arith.constant 0 : index
    %87 = vector.load %arg17[%c0_54, %c0_55] : memref<288x768xf32, #tpu.memory_space<vmem>>, vector<288x768xf32>
    %cst_56 = arith.constant dense<0.000000e+00> : vector<16x768xf32>
    %88 = tpu.matmul %86, %87, %cst_56 {dimension_numbers = #tpu.dot_dimension_numbers<[1], [0], [0], [1], [0, 0, 1, 1], [], []>} : vector<16x288xf32>, vector<288x768xf32>, vector<16x768xf32> -> vector<16x768xf32>
    %89 = arith.mulf %81, %88 : vector<16x768xf32>
    %c0_57 = arith.constant 0 : index
    %c0_58 = arith.constant 0 : index
    %90 = vector.load %arg18[%c0_57, %c0_58] : memref<768x40xf32, #tpu.memory_space<vmem>>, vector<768x40xf32>
    %cst_59 = arith.constant dense<0.000000e+00> : vector<16x40xf32>
    %91 = tpu.matmul %89, %90, %cst_59 {dimension_numbers = #tpu.dot_dimension_numbers<[1], [0], [0], [1], [0, 0, 1, 1], [], []>} : vector<16x768xf32>, vector<768x40xf32>, vector<16x40xf32> -> vector<16x40xf32>
    %c0_60 = arith.constant 0 : index
    %c0_61 = arith.constant 0 : index
    %92 = vector.load %arg19[%c0_60, %c0_61] : memref<16x40xf32, #tpu.memory_space<vmem>>, vector<16x40xf32>
    tpu.vector_store %arg19[%c0_60, %c0_61], %91 {strides = array<i32>} : memref<16x40xf32, #tpu.memory_space<vmem>>, vector<16x40xf32>,
    return
  }
  func.func @transform_0(%arg0: i32) -> (i32, i32) {
    %c0_i32 = arith.constant 0 : i32
    %c0_i32_0 = arith.constant 0 : i32
    return %arg0, %c0_i32 : i32, i32
  }
  func.func @transform_1(%arg0: i32) -> (i32, i32) {
    %c0_i32 = arith.constant 0 : i32
    %c0_i32_0 = arith.constant 0 : i32
    return %arg0, %c0_i32 : i32, i32
  }
  func.func @transform_2(%arg0: i32) -> (i32, i32) {
    %c0_i32 = arith.constant 0 : i32
    %c0_i32_0 = arith.constant 0 : i32
    return %arg0, %c0_i32 : i32, i32
  }
  func.func @transform_3(%arg0: i32) -> (i32, i32) {
    %c0_i32 = arith.constant 0 : i32
    %c0_i32_0 = arith.constant 0 : i32
    %c0_i32_1 = arith.constant 0 : i32
    return %c0_i32, %c0_i32_0 : i32, i32
  }
  func.func @transform_4(%arg0: i32) -> (i32, i32) {
    %c0_i32 = arith.constant 0 : i32
    %c0_i32_0 = arith.constant 0 : i32
    %c0_i32_1 = arith.constant 0 : i32
    return %c0_i32, %c0_i32_0 : i32, i32
  }
  func.func @transform_5(%arg0: i32) -> (i32, i32) {
    %c0_i32 = arith.constant 0 : i32
    %c0_i32_0 = arith.constant 0 : i32
    %c0_i32_1 = arith.constant 0 : i32
    return %c0_i32, %c0_i32_0 : i32, i32
  }
  func.func @transform_6(%arg0: i32) -> (i32, i32) {
    %c0_i32 = arith.constant 0 : i32
    %c0_i32_0 = arith.constant 0 : i32
    %c0_i32_1 = arith.constant 0 : i32
    return %c0_i32, %c0_i32_0 : i32, i32
  }
  func.func @transform_7(%arg0: i32) -> (i32, i32) {
    %c0_i32 = arith.constant 0 : i32
    %c0_i32_0 = arith.constant 0 : i32
    %c0_i32_1 = arith.constant 0 : i32
    return %c0_i32, %c0_i32_0 : i32, i32
  }
  func.func @transform_8(%arg0: i32) -> (i32, i32) {
    %c0_i32 = arith.constant 0 : i32
    %c0_i32_0 = arith.constant 0 : i32
    %c0_i32_1 = arith.constant 0 : i32
    return %c0_i32, %c0_i32_0 : i32, i32
  }
  func.func @transform_9(%arg0: i32) -> (i32, i32) {
    %c0_i32 = arith.constant 0 : i32
    %c0_i32_0 = arith.constant 0 : i32
    %c0_i32_1 = arith.constant 0 : i32
    return %c0_i32, %c0_i32_0 : i32, i32
  }
  func.func @transform_10(%arg0: i32) -> (i32, i32) {
    %c0_i32 = arith.constant 0 : i32
    %c0_i32_0 = arith.constant 0 : i32
    %c0_i32_1 = arith.constant 0 : i32
    return %c0_i32, %c0_i32_0 : i32, i32
  }
  func.func @transform_11(%arg0: i32) -> (i32, i32) {
    %c0_i32 = arith.constant 0 : i32
    %c0_i32_0 = arith.constant 0 : i32
    %c0_i32_1 = arith.constant 0 : i32
    return %c0_i32, %c0_i32_0 : i32, i32
  }
  func.func @transform_12(%arg0: i32) -> (i32, i32) {
    %c0_i32 = arith.constant 0 : i32
    %c0_i32_0 = arith.constant 0 : i32
    %c0_i32_1 = arith.constant 0 : i32
    return %c0_i32, %c0_i32_0 : i32, i32
  }
  func.func @transform_13(%arg0: i32) -> (i32, i32) {
    %c0_i32 = arith.constant 0 : i32
    %c0_i32_0 = arith.constant 0 : i32
    %c0_i32_1 = arith.constant 0 : i32
    return %c0_i32, %c0_i32_0 : i32, i32
  }
  func.func @transform_14(%arg0: i32) -> (i32, i32) {
    %c0_i32 = arith.constant 0 : i32
    %c0_i32_0 = arith.constant 0 : i32
    %c0_i32_1 = arith.constant 0 : i32
    return %c0_i32, %c0_i32_0 : i32, i32
  }
  func.func @transform_15(%arg0: i32) -> (i32, i32) {
    %c0_i32 = arith.constant 0 : i32
    %c0_i32_0 = arith.constant 0 : i32
    %c0_i32_1 = arith.constant 0 : i32
    return %c0_i32, %c0_i32_0 : i32, i32
  }
  func.func @transform_16(%arg0: i32) -> (i32, i32) {
    %c0_i32 = arith.constant 0 : i32
    %c0_i32_0 = arith.constant 0 : i32
    %c0_i32_1 = arith.constant 0 : i32
    return %c0_i32, %c0_i32_0 : i32, i32
  }
  func.func @transform_17(%arg0: i32) -> (i32, i32) {
    %c0_i32 = arith.constant 0 : i32
    %c0_i32_0 = arith.constant 0 : i32
    %c0_i32_1 = arith.constant 0 : i32
    return %c0_i32, %c0_i32_0 : i32, i32
  }
  func.func @transform_18(%arg0: i32) -> (i32, i32) {
    %c0_i32 = arith.constant 0 : i32
    %c0_i32_0 = arith.constant 0 : i32
    return %arg0, %c0_i32 : i32, i32
  }
}

module attributes {stable_mosaic.version = 11 : i64} {
  func.func @kernel(%arg0: i32, %arg1: i32, %arg2: memref<8x32xbf16, #tpu.memory_space<vmem>>, %arg3: memref<32x40xf32, #tpu.memory_space<vmem>>, %arg4: memref<8x1xf32, #tpu.memory_space<vmem>>, %arg5: memref<8x40xf32, #tpu.memory_space<vmem>>, %arg6: memref<8x40xf32, #tpu.memory_space<vmem>>, %arg7: memref<8x40xf32, #tpu.memory_space<vmem>>) attributes {dimension_semantics = [#tpu.dimension_semantics<parallel>, #tpu.dimension_semantics<arbitrary>], iteration_bounds = array<i64: 1, 1>, scalar_prefetch = 0 : i64, scratch_operands = 1 : i64, tpu.core_type = #tpu.core_type<tc>, window_params = [{transform_indices = @transform_0, window_bounds = array<i64: 8, 32>}, {transform_indices = @transform_1, window_bounds = array<i64: 32, 40>}, {transform_indices = @transform_2, window_bounds = array<i64: 8, 1>}, {transform_indices = @transform_3, window_bounds = array<i64: 8, 40>}, {transform_indices = @transform_4, window_bounds = array<i64: 8, 40>}]} {
    %c0_i32 = arith.constant 0 : i32
    %0 = arith.cmpi eq, %arg1, %c0_i32 : i32
    %1 = arith.extui %0 : i1 to i32
    %c0_i32_0 = arith.constant 0 : i32
    %2 = arith.cmpi ne, %1, %c0_i32_0 : i32
    scf.if %2 {
      %cst_10 = arith.constant 0.000000e+00 : f32
      %13 = vector.broadcast %cst_10 : f32 to vector<8x40xf32>
      %c0_11 = arith.constant 0 : index
      %c0_12 = arith.constant 0 : index
      %14 = vector.load %arg7[%c0_11, %c0_12] : memref<8x40xf32, #tpu.memory_space<vmem>>, vector<8x40xf32>
      tpu.vector_store %arg7[%c0_11, %c0_12], %13 {strides = array<i32>} : memref<8x40xf32, #tpu.memory_space<vmem>>, vector<8x40xf32>,
    } else {
    }
    %c0 = arith.constant 0 : index
    %c0_1 = arith.constant 0 : index
    %3 = vector.load %arg7[%c0, %c0_1] : memref<8x40xf32, #tpu.memory_space<vmem>>, vector<8x40xf32>
    %c0_2 = arith.constant 0 : index
    %c0_3 = arith.constant 0 : index
    %4 = vector.load %arg2[%c0_2, %c0_3] : memref<8x32xbf16, #tpu.memory_space<vmem>>, vector<8x32xbf16>
    %5 = arith.extf %4 : vector<8x32xbf16> to vector<8x32xf32>
    %c0_4 = arith.constant 0 : index
    %c0_5 = arith.constant 0 : index
    %6 = vector.load %arg3[%c0_4, %c0_5] : memref<32x40xf32, #tpu.memory_space<vmem>>, vector<32x40xf32>
    %cst = arith.constant dense<0.000000e+00> : vector<8x40xf32>
    %7 = tpu.matmul %5, %6, %cst {dimension_numbers = #tpu.dot_dimension_numbers<[1], [0], [0], [1], [0, 0, 1, 1], [], []>} : vector<8x32xf32>, vector<32x40xf32>, vector<8x40xf32> -> vector<8x40xf32>
    %8 = arith.addf %3, %7 : vector<8x40xf32>
    %c0_6 = arith.constant 0 : index
    %c0_7 = arith.constant 0 : index
    %9 = vector.load %arg7[%c0_6, %c0_7] : memref<8x40xf32, #tpu.memory_space<vmem>>, vector<8x40xf32>
    tpu.vector_store %arg7[%c0_6, %c0_7], %8 {strides = array<i32>} : memref<8x40xf32, #tpu.memory_space<vmem>>, vector<8x40xf32>,
    %c0_i32_8 = arith.constant 0 : i32
    %10 = arith.cmpi eq, %arg1, %c0_i32_8 : i32
    %11 = arith.extui %10 : i1 to i32
    %c0_i32_9 = arith.constant 0 : i32
    %12 = arith.cmpi ne, %11, %c0_i32_9 : i32
    scf.if %12 {
      %c0_10 = arith.constant 0 : index
      %c0_11 = arith.constant 0 : index
      %13 = vector.load %arg7[%c0_10, %c0_11] : memref<8x40xf32, #tpu.memory_space<vmem>>, vector<8x40xf32>
      %c0_12 = arith.constant 0 : index
      %c0_13 = arith.constant 0 : index
      %14 = vector.load %arg4[%c0_12, %c0_13] : memref<8x1xf32, #tpu.memory_space<vmem>>, vector<8x1xf32>
      %15 = vector.broadcast %14 : vector<8x1xf32> to vector<8x40xf32>
      %16 = arith.mulf %13, %15 : vector<8x40xf32>
      %c0_14 = arith.constant 0 : index
      %c0_15 = arith.constant 0 : index
      %17 = vector.load %arg5[%c0_14, %c0_15] : memref<8x40xf32, #tpu.memory_space<vmem>>, vector<8x40xf32>
      %18 = arith.addf %16, %17 : vector<8x40xf32>
      %c0_16 = arith.constant 0 : index
      %c0_17 = arith.constant 0 : index
      %19 = vector.load %arg6[%c0_16, %c0_17] : memref<8x40xf32, #tpu.memory_space<vmem>>, vector<8x40xf32>
      tpu.vector_store %arg6[%c0_16, %c0_17], %18 {strides = array<i32>} : memref<8x40xf32, #tpu.memory_space<vmem>>, vector<8x40xf32>,
    } else {
    }
    return
  }
  func.func @transform_0(%arg0: i32, %arg1: i32) -> (i32, i32) {
    %c0_i32 = arith.constant 0 : i32
    return %arg0, %arg1 : i32, i32
  }
  func.func @transform_1(%arg0: i32, %arg1: i32) -> (i32, i32) {
    %c0_i32 = arith.constant 0 : i32
    %c0_i32_0 = arith.constant 0 : i32
    return %arg1, %c0_i32 : i32, i32
  }
  func.func @transform_2(%arg0: i32, %arg1: i32) -> (i32, i32) {
    %c0_i32 = arith.constant 0 : i32
    %c0_i32_0 = arith.constant 0 : i32
    return %arg0, %c0_i32 : i32, i32
  }
  func.func @transform_3(%arg0: i32, %arg1: i32) -> (i32, i32) {
    %c0_i32 = arith.constant 0 : i32
    %c0_i32_0 = arith.constant 0 : i32
    return %arg0, %c0_i32 : i32, i32
  }
  func.func @transform_4(%arg0: i32, %arg1: i32) -> (i32, i32) {
    %c0_i32 = arith.constant 0 : i32
    %c0_i32_0 = arith.constant 0 : i32
    return %arg0, %c0_i32 : i32, i32
  }
}

</mosaic_0001>

<bundles_post_ra>
// kernel: sub.1
= control target key start
LH: loop header
LB: loop body
LE: loop exit
PB: predicated region body
PF: predicated region fallthrough
CT: control target
= control target key end

     0   :  { %s78_s0 = inlined_call_operand.vmem [shape: f32[20,3], index: 0, kind: input, shape index: {}]   ;;  %s79_s1 = inlined_call_operand.vmem [shape: f32[20,3], index: 1, kind: input, shape index: {}]   ;;  %s80_s2 = inlined_call_operand.vmem [shape: f32[20,3], index: 2, kind: output, shape index: {}]  }
   0x1   :  { %v3_v0 = vld [vmem:[%s78_s0] sm:$0xff]  ;;  %v30_v2 = vld [vmem:[%s78_s0 + $0x8] sm:$0xff]  ;;  %v33_v5 = vld [vmem:[%s78_s0 + $0x10] sm:$0xff] }
   0x2   :  { %v4_v1 = vld [vmem:[%s79_s1] sm:$0xff]  ;;  %v31_v4 = vld [vmem:[%s79_s1 + $0x8] sm:$0xff]  ;;  %v34_v6 = vld [vmem:[%s79_s1 + $0x10] sm:$0xff] }
   0x3   :  { %v7_v3 = vsub.f32 %v3_v0, %v4_v1  ;;  %v16_v7 = vsub.f32 %v30_v2, %v31_v4  ;;  %v26_v8 = vsub.f32 %v33_v5, %v34_v6 }
   0x5   :  { %9 = vst [vmem:[%s80_s2] sm:$0xff] %v7_v3  ;;  %32 = vst [vmem:[%s80_s2 + $0x8] sm:$0xff] %v16_v7 }
   0x6   :  { %35 = vst [vmem:[%s80_s2 + $0x10] sm:$0xff] %v26_v8 }

// kernel: custom-call.10
= control target key start
LH: loop header
LB: loop body
LE: loop exit
PB: predicated region body
PF: predicated region fallthrough
CT: control target
= control target key end

     0   :  { %s6_s0 = inlined_call_operand.vmem [shape: f32[32,16], index: 0, kind: output, shape index: {}]  }

// kernel: tensor_product_conv_block_forward.5
= control target key start
LH: loop header
LB: loop body
LE: loop exit
PB: predicated region body
PF: predicated region fallthrough
CT: control target
= control target key end

     0   :  { %10 = vsyncpa [#allocation3], 0  ;;  %s493_s0 = inlined_call_operand.hbm [shape: f32[8,32], index: 0, kind: input, shape index: {}]   ;;  %s494_s1 = inlined_call_operand.vmem [shape: f32[32,16], index: 1, kind: input, shape index: {}]   ;;  %s495_s2 = inlined_call_operand.hbm [shape: f32[1,16], index: 2, kind: input, shape index: {}]   ;;  %s496_s3 = inlined_call_operand.hbm [shape: f32[16,16], index: 3, kind: input, shape index: {}]   ;;  %s497_s4 = inlined_call_operand.hbm [shape: f32[1,16], index: 4, kind: input, shape index: {}]   ;;  %s498_s5 = inlined_call_operand.vmem [shape: f32[8,16], index: 5, kind: output, shape index: {}]  }
   0x1   :  { %11 = vsyncpa [#allocation5], 0 }
   0x2   :  { %12 = vsyncpa [#allocation8], 0  ;;  %s391_s18 = smov [#allocation4]   ;;  %s392_s20 = smov [#allocation2]  }
   0x3   :  { %s31_s19 = sshll.u32 %s391_s18, 4  ;;  %s19_s21 = sshll.u32 %s392_s20, 4  ;;  %s32_s19 = int_to_ptr.vmem [resolvable:$true] %s31_s19  ;;  %s20_s21 = int_to_ptr.vmem [resolvable:$true] %s19_s21 }
   0x4   :  { %s297_s24 = scalar_lea.hbm %s495_s2, 16 }
   0x5   :  { %p298_p0 = scmp.ne.s32.totalorder %s495_s2, %s297_s24  ;;  %p301_p1 = scmp.lt.u32.totalorder %s297_s24, %s495_s2 }
   0x7   :  { %p303_p2 = pnand %p301_p1, %p298_p0 }
   0x9   :  { %306 = shalt.err (!%p303_p2)
}
   0xa   :  { %s307_s29 = scalar_lea.vmem %s32_s19, 16  ;;  %s311_s30 = scalar_lea.vmem %s32_s19, 32 }
   0xb   :  { %p308_p3 = scmp.ne.s32.totalorder %s32_s19, %s307_s29  ;;  %p312_p4 = scmp.lt.s32.totalorder %s32_s19, %s32_s19 }
   0xc   :  { %p313_p5 = scmp.lt.s32.totalorder %s311_s30, %s307_s29 }
   0xe   :  { %p314_p6 = por %p313_p5, %p312_p4 }
  0x10   :  { %p315_p7 = pnand %p314_p6, %p308_p3 }
  0x12   :  { %318 = shalt.err (!%p315_p7)
}
  0x13   :  { %34 = dma.hbm_to_vmem [thread:$0]  %s495_s2, 16, %s32_s19, [#allocation5]  }
  0x14   :  { %s319_s10 = scalar_lea.hbm %s493_s0, 128 }
  0x15   :  { %p320_p8 = scmp.ne.s32.totalorder %s493_s0, %s319_s10  ;;  %p323_p9 = scmp.lt.u32.totalorder %s319_s10, %s493_s0 }
  0x17   :  { %p325_p10 = pnand %p323_p9, %p320_p8 }
  0x19   :  { %328 = shalt.err (!%p325_p10)
}
  0x1a   :  { %s329_s15 = scalar_lea.vmem %s20_s21, 128  ;;  %p334_p12 = scmp.lt.s32.totalorder %s20_s21, %s20_s21 }
  0x1b   :  { %p330_p11 = scmp.ne.s32.totalorder %s20_s21, %s329_s15  ;;  %p335_p13 = scmp.lt.s32.totalorder %s329_s15, %s329_s15 }
  0x1d   :  { %p336_p0 = por %p335_p13, %p334_p12 }
  0x1f   :  { %p337_p1 = pnand %p336_p0, %p330_p11 }
  0x21   :  { %340 = shalt.err (!%p337_p1)
}
  0x22   :  { %22 = dma.hbm_to_vmem [thread:$0]  %s493_s0, 128, %s20_s21, [#allocation3]  }
  0x23   :  { %s393_s17 = smov [#allocation6]   ;;  %s341_s22 = scalar_lea.hbm %s496_s3, 256 }
  0x24   :  { %s40_s18 = sshll.u32 %s393_s17, 4  ;;  %p342_p2 = scmp.ne.s32.totalorder %s496_s3, %s341_s22  ;;  %s41_s18 = int_to_ptr.vmem [resolvable:$true] %s40_s18 }
  0x25   :  { %p345_p3 = scmp.lt.u32.totalorder %s341_s22, %s496_s3 }
  0x27   :  { %p347_p4 = pnand %p345_p3, %p342_p2 }
  0x29   :  { %350 = shalt.err (!%p347_p4)
}
  0x2a   :  { %s351_s27 = scalar_lea.vmem %s41_s18, 256  ;;  %p356_p6 = scmp.lt.s32.totalorder %s41_s18, %s41_s18 }
  0x2b   :  { %p352_p5 = scmp.ne.s32.totalorder %s41_s18, %s351_s27  ;;  %p357_p7 = scmp.lt.s32.totalorder %s351_s27, %s351_s27 }
  0x2d   :  { %p358_p8 = por %p357_p7, %p356_p6 }
  0x2f   :  { %p359_p9 = pnand %p358_p8, %p352_p5 }
  0x31   :  { %362 = shalt.err (!%p359_p9)
}
  0x32   :  { %s394_s0 = smov 128   ;;  %s395_s21 = smov 8  }
  0x33   :  { %46 = dma.hbm_to_vmem [thread:$0]  %s496_s3, 256, %s41_s18, [#allocation5], %s394_s0, %s394_s0, %s395_s21  }
  0x34   :  { %s396_s30 = smov [#allocation7]   ;;  %s363_s9 = scalar_lea.hbm %s497_s4, 16 }
  0x35   :  { %s53_s6 = sshll.u32 %s396_s30, 4  ;;  %p364_p10 = scmp.ne.s32.totalorder %s497_s4, %s363_s9  ;;  %s54_s6 = int_to_ptr.vmem [resolvable:$true] %s53_s6 }
  0x36   :  { %p367_p11 = scmp.lt.u32.totalorder %s363_s9, %s497_s4 }
  0x38   :  { %p369_p12 = pnand %p367_p11, %p364_p10 }
  0x3a   :  { %372 = shalt.err (!%p369_p12)
}
  0x3b   :  { %s373_s14 = scalar_lea.vmem %s54_s6, 16  ;;  %s377_s3 = scalar_lea.vmem %s54_s6, 32 }
  0x3c   :  { %p374_p13 = scmp.ne.s32.totalorder %s54_s6, %s373_s14  ;;  %p378_p0 = scmp.lt.s32.totalorder %s54_s6, %s54_s6 }
  0x3d   :  { %p379_p1 = scmp.lt.s32.totalorder %s377_s3, %s373_s14 }
  0x3f   :  { %p380_p2 = por %p379_p1, %p378_p0 }
  0x41   :  { %p381_p3 = pnand %p380_p2, %p374_p13 }
  0x43   :  { %384 = shalt.err (!%p381_p3)
}
  0x44   :  { %56 = dma.hbm_to_vmem [thread:$0]  %s497_s4, 16, %s54_s6, [#allocation8]  }
  0x45   :  { %385 = dma.done.wait [#allocation3], 128  }
  0x46   :  { %386 = vsyncadd [#allocation3], 4294967168 }
  0x47   :  { %387 = dma.done.wait [#allocation5], 272  }
  0x48   :  { %388 = vsyncadd [#allocation5], 4294967024 }
  0x49   :  { %389 = dma.done.wait [#allocation8], 16  }
  0x4a   :  { %390 = vsyncadd [#allocation8], 4294967280  ;;  %v397_v0 = vmov 0.0|0.0   ;;  %vm398_vm0 = vmmov 0   ;;  %v399_v1 = vmov 0.0   ;;  %v70_v2 = vld [vmem:[%s494_s1] sm:$0xff] }
  0x4b   :  { %277 = vmatprep.subr.bf16.mxu0 %v397_v0  ;;  %267 = vmatprep.mubr.msk.f32.mxu0 %vm398_vm0, %v399_v1  ;;  %v71_v3 = vld [vmem:[%s494_s1 + $0x8] sm:$0xff]  ;;  %v72_v4 = vld [vmem:[%s494_s1 + $0x10] sm:$0xff]  ;;  %v73_v6 = vld [vmem:[%s494_s1 + $0x18] sm:$0xff]  ;;  %vm81_vm1 = vcmask 261120   ;;  %vm165_vm2 = vcmask 130048  }
  0x4c   :  { %283 = vmatprep.subr.bf16.mxu1 %v397_v0  ;;  %274 = vmatprep.mubr.msk.f32.mxu1 %vm398_vm0, %v399_v1  ;;  %v278_v5 = vpack.c.bf16 %v71_v3, %v70_v2  ;;  %v281_v7 = vpack.c.bf16 %v73_v6, %v72_v4  ;;  %v69_v8 = vld [vmem:[#allocation2] sm:$0xff]  ;;  %v156_v9 = vld [vmem:[#allocation6] sm:$0xff]  ;;  %v157_v10 = vld [vmem:[#allocation6 + $0x8] sm:$0xff] }
  0x4d   :  { %v284_v11 = vpack.c.bf16 %v157_v10, %v156_v9  ;;  %v247_v12 = vld [vmem:[#allocation4] ss:$0 sm:$0xff]  ;;  %v249_v17 = vld [vmem:[#allocation7] ss:$0 sm:$0xff] }
  0x4e   :  { %279 = vmatpush3.bf16.msra.mxu0 %v278_v5 }
  0x4f   :  { %280 = vmatprep.subr.bf16.mxu0 %v397_v0  ;;  %285 = vmatpush3.bf16.msra.mxu1 %v284_v11 }
  0x52   :  { %282 = vmatpush3.bf16.msra.mxu0 %v281_v7 }
  0x55   :  { %268 = vmatmul.mubr.msk.f32.vlgmr.msra.gmra.mrb[0].mxu0 %vm81_vm1, %v69_v8 }
 0x128   :  { %v151_v13 = vpop.f32.mrb[0].mxu0 }
 0x129   :  { %v152_v14 = vadd.f32 %v247_v12, %v151_v13  ;;  %v269_v15 = vpop.f32.mrb[1].mxu0 }
 0x12b   :  { %295 = vtanh.f32 %v152_v14 }
 0x135   :  { %v296_v16 = vpop.eup %295 }
 0x136   :  { %275 = vmatmul.mubr.msk.f32.vlgmr.msra.gmra.mrb[0].mxu1 %vm165_vm2, %v296_v16 }
 0x209   :  { %v235_v18 = vpop.f32.mrb[0].mxu1 }
 0x20a   :  { %v236_v19 = vadd.f32 %v249_v17, %v235_v18  ;;  %v276_v20 = vpop.f32.mrb[1].mxu1 }
 0x20c   :  { %239 = vst.msk [vmem:[%s498_s5] sm:$0xff] %vm165_vm2, %v236_v19 }
 0x20d   :  { %244 = vsyncpa [#allocation3], 1 }
 0x20e   :  { %245 = vsyncpa [#allocation5], 1 }
 0x20f   :  { %246 = vsyncpa [#allocation8], 1 }

// kernel: tensor_product_conv_block_forward.7
= control target key start
LH: loop header
LB: loop body
LE: loop exit
PB: predicated region body
PF: predicated region fallthrough
CT: control target
= control target key end

     0   :  { %vm21_vm0 = vcmask 261120   ;;  %v152_v0 = vmov 0.0|0.0   ;;  %v153_v4 = vmov 0.0   ;;  %vm154_vm1 = vmmov 0   ;;  %s209_s1 = inlined_call_operand.vmem [shape: f32[32,32], index: 1, kind: input, shape index: {}]   ;;  %s210_s2 = inlined_call_operand.vmem [shape: f32[8,1], index: 2, kind: input, shape index: {}]   ;;  %s211_s0 = inlined_call_operand.vmem [shape: bf16[8,32], index: 0, kind: input, shape index: {}]   ;;  %s212_s3 = inlined_call_operand.vmem [shape: f32[8,32], index: 3, kind: input, shape index: {}]   ;;  %s213_s4 = inlined_call_operand.vmem [shape: f32[8,32], index: 4, kind: output, shape index: {}]  }
   0x1   :  { %141 = vmatprep.subr.bf16.mxu0 %v152_v0  ;;  %v26_v1 = vld [vmem:[%s209_s1] sm:$0xff]  ;;  %v27_v2 = vld [vmem:[%s209_s1 + $0x8] sm:$0xff]  ;;  %v28_v3 = vld [vmem:[%s209_s1 + $0x10] sm:$0xff]  ;;  %22 = vst.msk [vmem:[#allocation2] sm:$0xff] %vm21_vm0, %v153_v4  ;;  %138 = vmatprep.mubr.msk.f32.mxu0 %vm154_vm1, %v153_v4  ;;  %v155_v7 = vmov 0  }
   0x2   :  { %v142_v5 = vpack.c.bf16 %v27_v2, %v26_v1  ;;  %v29_v6 = vld [vmem:[%s209_s1 + $0x18] sm:$0xff]  ;;  %151 = vset.pattern.permute.xlu0 %v155_v7  ;;  %v110_v8 = vld [vmem:[%s210_s2] sm:$0xff] }
   0x3   :  { %113 = vperm.xlu0 %151, %v110_v8   ;;  %v145_v9 = vpack.c.bf16 %v29_v6, %v28_v3  ;;  %v24_v10 = vld [vmem:[%s211_s0] sm:$0xf] }
   0x4   :  { %143 = vmatpush3.bf16.msra.mxu0 %v142_v5  ;;  %v25_v11 = vunpack.c.l.bf16 %v24_v10  ;;  %v117_v17 = vld [vmem:[%s212_s3] sm:$0xff] }
   0x5   :  { %144 = vmatprep.subr.bf16.mxu0 %v152_v0 }
   0x8   :  { %146 = vmatpush3.bf16.msra.mxu0 %v145_v9  ;;  %v23_v12 = vld [vmem:[#allocation2] sm:$0xff] }
   0xb   :  { %139 = vmatmul.mubr.msk.f32.vlgmr.msra.gmra.mrb[0].mxu0 %vm21_vm0, %v25_v11 }
  0x82   :  { %v114_v16 = vpop.permute.xlu0 %113 }
  0xde   :  { %v100_v13 = vpop.f32.mrb[0].mxu0 }
  0xdf   :  { %v104_v14 = vadd.f32 %v100_v13, %v23_v12  ;;  %v140_v15 = vpop.f32.mrb[1].mxu0 }
  0xe1   :  { %105 = vst.msk [vmem:[#allocation2] sm:$0xff] %vm21_vm0, %v104_v14 }
  0xe8   :  { %v109_v18 = vld [vmem:[#allocation2] sm:$0xff] }
  0xe9   :  { %v116_v19 = vmul.f32 %v114_v16, %v109_v18 }
  0xeb   :  { %v118_v20 = vadd.f32 %v117_v17, %v116_v19 }
  0xed   :  { %119 = vst.msk [vmem:[%s213_s4] sm:$0xff] %vm21_vm0, %v118_v20 }

// kernel: tensor_product_conv_block_forward.6
= control target key start
LH: loop header
LB: loop body
LE: loop exit
PB: predicated region body
PF: predicated region fallthrough
CT: control target
= control target key end

     0   :  { %s2661_s27 = smov 0   ;;  %s3336_s0 = inlined_call_operand.vmem [shape: f32[32,3], index: 0, kind: input, shape index: {}]   ;;  %s3337_s1 = inlined_call_operand.vmem [shape: f32[32,16], index: 1, kind: input, shape index: {}]   ;;  %s3338_s2 = inlined_call_operand.vmem [shape: f32[32,16], index: 2, kind: input, shape index: {}]   ;;  %s3339_s3 = inlined_call_operand.vmem [shape: f32[1,8], index: 3, kind: input, shape index: {}]   ;;  %s3340_s4 = inlined_call_operand.vmem [shape: f32[8,16], index: 4, kind: input, shape index: {}]   ;;  %s3341_s5 = inlined_call_operand.vmem [shape: f32[1,16], index: 5, kind: input, shape index: {}]   ;;  %s3342_s6 = inlined_call_operand.vmem [shape: f32[16,16], index: 6, kind: input, shape index: {}]   ;;  %s3343_s7 = inlined_call_operand.vmem [shape: f32[1,16], index: 7, kind: input, shape index: {}]   ;;  %s3344_s8 = inlined_call_operand.vmem [shape: f32[16,48], index: 8, kind: input, shape index: {}]   ;;  %s3345_s9 = inlined_call_operand.vmem [shape: f32[16,48], index: 9, kind: input, shape index: {}]   ;;  %s3346_s10 = inlined_call_operand.vmem [shape: f32[16,48], index: 10, kind: input, shape index: {}]   ;;  %s3347_s11 = inlined_call_operand.vmem [shape: f32[1,48], index: 11, kind: input, shape index: {}]   ;;  %s3348_s12 = inlined_call_operand.vmem [shape: f32[48,512], index: 12, kind: input, shape index: {}]   ;;  %s3349_s13 = inlined_call_operand.vmem [shape: f32[1,512], index: 13, kind: input, shape index: {}]   ;;  %s3350_s14 = inlined_call_operand.vmem [shape: f32[16,144], index: 14, kind: input, shape index: {}]   ;;  %s3351_s15 = inlined_call_operand.vmem [shape: f32[16,144], index: 15, kind: input, shape index: {}]   ;;  %s3352_s16 = inlined_call_operand.vmem [shape: f32[144,512], index: 16, kind: input, shape index: {}]   ;;  %s3353_s17 = inlined_call_operand.vmem [shape: f32[512,32], index: 17, kind: input, shape index: {}]   ;;  %s3354_s18 = inlined_call_operand.vmem [shape: f32[32,32], index: 18, kind: output, shape index: {}]  }
   0x1   :  { %3355 = sst [smem:[#allocation2_spill]] %s3336_s0 }
   0x2   :  { %3356 = sst [smem:[#allocation3_spill]] %s3337_s1 }
   0x3   :  { %3357 = sst [smem:[#allocation4_spill]] %s3338_s2 }
   0x4 LB: > { %s2165_s28 = sadd.s32 4294967295, %s2556_s27   ;;  %p2169_p0 = scmp.ge.s32.totalorder %s2556_s27, 1  ;;  %s2556_s27 = sphi %s2661_s27, %s28_s27  }
   0x5   : > { %p535_p1 = scmp.lt.s32.totalorder %s2556_s27, 3 }
   0x7   : > { %p536_p2 = pnand %p2169_p0, %p535_p1 }
   0x8   : > { %s2170_s29 = sshll.u32 (!%p536_p2), %s2165_s28, 1  ;;  %s3358_s1 = sld [smem:[#allocation2_spill]] (!%p536_p2)  ;;  %vm627_vm0 = vcmask (!%p536_p2), 23552   ;;  %v667_v6 = vld [vmem:[%s3340_s4] sm:$0xff] (!%p536_p2)  ;;  %vm675_vm5 = vcmask (!%p536_p2), 64512   ;;  %v760_v39 = vld [vmem:[%s3342_s6 + $0x8] sm:$0xff] (!%p536_p2) }
   0x9   : > { %539 = sbr.rel (%p536_p2) target bundleno = 1534 (0x5fe), region = 92  ;;  %p600_p3 = scmp.lt.s32.totalorder (!%p536_p2), %s2170_s29, 3  ;;  %2301 = vmatprep.subr.mxu0 (!%p536_p2), %v667_v6  ;;  %v2178_v14 = vld [vmem:[%s3339_s3] ss:$0 sm:$0xff] (!%p536_p2)  ;;  %vm768_vm6 = vcmask (!%p536_p2), 130048   ;;  %vm958_vm7 = vcmask (!%p536_p2), 7168  }
   0xa   : > { %2302 = vmatpush3.msra.mxu0 (!%p536_p2), %v667_v6  ;;  %s2558_s24 = smov (!%p536_p2), 126   ;;  %s2559_s25 = smov (!%p536_p2), 2   ;;  %v759_v38 = vld [vmem:[%s3342_s6] sm:$0xff] (!%p536_p2)  ;;  %vm961_vm8 = vcmask (!%p536_p2), 15360   ;;  %vm966_vm9 = vcmask (!%p536_p2), 31744   ;;  %vm969_vm10 = vcmask (!%p536_p2), 39936  }
   0xb   : > { %s2560_s26 = smov (!%p536_p2), 127   ;;  %v2334_v40 = vpack.c.bf16 (!%p536_p2), %v760_v39, %v759_v38  ;;  %s2563_s21 = smov (!%p536_p2), 5   ;;  %v2179_v60 = vld [vmem:[%s3341_s5] ss:$0 sm:$0xff] (!%p536_p2)  ;;  %v1252_v39 = vld [vmem:[%s3348_s12 + $0x18] sm:$0xff] (!%p536_p2)  ;;  %vm972_vm11 = vcmask (!%p536_p2), 48128  }
   0xc   : > { %s2564_s22 = smov (!%p536_p2), 6   ;;  %v989_v6 = vld [vmem:[%s3345_s9] sm:$0xff] (!%p536_p2)  ;;  %s3359_s19 = sld [smem:[#allocation3_spill]] (!%p536_p2)  ;;  %vm975_vm12 = vcmask (!%p536_p2), 56320   ;;  %vm1295_vm13 = vcmask (!%p536_p2), 392192   ;;  %vm980_vm14 = vcmask (!%p536_p2), 72704  }
   0xd   : > { %2335 = vmatprep.subr.bf16.mxu0 (!%p536_p2), %v2334_v40  ;;  %s3360_s23 = sld [smem:[#allocation4_spill]] (!%p536_p2)  ;;  %vm2082_vm15 = vcmask (!%p536_p2), 261120  }
  0x10   : > { %s3362_s29 = smov (!%p600_p3, %s2170_s29), 3 }
  0x11   : > { %s2669_s30 = sshll.u32 %s3362_s29, 3 }
  0x12   : > { %s603_s20 = scalar_lea.vmem %s3358_s1, %s2669_s30  ;;  %s2561_s1 = smov 4  }
  0x13   : > { %v623_v0 = vld [vmem:[%s603_s20] sm:$0xff]  ;;  %v624_v1 = vld [vmem:[%s603_s20 + $0x8] sm:$0xff]  ;;  %s2562_s20 = smov 1   ;;  %s621_s28 = scalar_lea.vmem %s3354_s18, %s2669_s30 }
  0x14   : > { %v625_v2 = vmul.f32 %v623_v0, %v623_v0  ;;  %v626_v3 = vmul.f32 %v624_v1, %v624_v1 }
  0x16   : > { %v628_v4 = vsel %vm627_vm0, %v625_v2, 0.0  ;;  %v631_v5 = vsel %vm627_vm0, %v626_v3, 0.0 }
  0x17   : > { %629 = vadd.xlane.f32.xlu0 %v628_v4 }
  0x1b   : > { %632 = vadd.xlane.f32.xlu0 %v631_v5 }
  0xa4   : > { %v630_v7 = vpop.xlane.xlu0 %629 }
  0xa5   : > { %v634_v8 = vmax.f32 %v630_v7, 1e-12  ;;  %v990_v7 = vld [vmem:[%s3345_s9 + $0x8] sm:$0xff] }
  0xa7   : > { %2538 = vrsqrt.f32 %v634_v8  ;;  %vm638_vm1 = vcmp.eq.f32.partialorder %v634_v8, inf  ;;  %v641_v13 = vand.u32 2147483648, %v634_v8  ;;  %vm640_vm2 = vcmp.eq.f32.partialorder %v634_v8, 0.0 }
  0xa8   : > { %v633_v9 = vpop.xlane.xlu0 %632 }
  0xa9   : > { %v635_v10 = vmax.f32 %v633_v9, 1e-12 }
  0xab   : > { %2540 = vrsqrt.f32 %v635_v10  ;;  %vm645_vm3 = vcmp.eq.f32.partialorder %v635_v10, inf  ;;  %v648_v20 = vand.u32 2147483648, %v635_v10  ;;  %vm647_vm4 = vcmp.eq.f32.partialorder %v635_v10, 0.0 }
  0xb1   : > { %v2539_v11 = vpop.eup %2538 }
  0xb2   : > { %v637_v12 = vmul.f32 %v2539_v11, %v634_v8  ;;  %v2338_v11 = vpack.c.bf16 %v990_v7, %v989_v6  ;;  %v2565_v6 = vmov 0.0  }
  0xb3   : > { %1366 = vmatprep.mubr.f32.mxu1 %v2565_v6 }
  0xb4   : > { %v639_v15 = vsel %vm638_vm1, %v634_v8, %v637_v12  ;;  %v987_v8 = vld [vmem:[%s3344_s8] sm:$0xff] }
  0xb5   : > { %v2541_v16 = vpop.eup %2540  ;;  %v642_v17 = vsel %vm640_vm2, %v641_v13, %v639_v15  ;;  %v988_v13 = vld [vmem:[%s3344_s8 + $0x8] sm:$0xff] }
  0xb6   : > { %2542 = vrcp.f32 %v642_v17  ;;  %v644_v18 = vmul.f32 %v2541_v16, %v635_v10  ;;  %v657_v19 = vsub.f32 %v642_v17, %v2178_v14  ;;  %v2342_v15 = vpack.c.bf16 %v988_v13, %v987_v8  ;;  %v1629_v8 = vld [vmem:[%s3352_s16 + $0x8] sm:$0xff] }
  0xb8   : > { %v646_v21 = vsel %vm645_vm3, %v635_v10, %v644_v18  ;;  %v659_v22 = vmul.f32 -0.6805555, %v657_v19 }
  0xb9   : > { %v649_v23 = vsel %vm647_vm4, %v648_v20, %v646_v21 }
  0xba   : > { %v658_v24 = vsub.f32 %v649_v23, %v2178_v14  ;;  %v661_v25 = vmul.f32 %v659_v22, %v657_v19  ;;  %2544 = vrcp.f32 %v649_v23  ;;  %v1153_v22 = vld [vmem:[%s3346_s10] sm:$0xff]  ;;  %v1154_v23 = vld [vmem:[%s3346_s10 + $0x8] sm:$0xff] }
  0xbc   : > { %v660_v26 = vmul.f32 -0.6805555, %v658_v24  ;;  %v663_v27 = vmul.f32 1.442695, %v661_v25  ;;  %v1250_v25 = vld [vmem:[%s3348_s12 + $0x8] sm:$0xff] }
  0xbe   : > { %v662_v28 = vmul.f32 %v660_v26, %v658_v24  ;;  %2546 = vpow2.f32 %v663_v27  ;;  %v2346_v24 = vpack.c.bf16 %v1154_v23, %v1153_v22  ;;  %v1254_v26 = vld [vmem:[%s3348_s12 + $0x28] sm:$0xff]  ;;  %v1249_v27 = vld [vmem:[%s3348_s12] sm:$0xff] }
  0xbf   : > { %v2191_v22 = vld [vmem:[%s3347_s11] ss:$0 sm:$0xff] }
  0xc0   : > { %v2543_v29 = vpop.eup %2542  ;;  %v665_v30 = vmul.f32 1.442695, %v662_v28  ;;  %v2350_v28 = vpack.c.bf16 %v1254_v26, %v1250_v25  ;;  %v1456_v26 = vld [vmem:[%s3350_s14] sm:$0xff] }
  0xc1   : > { %v851_v31 = vmul.f32 %v2543_v29, %v623_v0  ;;  %v1253_v29 = vld [vmem:[%s3348_s12 + $0x20] sm:$0xff] }
  0xc2   : > { %2548 = vpow2.f32 %v665_v30  ;;  %v2352_v30 = vpack.c.bf16 %v1253_v29, %v1249_v27  ;;  %2351 = vmatprep.subr.bf16.mxu1 %v2350_v28  ;;  %v1458_v27 = vld [vmem:[%s3350_s14 + $0x10] sm:$0xff]  ;;  %v1544_v29 = vld [vmem:[%s3351_s15 + $0x8] sm:$0xff] }
  0xc3   : > { %862 = vrot.lane.b32.xlu0 %v851_v31, %s2558_s24  ;;  %v2683_v32 = vmul.f32 %v851_v31, %v851_v31  ;;  %v858_v41 = vmul.f32 3.8729835, %v851_v31  ;;  %v856_v53 = vmul.f32 1.7320508, %v851_v31 }
  0xc4   : > { %v2545_v33 = vpop.eup %2544  ;;  %2353 = vmatpush1.bf16.msra.mxu1 %v2352_v30  ;;  %v1546_v30 = vld [vmem:[%s3351_s15 + $0x18] sm:$0xff] }
  0xc5   : > { %880 = vrot.lane.b32.xlu1 %v2683_v32, %s2558_s24  ;;  %v853_v34 = vmul.f32 %v2545_v33, %v624_v1  ;;  %v1257_v33 = vld [vmem:[%s3348_s12 + $0x40] sm:$0xff] }
  0xc7   : > { %v2686_v35 = vmul.f32 %v853_v34, %v853_v34  ;;  %v857_v57 = vmul.f32 1.7320508, %v853_v34  ;;  %v859_v58 = vmul.f32 3.8729835, %v853_v34 }
  0xc8   : > { %v2547_v36 = vpop.eup %2546 }
  0xc9   : > { %2303 = vmatprep.mubr.msk.f32.mxu0 %vm675_vm5, %v2547_v36  ;;  %904 = vrot.lane.b32.xlu0 %v2686_v35, %s2559_s25 }
  0xca   : > { %882 = vrot.lane.b32.xlu1 %v2686_v35, %s2558_s24 }
  0xcc   : > { %v2549_v37 = vpop.eup %2548 }
  0xcd   : > { %2304 = vmatmul.mubr.msk.f32.vlgmr.msra.gmra.mrb[0].mxu0 %vm675_vm5, %v2549_v37  ;;  %v2182_v37 = vld [vmem:[%s3343_s7] ss:$0 sm:$0xff] }
  0xce   : > { %870 = vrot.lane.b32.xlu1 %v851_v31, %s2560_s26  ;;  %2337 = vmatpush3.bf16.msra.mxu0 %v2334_v40  ;;  %v1258_v31 = vld [vmem:[%s3348_s12 + $0x48] sm:$0xff]  ;;  %v1256_v40 = vld [vmem:[%s3348_s12 + $0x38] sm:$0xff] }
  0xcf   : > { %2339 = vmatprep.subr.bf16.mxu0 %v2338_v11 }
  0xd2   : > { %864 = vrot.lane.b32.xlu1 %v853_v34, %s2558_s24  ;;  %s615_s24 = scalar_lea.vmem %s3360_s23, %s2669_s30 }
  0xd6   : > { %902 = vrot.lane.b32.xlu1 %v2683_v32, %s2559_s25 }
 0x135   : > { %v863_v42 = vpop.permute.xlu0 %862 }
 0x136   : > { %v868_v43 = vmul.f32 %v863_v42, %v858_v41 }
 0x137   : > { %v881_v44 = vpop.permute.xlu1 %880 }
 0x138   : > { %v886_v45 = vadd.f32 %v881_v44, %v2683_v32  ;;  %922 = vrot.lane.b32.xlu0 %v868_v43, %s2561_s1  ;;  %v2779_v44 = vld [vmem:[%s615_s24] sm:$0xff] }
 0x13a   : > { %v888_v46 = vmul.f32 0.5, %v886_v45  ;;  %v2362_v45 = vpack.c.bf16 %v1256_v40, %v1252_v39 }
 0x13b   : > { %v905_v9 = vpop.permute.xlu0 %904 }
 0x13c   : > { %v883_v47 = vpop.permute.xlu1 %882  ;;  %892 = vrot.lane.b32.xlu1 %v888_v46, %s2562_s20  ;;  %v909_v16 = vsub.f32 %v2686_v35, %v905_v9  ;;  %v1251_v46 = vld [vmem:[%s3348_s12 + $0x10] sm:$0xff]  ;;  %v1633_v9 = vld [vmem:[%s3352_s16 + $0x28] sm:$0xff] }
 0x13d   : > { %v887_v48 = vadd.f32 %v883_v47, %v2686_v35  ;;  %v1255_v47 = vld [vmem:[%s3348_s12 + $0x30] sm:$0xff] }
 0x13e   : > { %v911_v21 = vmul.f32 1.9364917, %v909_v16 }
 0x13f   : > { %v889_v49 = vmul.f32 0.5, %v887_v48  ;;  %v1260_v48 = vld [vmem:[%s3348_s12 + $0x58] sm:$0xff] }
 0x140   : > { %v871_v50 = vpop.permute.xlu1 %870 }
 0x141   : > { %v876_v51 = vmul.f32 %v871_v50, %v858_v41  ;;  %894 = vrot.lane.b32.xlu1 %v889_v49, %s2562_s20  ;;  %v1264_v49 = vld [vmem:[%s3348_s12 + $0x78] sm:$0xff]  ;;  %v2797_v50 = vld [vmem:[%s615_s24 + $0x8] sm:$0xff] }
 0x143   : > { %930 = vrot.lane.b32.xlu0 %v876_v51, %s2563_s21 }
 0x144   : > { %v865_v52 = vpop.permute.xlu1 %864 }
 0x145   : > { %872 = vrot.lane.b32.xlu1 %v853_v34, %s2560_s26  ;;  %v869_v59 = vmul.f32 %v865_v52, %v859_v58  ;;  %v1261_v34 = vld [vmem:[%s3348_s12 + $0x60] sm:$0xff]  ;;  %v2366_v52 = vpack.c.bf16 %v1264_v49, %v1260_v48 }
 0x146   : > { %v2356_v36 = vpack.c.bf16 %v1261_v34, %v1257_v33  ;;  %v1628_v33 = vld [vmem:[%s3352_s16] sm:$0xff] }
 0x147   : > { %944 = vrot.lane.b32.xlu0 %v876_v51, %s2564_s22  ;;  %v2364_v51 = vpack.c.bf16 %v1255_v47, %v1251_v46  ;;  %v1632_v34 = vld [vmem:[%s3352_s16 + $0x20] sm:$0xff] }
 0x148   : > { %v903_v54 = vpop.permute.xlu1 %902  ;;  %v2384_v46 = vpack.c.bf16 %v1632_v34, %v1628_v33  ;;  %v1636_v48 = vld [vmem:[%s3352_s16 + $0x40] sm:$0xff]  ;;  %v1650_v33 = vld [vmem:[%s3352_s16 + $0xb0] sm:$0xff]  ;;  %v1655_v34 = vld [vmem:[%s3352_s16 + $0xd8] sm:$0xff] }
 0x149   : > { %v908_v55 = vsub.f32 %v2683_v32, %v903_v54  ;;  %914 = vrot.lane.b32.xlu1 %v856_v53, %s2562_s20  ;;  %v1259_v53 = vld [vmem:[%s3348_s12 + $0x50] sm:$0xff]  ;;  %v1640_v49 = vld [vmem:[%s3352_s16 + $0x60] sm:$0xff] }
 0x14a   : > { %v1263_v54 = vld [vmem:[%s3348_s12 + $0x70] sm:$0xff] }
 0x14b   : > { %v910_v56 = vmul.f32 1.9364917, %v908_v55  ;;  %v2368_v55 = vpack.c.bf16 %v1263_v54, %v1259_v53 }
 0x14d   : > { %916 = vrot.lane.b32.xlu1 %v857_v57, %s2562_s20  ;;  %952 = vrot.lane.b32.xlu0 %v910_v56, %s2564_s22  ;;  %v1266_v56 = vld [vmem:[%s3348_s12 + $0x88] sm:$0xff] }
 0x14e   : > { %v1270_v57 = vld [vmem:[%s3348_s12 + $0xa8] sm:$0xff] }
 0x151   : > { %924 = vrot.lane.b32.xlu1 %v869_v59, %s2561_s1  ;;  %s609_s1 = scalar_lea.vmem %s3359_s19, %s2669_s30  ;;  %v1265_v59 = vld [vmem:[%s3348_s12 + $0x80] sm:$0xff] }
 0x152   : > { %v983_v12 = vld [vmem:[%s609_s1] sm:$0xff]  ;;  %v984_v18 = vld [vmem:[%s609_s1 + $0x8] sm:$0xff] }
 0x1a0   : > { %v2305_v61 = vpop.f32.mrb[0].mxu0 }
 0x1a1   : > { %v754_v62 = vadd.f32 %v2305_v61, %v2179_v60  ;;  %v748_v63 = vpop.f32.mrb[1].mxu0  ;;  %v1268_v61 = vld [vmem:[%s3348_s12 + $0x98] sm:$0xff] }
 0x1a2   : > { %v749_v0 = vadd.f32 %v2179_v60, %v748_v63  ;;  %v1269_v60 = vld [vmem:[%s3348_s12 + $0xa0] sm:$0xff]  ;;  %v1272_v63 = vld [vmem:[%s3348_s12 + $0xb8] sm:$0xff] }
 0x1a3   : > { %v758_v2 = vmax.f32 %v754_v62, 0.0  ;;  %v2360_v62 = vpack.c.bf16 %v1269_v60, %v1265_v59  ;;  %v1543_v59 = vld [vmem:[%s3351_s15] sm:$0xff]  ;;  %v1545_v60 = vld [vmem:[%s3351_s15 + $0x10] sm:$0xff] }
 0x1a4   : > { %v757_v1 = vmax.f32 %v749_v0, 0.0  ;;  %v1267_v0 = vld [vmem:[%s3348_s12 + $0x90] sm:$0xff] }
 0x1a6   : > { %2310 = vmatprep.mubr.msk.f32.mxu0 %vm768_vm6, %v757_v1  ;;  %v1271_v1 = vld [vmem:[%s3348_s12 + $0xb0] sm:$0xff] }
 0x1a7   : > { %2311 = vmatmul.mubr.msk.f32.vlgmr.msra.gmra.mrb[2].mxu0 %vm768_vm6, %v758_v2  ;;  %v2370_v2 = vpack.c.bf16 %v1272_v63, %v1268_v61  ;;  %v1631_v61 = vld [vmem:[%s3352_s16 + $0x18] sm:$0xff]  ;;  %v2388_v63 = vpack.c.bf16 %v1640_v49, %v1636_v48  ;;  %v1662_v48 = vld [vmem:[%s3352_s16 + $0x110] sm:$0xff] }
 0x1a8   : > { %2317 = vmatprep.mubr.msk.f32.mxu0 %vm768_vm6, %v983_v12  ;;  %2341 = vmatpush3.bf16.msra.mxu0 %v2338_v11  ;;  %v1666_v49 = vld [vmem:[%s3352_s16 + $0x130] sm:$0xff] }
 0x1a9   : > { %2343 = vmatprep.subr.bf16.mxu0 %v2342_v15 }
 0x1aa   : > { %v923_v13 = vpop.permute.xlu0 %922 }
 0x1ab   : > { %2318 = vmatmul.mubr.msk.f32.vlgmr.msra.gmra.mrb[4].mxu0 %vm768_vm6, %v984_v18 }
 0x1ac   : > { %2345 = vmatpush3.bf16.msra.mxu0 %v2342_v15 }
 0x1ad   : > { %2347 = vmatprep.subr.bf16.mxu0 %v2346_v24 }
 0x1ae   : > { %v893_v3 = vpop.permute.xlu1 %892 }
 0x1af   : > { %v898_v4 = vsub.f32 %v2683_v32, %v893_v3  ;;  %v1262_v32 = vld [vmem:[%s3348_s12 + $0x68] sm:$0xff]  ;;  %v2372_v3 = vpack.c.bf16 %v1271_v1, %v1267_v0 }
 0x1b1   : > { %v900_v5 = vmul.f32 2.236068, %v898_v4  ;;  %v1457_v4 = vld [vmem:[%s3350_s14 + $0x8] sm:$0xff] }
 0x1b3   : > { %v895_v10 = vpop.permute.xlu1 %894  ;;  %938 = vrot.lane.b32.xlu1 %v900_v5, %s2563_s21  ;;  %v1459_v5 = vld [vmem:[%s3350_s14 + $0x18] sm:$0xff] }
 0x1b4   : > { %v899_v14 = vsub.f32 %v2686_v35, %v895_v10  ;;  %v2354_v35 = vpack.c.bf16 %v1262_v32, %v1258_v31  ;;  %v2374_v7 = vpack.c.bf16 %v1459_v5, %v1457_v4  ;;  %v2382_v10 = vpack.c.bf16 %v1633_v9, %v1629_v8  ;;  %v1648_v4 = vld [vmem:[%s3352_s16 + $0xa0] sm:$0xff]  ;;  %v1653_v8 = vld [vmem:[%s3352_s16 + $0xc8] sm:$0xff] }
 0x1b5   : > { %v931_v15 = vpop.permute.xlu0 %930  ;;  %v1657_v9 = vld [vmem:[%s3352_s16 + $0xe8] sm:$0xff] }
 0x1b6   : > { %v901_v17 = vmul.f32 2.236068, %v899_v14  ;;  %2355 = vmatprep.subr.bf16.mxu1 %v2354_v35 }
 0x1b7   : > { %v873_v19 = vpop.permute.xlu1 %872  ;;  %2357 = vmatpush1.bf16.msra.mxu1 %v2356_v36 }
 0x1b8   : > { %v877_v20 = vmul.f32 %v873_v19, %v859_v58  ;;  %940 = vrot.lane.b32.xlu0 %v901_v17, %s2563_s21  ;;  %v2358_v58 = vpack.c.bf16 %v1270_v57, %v1266_v56  ;;  %v1649_v56 = vld [vmem:[%s3352_s16 + $0xa8] sm:$0xff] }
 0x1ba   : > { %932 = vrot.lane.b32.xlu1 %v877_v20, %s2563_s21  ;;  %2359 = vmatprep.subr.bf16.mxu1 %v2358_v58 }
 0x1bb   : > { %2361 = vmatpush1.bf16.msra.mxu1 %v2360_v62  ;;  %v915_v11 = vpop.permute.xlu1 %914  ;;  %v1635_v62 = vld [vmem:[%s3352_s16 + $0x38] sm:$0xff] }
 0x1bc   : > { %954 = vrot.lane.b32.xlu0 %v911_v21, %s2564_s22  ;;  %2375 = vmatprep.subr.bf16.mxu1 %v2374_v7  ;;  %v959_v14 = vsel %vm958_vm7, 1.0, %v915_v11  ;;  %v945_v21 = vpop.permute.xlu0 %944  ;;  %v2380_v7 = vpack.c.bf16 %v1545_v60, %v1543_v59 }
 0x1bd   : > { %v962_v16 = vsel %vm961_vm8, %v959_v14, %v915_v11 }
 0x1be   : > { %946 = vrot.lane.b32.xlu1 %v877_v20, %s2564_s22  ;;  %v964_v18 = vsel %vm627_vm0, %v962_v16, %v915_v11  ;;  %v1652_v16 = vld [vmem:[%s3352_s16 + $0xc0] sm:$0xff] }
 0x1bf   : > { %v917_v12 = vpop.permute.xlu1 %916 }
 0x1c0   : > { %v960_v19 = vsel %vm958_vm7, 1.0, %v917_v12  ;;  %v953_v36 = vpop.permute.xlu0 %952 }
 0x1c1   : > { %v963_v23 = vsel %vm961_vm8, %v960_v19, %v917_v12  ;;  %v1634_v19 = vld [vmem:[%s3352_s16 + $0x30] sm:$0xff] }
 0x1c2   : > { %v965_v35 = vsel %vm627_vm0, %v963_v23, %v917_v12 }
 0x1c3   : > { %v925_v17 = vpop.permute.xlu1 %924 }
 0x1c4   : > { %v968_v47 = vsel %vm966_vm9, %v965_v35, %v925_v17  ;;  %v1656_v17 = vld [vmem:[%s3352_s16 + $0xe0] sm:$0xff] }
 0x1c5   : > { %v2396_v23 = vpack.c.bf16 %v1656_v17, %v1652_v16  ;;  %v1691_v17 = vld [vmem:[%s3352_s16 + $0x1f8] sm:$0xff] }
 0x225   : > { %v939_v20 = vpop.permute.xlu1 %938 }
 0x22c   : > { %v933_v31 = vpop.permute.xlu1 %932 }
 0x22d   : > { %v971_v53 = vsel %vm969_vm10, %v968_v47, %v933_v31 }
 0x230   : > { %v947_v57 = vpop.permute.xlu1 %946 }
 0x27a   : > { %v2312_v38 = vpop.f32.mrb[2].mxu0 }
 0x27b   : > { %v841_v41 = vpop.f32.mrb[3].mxu0  ;;  %v847_v43 = vadd.f32 %v2312_v38, %v2182_v37  ;;  %v2376_v38 = vpack.c.bf16 %v1458_v27, %v1456_v26  ;;  %v1638_v26 = vld [vmem:[%s3352_s16 + $0x50] sm:$0xff] }
 0x27c   : > { %v842_v42 = vadd.f32 %v2182_v37, %v841_v41  ;;  %v1642_v27 = vld [vmem:[%s3352_s16 + $0x70] sm:$0xff] }
 0x27e   : > { %2324 = vmatprep.mubr.msk.f32.mxu0 %vm768_vm6, %v842_v42  ;;  %v2378_v42 = vpack.c.bf16 %v1546_v30, %v1544_v29  ;;  %v1651_v29 = vld [vmem:[%s3352_s16 + $0xb8] sm:$0xff]  ;;  %v2424_v30 = vpack.c.bf16 %v1642_v27, %v1638_v26  ;;  %v1697_v26 = vld [vmem:[%s3352_s16 + $0x228] sm:$0xff] }
 0x27f   : > { %2325 = vmatmul.mubr.msk.f32.vlgmr.msra.gmra.mrb[4].mxu0 %vm768_vm6, %v847_v43  ;;  %v1637_v43 = vld [vmem:[%s3352_s16 + $0x48] sm:$0xff]  ;;  %v1695_v27 = vld [vmem:[%s3352_s16 + $0x218] sm:$0xff] }
 0x280   : > { %2349 = vmatpush3.bf16.msra.mxu0 %v2346_v24  ;;  %2331 = vmatprep.mubr.msk.f32.mxu0 %vm768_vm6, %v2779_v44  ;;  %v967_v24 = vsel %vm966_vm9, %v964_v18, %v923_v13  ;;  %v1630_v18 = vld [vmem:[%s3352_s16 + $0x10] sm:$0xff] }
 0x281   : > { %2363 = vmatprep.subr.bf16.mxu0 %v2362_v45  ;;  %v970_v37 = vsel %vm969_vm10, %v967_v24, %v931_v15  ;;  %v1641_v45 = vld [vmem:[%s3352_s16 + $0x68] sm:$0xff]  ;;  %v2394_v15 = vpack.c.bf16 %v1657_v9, %v1653_v8  ;;  %v2420_v24 = vpack.c.bf16 %v1634_v19, %v1630_v18  ;;  %v1684_v18 = vld [vmem:[%s3352_s16 + $0x1c0] sm:$0xff] }
 0x282   : > { %v973_v39 = vsel %vm972_vm11, %v970_v37, %v939_v20  ;;  %v2386_v54 = vpack.c.bf16 %v1641_v45, %v1637_v43  ;;  %v1658_v37 = vld [vmem:[%s3352_s16 + $0xf0] sm:$0xff]  ;;  %v1660_v43 = vld [vmem:[%s3352_s16 + $0x100] sm:$0xff] }
 0x283   : > { %v1664_v45 = vld [vmem:[%s3352_s16 + $0x120] sm:$0xff] }
 0x284   : > { %v2400_v47 = vpack.c.bf16 %v1664_v45, %v1660_v43  ;;  %v1688_v19 = vld [vmem:[%s3352_s16 + $0x1e0] sm:$0xff] }
 0x287   : > { %2332 = vmatmul.mubr.msk.f32.vlgmr.msra.gmra.mrb[4].mxu0 %vm768_vm6, %v2797_v50 }
 0x288   : > { %2365 = vmatpush1.bf16.msra.mxu0 %v2364_v51  ;;  %1443 = vmatprep.mubr.f32.mxu0 %v2565_v6  ;;  %v976_v51 = vsel %vm975_vm12, %v973_v39, %v945_v21  ;;  %v1639_v21 = vld [vmem:[%s3352_s16 + $0x58] sm:$0xff]  ;;  %v1665_v39 = vld [vmem:[%s3352_s16 + $0x128] sm:$0xff] }
 0x289   : > { %2367 = vmatprep.subr.bf16.mxu0 %v2366_v52  ;;  %v941_v52 = vpop.permute.xlu0 %940  ;;  %v978_v0 = vsel %vm675_vm5, %v976_v51, %v953_v36  ;;  %v1654_v36 = vld [vmem:[%s3352_s16 + $0xd0] sm:$0xff]  ;;  %v2436_v51 = vpack.c.bf16 %v1666_v49, %v1662_v48 }
 0x28a   : > { %v974_v1 = vsel %vm972_vm11, %v971_v53, %v941_v52  ;;  %v981_v11 = vsel %vm980_vm14, %v978_v0, 0.0  ;;  %v1669_v52 = vld [vmem:[%s3352_s16 + $0x148] sm:$0xff] }
 0x28b   : > { %v977_v5 = vsel %vm975_vm12, %v974_v1, %v947_v57  ;;  %v1673_v53 = vld [vmem:[%s3352_s16 + $0x168] sm:$0xff]  ;;  %v1668_v57 = vld [vmem:[%s3352_s16 + $0x140] sm:$0xff] }
 0x28c   : > { %2369 = vmatpush1.bf16.msra.mxu0 %v2368_v55  ;;  %v1645_v55 = vld [vmem:[%s3352_s16 + $0x88] sm:$0xff] }
 0x28d   : > { %2371 = vmatprep.subr.bf16.mxu0 %v2370_v2  ;;  %v2390_v2 = vpack.c.bf16 %v1649_v56, %v1645_v55  ;;  %v955_v12 = vpop.permute.xlu0 %954  ;;  %v2402_v55 = vpack.c.bf16 %v1673_v53, %v1669_v52  ;;  %v1675_v56 = vld [vmem:[%s3352_s16 + $0x178] sm:$0xff]  ;;  %v1677_v0 = vld [vmem:[%s3352_s16 + $0x188] sm:$0xff] }
 0x28e   : > { %v979_v14 = vsel %vm675_vm5, %v977_v5, %v955_v12  ;;  %v1681_v1 = vld [vmem:[%s3352_s16 + $0x1a8] sm:$0xff]  ;;  %v1676_v5 = vld [vmem:[%s3352_s16 + $0x180] sm:$0xff] }
 0x28f   : > { %v982_v20 = vsel %vm980_vm14, %v979_v14, 0.0  ;;  %v1689_v14 = vld [vmem:[%s3352_s16 + $0x1e8] sm:$0xff] }
 0x290   : > { %2373 = vmatpush1.bf16.msra.mxu0 %v2372_v3  ;;  %v1644_v3 = vld [vmem:[%s3352_s16 + $0x80] sm:$0xff] }
 0x291   : > { %2383 = vmatprep.subr.bf16.mxu0 %v2382_v10  ;;  %v2418_v10 = vpack.c.bf16 %v1635_v62, %v1631_v61  ;;  %v2392_v13 = vpack.c.bf16 %v1648_v4, %v1644_v3  ;;  %v1670_v61 = vld [vmem:[%s3352_s16 + $0x150] sm:$0xff]  ;;  %v2406_v3 = vpack.c.bf16 %v1681_v1, %v1677_v0  ;;  %v1683_v4 = vld [vmem:[%s3352_s16 + $0x1b8] sm:$0xff] }
 0x292   : > { %v1674_v62 = vld [vmem:[%s3352_s16 + $0x170] sm:$0xff] }
 0x35a   : > { %v2333_v25 = vpop.f32.mrb[4].mxu0 }
 0x35b   : > { %v1227_v28 = vpop.f32.mrb[5].mxu0  ;;  %v1246_v40 = vadd.f32 %v2333_v25, %v2191_v22 }
 0x35c   : > { %v1245_v32 = vadd.f32 %v2191_v22, %v1227_v28  ;;  %v1643_v22 = vld [vmem:[%s3352_s16 + $0x78] sm:$0xff] }
 0x35d   : > { %v1248_v58 = vmax.f32 %v1246_v40, 0.0  ;;  %v2422_v25 = vpack.c.bf16 %v1643_v22, %v1639_v21  ;;  %v1647_v28 = vld [vmem:[%s3352_s16 + $0x98] sm:$0xff]  ;;  %v2412_v21 = vpack.c.bf16 %v1688_v19, %v1684_v18  ;;  %v1686_v22 = vld [vmem:[%s3352_s16 + $0x1d0] sm:$0xff] }
 0x35e   : > { %v1247_v41 = vmax.f32 %v1245_v32, 0.0  ;;  %v2426_v31 = vpack.c.bf16 %v1651_v29, %v1647_v28  ;;  %v1646_v32 = vld [vmem:[%s3352_s16 + $0x90] sm:$0xff]  ;;  %v1663_v40 = vld [vmem:[%s3352_s16 + $0x118] sm:$0xff] }
 0x35f   : > { %v1699_v29 = vld [vmem:[%s3352_s16 + $0x238] sm:$0xff] }
 0x360   : > { %2192 = vmatmul.mubr.msk.f32.vlgmr.msra.gmra.mrb[0].mxu1 %vm1295_vm13, %v1247_v41  ;;  %2194 = vmatmul.mubr.msk.f32.vlgmr.msra.gmra.mrb[6].mxu0 %vm1295_vm13, %v1247_v41 }
 0x361   : > { %2377 = vmatpush1.bf16.msra.mxu1 %v2376_v38  ;;  %1372 = vmatprep.mubr.f32.mxu1 %v2565_v6  ;;  %v2432_v38 = vpack.c.bf16 %v1658_v37, %v1654_v36  ;;  %v1885_v36 = vld [vmem:[%s3353_s17 + $0x88] sm:$0xff]  ;;  %v1916_v37 = vld [vmem:[%s3353_s17 + $0x180] sm:$0xff] }
 0x362   : > { %1449 = vmatprep.mubr.f32.mxu0 %v2565_v6  ;;  %2379 = vmatprep.subr.bf16.mxu1 %v2378_v42  ;;  %v1667_v42 = vld [vmem:[%s3352_s16 + $0x138] sm:$0xff] }
 0x363   : > { %2385 = vmatpush1.bf16.msra.mxu0 %v2384_v46  ;;  %v2434_v46 = vpack.c.bf16 %v1667_v42, %v1663_v40 }
 0x364   : > { %2193 = vmatmul.mubr.msk.f32.gmra.mrb[2].mxu1 %vm1295_vm13, %v1248_v58  ;;  %2195 = vmatmul.mubr.msk.f32.gmra.mrb[8].mxu0 %vm1295_vm13, %v1248_v58  ;;  %v1672_v58 = vld [vmem:[%s3352_s16 + $0x160] sm:$0xff] }
 0x365   : > { %1530 = vmatprep.mubr.f32.mxu1 %v2565_v6  ;;  %2387 = vmatprep.subr.bf16.mxu0 %v2386_v54  ;;  %v1671_v54 = vld [vmem:[%s3352_s16 + $0x158] sm:$0xff]  ;;  %v2404_v60 = vpack.c.bf16 %v1672_v58, %v1668_v57  ;;  %v1901_v57 = vld [vmem:[%s3353_s17 + $0x108] sm:$0xff]  ;;  %v1886_v58 = vld [vmem:[%s3353_s17 + $0x90] sm:$0xff] }
 0x366   : > { %v2438_v59 = vpack.c.bf16 %v1675_v56, %v1671_v54  ;;  %v1868_v54 = vld [vmem:[%s3353_s17] sm:$0xff] }
 0x367   : > { %2389 = vmatpush1.bf16.msra.mxu0 %v2388_v63  ;;  %v2440_v63 = vpack.c.bf16 %v1674_v62, %v1670_v61  ;;  %v1900_v56 = vld [vmem:[%s3353_s17 + $0x100] sm:$0xff]  ;;  %v1918_v61 = vld [vmem:[%s3353_s17 + $0x190] sm:$0xff]  ;;  %v1919_v62 = vld [vmem:[%s3353_s17 + $0x198] sm:$0xff] }
 0x368   : > { %2196 = vmatmul.mubr.msk.f32.vlgmr.msra.gmra.mrb[4].mxu1 %vm768_vm6, %v981_v11  ;;  %2391 = vmatprep.subr.bf16.mxu0 %v2390_v2  ;;  %v1679_v2 = vld [vmem:[%s3352_s16 + $0x198] sm:$0xff]  ;;  %v1682_v11 = vld [vmem:[%s3352_s16 + $0x1b0] sm:$0xff] }
 0x369   : > { %2381 = vmatpush1.bf16.msra.mxu1 %v2380_v7  ;;  %1536 = vmatprep.mubr.f32.mxu1 %v2565_v6  ;;  %v1680_v7 = vld [vmem:[%s3352_s16 + $0x1a0] sm:$0xff]  ;;  %v2442_v8 = vpack.c.bf16 %v1683_v4, %v1679_v2  ;;  %v1870_v4 = vld [vmem:[%s3353_s17 + $0x10] sm:$0xff] }
 0x36a   : > { %2419 = vmatprep.subr.bf16.mxu1 %v2418_v10  ;;  %v2408_v9 = vpack.c.bf16 %v1680_v7, %v1676_v5  ;;  %v1678_v10 = vld [vmem:[%s3352_s16 + $0x190] sm:$0xff]  ;;  %v1871_v5 = vld [vmem:[%s3353_s17 + $0x18] sm:$0xff] }
 0x36b   : > { %2393 = vmatpush1.bf16.msra.mxu0 %v2392_v13  ;;  %v2444_v12 = vpack.c.bf16 %v1682_v11, %v1678_v10  ;;  %v1685_v13 = vld [vmem:[%s3352_s16 + $0x1c8] sm:$0xff]  ;;  %v1903_v10 = vld [vmem:[%s3353_s17 + $0x118] sm:$0xff]  ;;  %v1888_v11 = vld [vmem:[%s3353_s17 + $0xa0] sm:$0xff]  ;;  %v2460_v19 = vpack.c.bf16 %v1871_v5, %v1870_v4 }
 0x36c   : > { %2197 = vmatmul.mubr.msk.f32.gmra.mrb[6].mxu1 %vm768_vm6, %v982_v20  ;;  %2395 = vmatprep.subr.bf16.mxu0 %v2394_v15  ;;  %v1687_v15 = vld [vmem:[%s3352_s16 + $0x1d8] sm:$0xff]  ;;  %v2410_v16 = vpack.c.bf16 %v1689_v14, %v1685_v13  ;;  %v1889_v13 = vld [vmem:[%s3353_s17 + $0xa8] sm:$0xff]  ;;  %v1920_v14 = vld [vmem:[%s3353_s17 + $0x1a0] sm:$0xff] }
 0x36d   : > { %1611 = vmatprep.mubr.f32.mxu1 %v2565_v6  ;;  %v2446_v20 = vpack.c.bf16 %v1691_v17, %v1687_v15  ;;  %v1921_v15 = vld [vmem:[%s3353_s17 + $0x1a8] sm:$0xff]  ;;  %v1910_v4 = vld [vmem:[%s3353_s17 + $0x150] sm:$0xff]  ;;  %v1911_v5 = vld [vmem:[%s3353_s17 + $0x158] sm:$0xff] }
 0x36f   : > { %2397 = vmatpush1.bf16.msra.mxu0 %v2396_v23  ;;  %v1690_v23 = vld [vmem:[%s3352_s16 + $0x1f0] sm:$0xff] }
 0x370   : > { %2198 = vmatmul.mubr.msk.f32.vlgmr.msra.gmra.mrb[8].mxu1 %vm768_vm6, %v2779_v44  ;;  %v1659_v44 = vld [vmem:[%s3352_s16 + $0xf8] sm:$0xff] }
 0x371   : > { %1617 = vmatprep.mubr.f32.mxu1 %v2565_v6  ;;  %2421 = vmatpush1.bf16.msra.mxu1 %v2420_v24  ;;  %v2428_v6 = vpack.c.bf16 %v1650_v33, %v1646_v32  ;;  %v2430_v35 = vpack.c.bf16 %v1659_v44, %v1655_v34  ;;  %v2448_v24 = vpack.c.bf16 %v1690_v23, %v1686_v22  ;;  %v1694_v34 = vld [vmem:[%s3352_s16 + $0x210] sm:$0xff]  ;;  %v1873_v22 = vld [vmem:[%s3353_s17 + $0x28] sm:$0xff] }
 0x372   : > { %2423 = vmatprep.subr.bf16.mxu1 %v2422_v25  ;;  %v1693_v25 = vld [vmem:[%s3352_s16 + $0x208] sm:$0xff]  ;;  %v2450_v32 = vpack.c.bf16 %v1699_v29, %v1695_v27  ;;  %v1698_v44 = vld [vmem:[%s3352_s16 + $0x230] sm:$0xff]  ;;  %v2462_v23 = vpack.c.bf16 %v1889_v13, %v1888_v11  ;;  %v1880_v13 = vld [vmem:[%s3353_s17 + $0x60] sm:$0xff] }
 0x373   : > { %v2414_v28 = vpack.c.bf16 %v1697_v26, %v1693_v25  ;;  %v1904_v25 = vld [vmem:[%s3353_s17 + $0x120] sm:$0xff]  ;;  %v1905_v26 = vld [vmem:[%s3353_s17 + $0x128] sm:$0xff]  ;;  %v1890_v27 = vld [vmem:[%s3353_s17 + $0xb0] sm:$0xff] }
 0x374   : > { %2199 = vmatmul.mubr.msk.f32.gmra.mrb[10].mxu1 %vm768_vm6, %v2797_v50  ;;  %v1661_v50 = vld [vmem:[%s3352_s16 + $0x108] sm:$0xff]  ;;  %v1922_v29 = vld [vmem:[%s3353_s17 + $0x1b0] sm:$0xff] }
 0x375   : > { %2425 = vmatpush1.bf16.msra.mxu1 %v2424_v30  ;;  %v2398_v41 = vpack.c.bf16 %v1665_v39, %v1661_v50  ;;  %v1692_v30 = vld [vmem:[%s3352_s16 + $0x200] sm:$0xff]  ;;  %v1917_v50 = vld [vmem:[%s3353_s17 + $0x188] sm:$0xff] }
 0x376   : > { %2427 = vmatprep.subr.bf16.mxu1 %v2426_v31  ;;  %v1696_v31 = vld [vmem:[%s3352_s16 + $0x220] sm:$0xff]  ;;  %v2486_v39 = vpack.c.bf16 %v1917_v50, %v1916_v37 }
 0x377   : > { %2399 = vmatprep.subr.bf16.mxu0 %v2398_v41  ;;  %v2416_v33 = vpack.c.bf16 %v1696_v31, %v1692_v30  ;;  %v1923_v30 = vld [vmem:[%s3353_s17 + $0x1b8] sm:$0xff]  ;;  %v1892_v37 = vld [vmem:[%s3353_s17 + $0xc0] sm:$0xff] }
 0x378   : > { %2401 = vmatpush1.bf16.msra.mxu0 %v2400_v47  ;;  %v1924_v50 = vld [vmem:[%s3353_s17 + $0x1c0] sm:$0xff] }
 0x379   : > { %2429 = vmatpush1.bf16.msra.mxu1 %v2428_v6  ;;  %2403 = vmatprep.subr.bf16.mxu0 %v2402_v55  ;;  %v2452_v6 = vpack.c.bf16 %v1698_v44, %v1694_v34  ;;  %v1869_v55 = vld [vmem:[%s3353_s17 + $0x8] sm:$0xff]  ;;  %v1875_v34 = vld [vmem:[%s3353_s17 + $0x38] sm:$0xff] }
 0x37a   : > { %2431 = vmatprep.subr.bf16.mxu1 %v2430_v35  ;;  %v1884_v35 = vld [vmem:[%s3353_s17 + $0x80] sm:$0xff]  ;;  %v2456_v2 = vpack.c.bf16 %v1869_v55, %v1868_v54 }
 0x37c   : > { %2405 = vmatpush1.bf16.msra.mxu0 %v2404_v60  ;;  %v1887_v60 = vld [vmem:[%s3353_s17 + $0x98] sm:$0xff] }
 0x37d   : > { %2433 = vmatpush1.bf16.msra.mxu1 %v2432_v38  ;;  %2407 = vmatprep.subr.bf16.mxu0 %v2406_v3  ;;  %v2454_v38 = vpack.c.bf16 %v1885_v36, %v1884_v35  ;;  %v2488_v3 = vpack.c.bf16 %v1901_v57, %v1900_v56  ;;  %v2458_v7 = vpack.c.bf16 %v1887_v60, %v1886_v58  ;;  %v1906_v35 = vld [vmem:[%s3353_s17 + $0x130] sm:$0xff]  ;;  %v1907_v36 = vld [vmem:[%s3353_s17 + $0x138] sm:$0xff]  ;;  %v1908_v56 = vld [vmem:[%s3353_s17 + $0x140] sm:$0xff] }
 0x37e   : > { %2435 = vmatprep.subr.bf16.mxu1 %v2434_v46  ;;  %v1909_v57 = vld [vmem:[%s3353_s17 + $0x148] sm:$0xff]  ;;  %v1894_v58 = vld [vmem:[%s3353_s17 + $0xd0] sm:$0xff] }
 0x37f   : > { %v1926_v60 = vld [vmem:[%s3353_s17 + $0x1d0] sm:$0xff] }
 0x380   : > { %2409 = vmatpush1.bf16.msra.mxu0 %v2408_v9  ;;  %v1902_v9 = vld [vmem:[%s3353_s17 + $0x110] sm:$0xff] }
 0x381   : > { %2437 = vmatpush1.bf16.msra.mxu1 %v2436_v51  ;;  %2411 = vmatprep.subr.bf16.mxu0 %v2410_v16 }
 0x382   : > { %2439 = vmatprep.subr.bf16.mxu1 %v2438_v59 }
 0x384   : > { %2413 = vmatpush1.bf16.msra.mxu0 %v2412_v21  ;;  %v1872_v21 = vld [vmem:[%s3353_s17 + $0x20] sm:$0xff] }
 0x385   : > { %2441 = vmatpush1.bf16.msra.mxu1 %v2440_v63  ;;  %2415 = vmatprep.subr.bf16.mxu0 %v2414_v28  ;;  %v1891_v28 = vld [vmem:[%s3353_s17 + $0xb8] sm:$0xff]  ;;  %v2464_v31 = vpack.c.bf16 %v1873_v22, %v1872_v21  ;;  %v1898_v21 = vld [vmem:[%s3353_s17 + $0xf0] sm:$0xff] }
 0x386   : > { %2443 = vmatprep.subr.bf16.mxu1 %v2442_v8  ;;  %v2490_v8 = vpack.c.bf16 %v1919_v62, %v1918_v61  ;;  %v2466_v44 = vpack.c.bf16 %v1891_v28, %v1890_v27  ;;  %v1927_v61 = vld [vmem:[%s3353_s17 + $0x1d8] sm:$0xff] }
 0x387   : > { %v1899_v22 = vld [vmem:[%s3353_s17 + $0xf8] sm:$0xff] }
 0x388   : > { %2417 = vmatpush1.bf16.msra.mxu0 %v2416_v33  ;;  %v1874_v33 = vld [vmem:[%s3353_s17 + $0x30] sm:$0xff]  ;;  %v1883_v27 = vld [vmem:[%s3353_s17 + $0x78] sm:$0xff] }
 0x389   : > { %2445 = vmatpush1.bf16.msra.mxu1 %v2444_v12  ;;  %2455 = vmatprep.subr.bf16.mxu0 %v2454_v38  ;;  %v1893_v38 = vld [vmem:[%s3353_s17 + $0xc8] sm:$0xff] }
 0x38a   : > { %2447 = vmatprep.subr.bf16.mxu1 %v2446_v20  ;;  %v2492_v20 = vpack.c.bf16 %v1903_v10, %v1902_v9  ;;  %v2470_v54 = vpack.c.bf16 %v1893_v38, %v1892_v37  ;;  %v1928_v9 = vld [vmem:[%s3353_s17 + $0x1e0] sm:$0xff]  ;;  %v1929_v10 = vld [vmem:[%s3353_s17 + $0x1e8] sm:$0xff] }
 0x38d   : > { %2449 = vmatpush1.bf16.msra.mxu1 %v2448_v24  ;;  %v2494_v24 = vpack.c.bf16 %v1921_v15, %v1920_v14  ;;  %v2510_v15 = vpack.c.bf16 %v1929_v10, %v1928_v9 }
 0x38e   : > { %2451 = vmatprep.subr.bf16.mxu1 %v2450_v32  ;;  %v2496_v32 = vpack.c.bf16 %v1905_v26, %v1904_v25  ;;  %v1931_v25 = vld [vmem:[%s3353_s17 + $0x1f8] sm:$0xff]  ;;  %v1882_v26 = vld [vmem:[%s3353_s17 + $0x70] sm:$0xff] }
 0x391   : > { %2453 = vmatpush1.bf16.msra.mxu1 %v2452_v6  ;;  %v2498_v6 = vpack.c.bf16 %v1923_v30, %v1922_v29  ;;  %v2484_v29 = vpack.c.bf16 %v1883_v27, %v1882_v26  ;;  %v1914_v30 = vld [vmem:[%s3353_s17 + $0x170] sm:$0xff] }
 0x392   : > { %2487 = vmatprep.subr.bf16.mxu1 %v2486_v39  ;;  %v1925_v39 = vld [vmem:[%s3353_s17 + $0x1c8] sm:$0xff] }
 0x393   : > { %v2502_v55 = vpack.c.bf16 %v1925_v39, %v1924_v50 }
 0x433   : > { %v3118_v40 = vpop.f32.mrb[0].mxu1  ;;  %v3120_v41 = vpop.f32.mrb[6].mxu0 }
 0x434   : > { %v3122_v42 = vpop.f32.mrb[1].mxu1  ;;  %v3124_v43 = vpop.f32.mrb[7].mxu0 }
 0x437   : > { %v3126_v45 = vpop.f32.mrb[2].mxu1  ;;  %v3128_v46 = vpop.f32.mrb[8].mxu0 }
 0x438   : > { %v3130_v47 = vpop.f32.mrb[3].mxu1  ;;  %v3132_v48 = vpop.f32.mrb[9].mxu0 }
 0x43b   : > { %v1532_v49 = vpop.f32.mrb[4].mxu1 }
 0x43c   : > { %v1534_v51 = vpop.f32.mrb[5].mxu1 }
 0x43f   : > { %v1538_v52 = vpop.f32.mrb[6].mxu1 }
 0x440   : > { %v1540_v53 = vpop.f32.mrb[7].mxu1 }
 0x443   : > { %v1613_v59 = vpop.f32.mrb[8].mxu1 }
 0x444   : > { %v1624_v63 = vmul.f32 %v1613_v59, %v1532_v49  ;;  %v1615_v0 = vpop.f32.mrb[9].mxu1  ;;  %v2468_v49 = vpack.c.bf16 %v1875_v34, %v1874_v33  ;;  %v1895_v59 = vld [vmem:[%s3353_s17 + $0xd8] sm:$0xff]  ;;  %v1275_v33 = vlaneseq }
 0x445   : > { %v1625_v1 = vmul.f32 %v1615_v0, %v1534_v51  ;;  %v2500_v51 = vpack.c.bf16 %v1907_v36, %v1906_v35  ;;  %v1878_v0 = vld [vmem:[%s3353_s17 + $0x50] sm:$0xff]  ;;  %v1273_v35 = vld [vmem:[%s3349_s13] sm:$0xf] }
 0x446   : > { %v1276_v34 = vshrl.u32 %v1275_v33, 7 }
 0x447   : > { %v1619_v12 = vpop.f32.mrb[10].mxu1  ;;  %2200 = vmatprep.mubr.msk.f32.mxu0 %vm768_vm6, %v1625_v1  ;;  %2202 = vmatprep.mubr.msk.f32.mxu1 %vm768_vm6, %v1625_v1  ;;  %v1879_v1 = vld [vmem:[%s3353_s17 + $0x58] sm:$0xff] }
 0x448   : > { %v1626_v16 = vmul.f32 %v1619_v12, %v1538_v52  ;;  %v1621_v17 = vpop.f32.mrb[11].mxu1  ;;  %1771 = vmatmul.mubr.f32.vlgmr.msra.gmra.mrb[10].mxu0 %v1624_v63  ;;  %1848 = vmatmul.mubr.f32.vlgmr.msra.gmra.mrb[12].mxu1 %v1624_v63  ;;  %v1876_v52 = vld [vmem:[%s3353_s17 + $0x40] sm:$0xff]  ;;  %v2504_v63 = vpack.c.bf16 %v1909_v57, %v1908_v56  ;;  %v2476_v11 = vpack.c.bf16 %v1879_v1, %v1878_v0  ;;  %v1281_v36 = vsub.s32 1, %v1276_v34 }
 0x449   : > { %v1627_v18 = vmul.f32 %v1621_v17, %v1540_v53  ;;  %2457 = vmatpush3.bf16.msra.mxu0 %v2456_v2  ;;  %2489 = vmatpush3.bf16.msra.mxu1 %v2488_v3  ;;  %v1877_v53 = vld [vmem:[%s3353_s17 + $0x48] sm:$0xff]  ;;  %v2474_v2 = vpack.c.bf16 %v1895_v59, %v1894_v58  ;;  %v2506_v3 = vpack.c.bf16 %v1927_v61, %v1926_v60  ;;  %v1912_v17 = vld [vmem:[%s3353_s17 + $0x160] sm:$0xff]  ;;  %v1289_v37 = vsub.s32 3, %v1276_v34 }
 0x44a   : > { %2459 = vmatprep.subr.bf16.mxu0 %v2458_v7  ;;  %2491 = vmatprep.subr.bf16.mxu1 %v2490_v8  ;;  %v2472_v62 = vpack.c.bf16 %v1877_v53, %v1876_v52  ;;  %v1896_v7 = vld [vmem:[%s3353_s17 + $0xe0] sm:$0xff]  ;;  %v1897_v8 = vld [vmem:[%s3353_s17 + $0xe8] sm:$0xff]  ;;  %v2508_v12 = vpack.c.bf16 %v1911_v5, %v1910_v4  ;;  %v1282_v39 = vrot.slane %v1273_v35, %v1281_v36 }
 0x44b   : > { %2201 = vmatprep.mubr.msk.f32.mxu0 %vm768_vm6, %v1627_v18  ;;  %2203 = vmatprep.mubr.msk.f32.mxu1 %vm768_vm6, %v1627_v18  ;;  %v2478_v14 = vpack.c.bf16 %v1897_v8, %v1896_v7  ;;  %v1913_v18 = vld [vmem:[%s3353_s17 + $0x168] sm:$0xff] }
 0x44c   : > { %1777 = vmatmul.mubr.f32.gmra.mrb[12].mxu0 %v1626_v16  ;;  %1854 = vmatmul.mubr.f32.gmra.mrb[14].mxu1 %v1626_v16  ;;  %v1881_v16 = vld [vmem:[%s3353_s17 + $0x68] sm:$0xff]  ;;  %v1371_v53 = vadd.f32 %v3122_v42, %v1282_v39 }
 0x44d   : > { %2461 = vmatpush3.bf16.msra.mxu0 %v2460_v19  ;;  %2493 = vmatpush3.bf16.msra.mxu1 %v2492_v20  ;;  %v2480_v19 = vpack.c.bf16 %v1881_v16, %v1880_v13  ;;  %v2512_v20 = vpack.c.bf16 %v1913_v18, %v1912_v17 }
 0x44e   : > { %2463 = vmatprep.subr.bf16.mxu0 %v2462_v23  ;;  %2495 = vmatprep.subr.bf16.mxu1 %v2494_v24  ;;  %v1930_v23 = vld [vmem:[%s3353_s17 + $0x1f0] sm:$0xff]  ;;  %v2482_v24 = vpack.c.bf16 %v1899_v22, %v1898_v21 }
 0x44f   : > { %v2514_v28 = vpack.c.bf16 %v1931_v25, %v1930_v23 }
 0x451   : > { %2465 = vmatpush3.bf16.msra.mxu0 %v2464_v31  ;;  %2497 = vmatpush3.bf16.msra.mxu1 %v2496_v32  ;;  %v1915_v31 = vld [vmem:[%s3353_s17 + $0x178] sm:$0xff] }
 0x452   : > { %2467 = vmatprep.subr.bf16.mxu0 %v2466_v44  ;;  %2499 = vmatprep.subr.bf16.mxu1 %v2498_v6  ;;  %v2516_v32 = vpack.c.bf16 %v1915_v31, %v1914_v30  ;;  %v1277_v44 = vsub.s32 0, %v1276_v34  ;;  %v1285_v6 = vsub.s32 2, %v1276_v34 }
 0x454   : > { %v1278_v38 = vrot.slane %v1273_v35, %v1277_v44  ;;  %v1286_v50 = vrot.slane %v1273_v35, %v1285_v6 }
 0x455   : > { %2469 = vmatpush3.bf16.msra.mxu0 %v2468_v49  ;;  %2501 = vmatpush3.bf16.msra.mxu1 %v2500_v51  ;;  %v1290_v49 = vrot.slane %v1273_v35, %v1289_v37 }
 0x456   : > { %2471 = vmatprep.subr.bf16.mxu0 %v2470_v54  ;;  %2503 = vmatprep.subr.bf16.mxu1 %v2502_v55  ;;  %v1369_v51 = vadd.f32 %v3118_v40, %v1278_v38  ;;  %v1446_v52 = vadd.f32 %v3120_v41, %v1286_v50  ;;  %v1452_v0 = vadd.f32 %v3128_v46, %v1286_v50 }
 0x457   : > { %v1448_v54 = vadd.f32 %v3124_v43, %v1290_v49  ;;  %v1377_v40 = vadd.f32 %v3130_v47, %v1282_v39  ;;  %v1454_v41 = vadd.f32 %v3132_v48, %v1290_v49 }
 0x459   : > { %2473 = vmatpush3.bf16.msra.mxu0 %v2472_v62  ;;  %2505 = vmatpush3.bf16.msra.mxu1 %v2504_v63  ;;  %v1375_v63 = vadd.f32 %v3126_v45, %v1278_v38 }
 0x45a   : > { %2475 = vmatprep.subr.bf16.mxu0 %v2474_v2  ;;  %2507 = vmatprep.subr.bf16.mxu1 %v2506_v3 }
 0x45d   : > { %2477 = vmatpush3.bf16.msra.mxu0 %v2476_v11  ;;  %2509 = vmatpush3.bf16.msra.mxu1 %v2508_v12 }
 0x45e   : > { %2479 = vmatprep.subr.bf16.mxu0 %v2478_v14  ;;  %2511 = vmatprep.subr.bf16.mxu1 %v2510_v15 }
 0x461   : > { %2481 = vmatpush3.bf16.msra.mxu0 %v2480_v19  ;;  %2513 = vmatpush3.bf16.msra.mxu1 %v2512_v20 }
 0x462   : > { %2483 = vmatprep.subr.bf16.mxu0 %v2482_v24  ;;  %2515 = vmatprep.subr.bf16.mxu1 %v2514_v28 }
 0x465   : > { %2485 = vmatpush3.bf16.msra.mxu0 %v2484_v29  ;;  %2517 = vmatpush3.bf16.msra.mxu1 %v2516_v32 }
 0x51b   : > { %v1772_v55 = vpop.f32.mrb[10].mxu0  ;;  %v1849_v56 = vpop.f32.mrb[12].mxu1 }
 0x51c   : > { %v1860_v57 = vmul.f32 %v1772_v55, %v1369_v51  ;;  %v1862_v58 = vmul.f32 %v1849_v56, %v1446_v52  ;;  %v1774_v59 = vpop.f32.mrb[11].mxu0  ;;  %v1851_v60 = vpop.f32.mrb[13].mxu1 }
 0x51d   : > { %v1861_v61 = vmul.f32 %v1774_v59, %v1371_v53  ;;  %v1863_v62 = vmul.f32 %v1851_v60, %v1448_v54 }
 0x51f   : > { %v1778_v1 = vpop.f32.mrb[12].mxu0  ;;  %v1855_v42 = vpop.f32.mrb[14].mxu1  ;;  %1996 = vmatprep.mubr.f32.mxu0 %v1861_v61  ;;  %2071 = vmatprep.mubr.f32.mxu1 %v1863_v62 }
 0x520   : > { %v1864_v43 = vmul.f32 %v1778_v1, %v1375_v63  ;;  %v1866_v2 = vmul.f32 %v1855_v42, %v1452_v0  ;;  %v1780_v3 = vpop.f32.mrb[13].mxu0  ;;  %v1857_v4 = vpop.f32.mrb[15].mxu1  ;;  %1997 = vmatmul.mubr.f32.vlgmr.msra.gmra.mrb[14].mxu0 %v1860_v57  ;;  %2072 = vmatmul.mubr.f32.vlgmr.msra.gmra.mrb[16].mxu1 %v1862_v58 }
 0x521   : > { %v1865_v5 = vmul.f32 %v1780_v3, %v1377_v40  ;;  %v1867_v7 = vmul.f32 %v1857_v4, %v1454_v41 }
 0x523   : > { %2001 = vmatprep.mubr.f32.mxu0 %v1865_v5  ;;  %2076 = vmatprep.mubr.f32.mxu1 %v1867_v7 }
 0x524   : > { %2002 = vmatmul.mubr.f32.gmra.mrb[16].mxu0 %v1864_v43  ;;  %2077 = vmatmul.mubr.f32.gmra.mrb[18].mxu1 %v1866_v2 }
 0x5f3   : > { %v2257_v45 = vpop.f32.mrb[14].mxu0  ;;  %v2295_v46 = vpop.f32.mrb[16].mxu1 }
 0x5f4   : > { %v2258_v47 = vpop.f32.mrb[15].mxu0  ;;  %v2296_v48 = vpop.f32.mrb[17].mxu1 }
 0x5f5   : > { %v2259_v8 = vadd.f32 %v2258_v47, %v2257_v45  ;;  %v2297_v9 = vadd.f32 %v2296_v48, %v2295_v46 }
 0x5f7   : > { %v2074_v10 = vadd.f32 %v2297_v9, %v2259_v8  ;;  %v2260_v11 = vpop.f32.mrb[16].mxu0  ;;  %v2298_v12 = vpop.f32.mrb[18].mxu1 }
 0x5f8   : > { %v2261_v13 = vpop.f32.mrb[17].mxu0  ;;  %v2299_v14 = vpop.f32.mrb[19].mxu1 }
 0x5f9   : > { %2083 = vst.msk [vmem:[%s621_s28] sm:$0xff] %vm2082_vm15, %v2074_v10  ;;  %v2262_v15 = vadd.f32 %v2261_v13, %v2260_v11  ;;  %v2300_v16 = vadd.f32 %v2299_v14, %v2298_v12 }
 0x5fb   : > { %v2079_v17 = vadd.f32 %v2300_v16, %v2262_v15 }
 0x5fd   : > { %2084 = vst.msk [vmem:[%s621_s28 + $0x8] sm:$0xff] %vm2082_vm15, %v2079_v17 }
 0x5fe PF: > { %s28_s27 = sadd.s32 1, %s2556_s27  }
 0x5ff   : > { %p25_p4 = scmp.ge.s32.totalorder %s28_s27, 4  }
 0x601   :  { %27 = sbr.rel (!%p25_p4) target bundleno = 4 (0x4), region = 128 }

// kernel: tensor_product_conv_block_forward.9
= control target key start
LH: loop header
LB: loop body
LE: loop exit
PB: predicated region body
PF: predicated region fallthrough
CT: control target
= control target key end

     0   :  { %vm21_vm0 = vcmask 326656   ;;  %v153_v0 = vmov 0.0|0.0   ;;  %v154_v4 = vmov 0.0   ;;  %vm155_vm1 = vmmov 0   ;;  %s209_s1 = inlined_call_operand.vmem [shape: f32[32,40], index: 1, kind: input, shape index: {}]   ;;  %s210_s2 = inlined_call_operand.vmem [shape: f32[8,1], index: 2, kind: input, shape index: {}]   ;;  %s211_s0 = inlined_call_operand.vmem [shape: bf16[8,32], index: 0, kind: input, shape index: {}]   ;;  %s212_s3 = inlined_call_operand.vmem [shape: f32[8,40], index: 3, kind: input, shape index: {}]   ;;  %s213_s4 = inlined_call_operand.vmem [shape: f32[8,40], index: 4, kind: output, shape index: {}]  }
   0x1   :  { %142 = vmatprep.subr.bf16.mxu0 %v153_v0  ;;  %v26_v1 = vld [vmem:[%s209_s1] sm:$0xff]  ;;  %v27_v2 = vld [vmem:[%s209_s1 + $0x8] sm:$0xff]  ;;  %v28_v3 = vld [vmem:[%s209_s1 + $0x10] sm:$0xff]  ;;  %22 = vst.msk [vmem:[#allocation2] sm:$0xff] %vm21_vm0, %v154_v4  ;;  %139 = vmatprep.mubr.msk.f32.mxu0 %vm155_vm1, %v154_v4  ;;  %v156_v7 = vmov 0   ;;  %vm30_vm2 = vcmask 261120  }
   0x2   :  { %v143_v5 = vpack.c.bf16 %v27_v2, %v26_v1  ;;  %v29_v6 = vld [vmem:[%s209_s1 + $0x18] sm:$0xff]  ;;  %152 = vset.pattern.permute.xlu0 %v156_v7  ;;  %v111_v8 = vld [vmem:[%s210_s2] sm:$0xff] }
   0x3   :  { %114 = vperm.xlu0 %152, %v111_v8   ;;  %v146_v9 = vpack.c.bf16 %v29_v6, %v28_v3  ;;  %v24_v10 = vld [vmem:[%s211_s0] sm:$0xf] }
   0x4   :  { %144 = vmatpush3.bf16.msra.mxu0 %v143_v5  ;;  %v25_v11 = vunpack.c.l.bf16 %v24_v10  ;;  %v118_v17 = vld [vmem:[%s212_s3] sm:$0xff] }
   0x5   :  { %145 = vmatprep.subr.bf16.mxu0 %v153_v0 }
   0x8   :  { %147 = vmatpush3.bf16.msra.mxu0 %v146_v9  ;;  %v23_v12 = vld [vmem:[#allocation2] sm:$0xff] }
   0xb   :  { %140 = vmatmul.mubr.msk.f32.vlgmr.msra.gmra.mrb[0].mxu0 %vm30_vm2, %v25_v11 }
  0x82   :  { %v115_v16 = vpop.permute.xlu0 %114 }
  0xde   :  { %v100_v13 = vpop.f32.mrb[0].mxu0 }
  0xdf   :  { %v104_v14 = vadd.f32 %v100_v13, %v23_v12  ;;  %v141_v15 = vpop.f32.mrb[1].mxu0 }
  0xe1   :  { %106 = vst.msk [vmem:[#allocation2] sm:$0xff] %vm21_vm0, %v104_v14 }
  0xe8   :  { %v110_v18 = vld [vmem:[#allocation2] sm:$0xff] }
  0xe9   :  { %v117_v19 = vmul.f32 %v115_v16, %v110_v18 }
  0xeb   :  { %v119_v20 = vadd.f32 %v118_v17, %v117_v19 }
  0xed   :  { %120 = vst.msk [vmem:[%s213_s4] sm:$0xff] %vm21_vm0, %v119_v20 }

// kernel: tensor_product_conv_block_forward.8
= control target key start
LH: loop header
LB: loop body
LE: loop exit
PB: predicated region body
PF: predicated region fallthrough
CT: control target
= control target key end

     0   :  { %s3788_s27 = smov 0   ;;  %s5163_s0 = inlined_call_operand.vmem [shape: f32[32,3], index: 0, kind: input, shape index: {}]   ;;  %s5164_s1 = inlined_call_operand.vmem [shape: f32[32,16], index: 1, kind: input, shape index: {}]   ;;  %s5165_s2 = inlined_call_operand.vmem [shape: f32[32,32], index: 2, kind: input, shape index: {}]   ;;  %s5166_s3 = inlined_call_operand.vmem [shape: f32[1,8], index: 3, kind: input, shape index: {}]   ;;  %s5167_s4 = inlined_call_operand.vmem [shape: f32[8,16], index: 4, kind: input, shape index: {}]   ;;  %s5168_s5 = inlined_call_operand.vmem [shape: f32[1,16], index: 5, kind: input, shape index: {}]   ;;  %s5169_s6 = inlined_call_operand.vmem [shape: f32[16,16], index: 6, kind: input, shape index: {}]   ;;  %s5170_s7 = inlined_call_operand.vmem [shape: f32[1,16], index: 7, kind: input, shape index: {}]   ;;  %s5171_s8 = inlined_call_operand.vmem [shape: f32[16,48], index: 8, kind: input, shape index: {}]   ;;  %s5172_s9 = inlined_call_operand.vmem [shape: f32[16,48], index: 9, kind: input, shape index: {}]   ;;  %s5173_s10 = inlined_call_operand.vmem [shape: f32[32,48], index: 10, kind: input, shape index: {}]   ;;  %s5174_s11 = inlined_call_operand.vmem [shape: f32[1,48], index: 11, kind: input, shape index: {}]   ;;  %s5175_s12 = inlined_call_operand.vmem [shape: f32[48,768], index: 12, kind: input, shape index: {}]   ;;  %s5176_s13 = inlined_call_operand.vmem [shape: f32[1,768], index: 13, kind: input, shape index: {}]   ;;  %s5177_s14 = inlined_call_operand.vmem [shape: f32[16,288], index: 14, kind: input, shape index: {}]   ;;  %s5178_s15 = inlined_call_operand.vmem [shape: f32[32,288], index: 15, kind: input, shape index: {}]   ;;  %s5179_s16 = inlined_call_operand.vmem [shape: f32[288,768], index: 16, kind: input, shape index: {}]   ;;  %s5180_s17 = inlined_call_operand.vmem [shape: f32[768,40], index: 17, kind: input, shape index: {}]   ;;  %s5181_s18 = inlined_call_operand.vmem [shape: f32[32,40], index: 18, kind: output, shape index: {}]  }
   0x1   :  { %5182 = sst [smem:[#allocation2_spill]] %s5163_s0 }
   0x2   :  { %5183 = sst [smem:[#allocation3_spill]] %s5164_s1 }
   0x3   :  { %5184 = sst [smem:[#allocation4_spill]] %s5165_s2 }
   0x4 LB: > { %s2992_s28 = sadd.s32 4294967295, %s3683_s27   ;;  %p2996_p0 = scmp.ge.s32.totalorder %s3683_s27, 1  ;;  %s3683_s27 = sphi %s3788_s27, %s28_s27  }
   0x5   : > { %p535_p1 = scmp.lt.s32.totalorder %s3683_s27, 3 }
   0x7   : > { %p536_p2 = pnand %p2996_p0, %p535_p1 }
   0x8   : > { %s2997_s29 = sshll.u32 (!%p536_p2), %s2992_s28, 1  ;;  %s5185_s1 = sld [smem:[#allocation2_spill]] (!%p536_p2)  ;;  %vm627_vm0 = vcmask (!%p536_p2), 23552   ;;  %v667_v6 = vld [vmem:[%s5167_s4] sm:$0xff] (!%p536_p2)  ;;  %vm675_vm5 = vcmask (!%p536_p2), 64512   ;;  %v760_v39 = vld [vmem:[%s5169_s6 + $0x8] sm:$0xff] (!%p536_p2) }
   0x9   : > { %539 = sbr.rel (%p536_p2) target bundleno = 1638 (0x666), region = 92  ;;  %p600_p3 = scmp.lt.s32.totalorder (!%p536_p2), %s2997_s29, 3  ;;  %3186 = vmatprep.subr.mxu0 (!%p536_p2), %v667_v6  ;;  %v3005_v14 = vld [vmem:[%s5166_s3] ss:$0 sm:$0xff] (!%p536_p2)  ;;  %vm768_vm6 = vcmask (!%p536_p2), 130048   ;;  %vm958_vm7 = vcmask (!%p536_p2), 7168  }
   0xa   : > { %3187 = vmatpush3.msra.mxu0 (!%p536_p2), %v667_v6  ;;  %s3685_s24 = smov (!%p536_p2), 126   ;;  %s3686_s25 = smov (!%p536_p2), 2   ;;  %v759_v38 = vld [vmem:[%s5169_s6] sm:$0xff] (!%p536_p2)  ;;  %vm961_vm8 = vcmask (!%p536_p2), 15360   ;;  %vm966_vm9 = vcmask (!%p536_p2), 31744   ;;  %vm969_vm10 = vcmask (!%p536_p2), 39936  }
   0xb   : > { %s3687_s26 = smov (!%p536_p2), 127   ;;  %v3241_v40 = vpack.c.bf16 (!%p536_p2), %v760_v39, %v759_v38  ;;  %s3690_s21 = smov (!%p536_p2), 5   ;;  %v3006_v60 = vld [vmem:[%s5168_s5] ss:$0 sm:$0xff] (!%p536_p2)  ;;  %vm972_vm11 = vcmask (!%p536_p2), 48128   ;;  %vm1157_vm12 = vcmask (!%p536_p2), 261120  }
   0xc   : > { %s3691_s22 = smov (!%p536_p2), 6   ;;  %v989_v6 = vld [vmem:[%s5172_s9] sm:$0xff] (!%p536_p2)  ;;  %s5186_s19 = sld [smem:[#allocation3_spill]] (!%p536_p2)  ;;  %vm975_vm13 = vcmask (!%p536_p2), 56320   ;;  %vm980_vm14 = vcmask (!%p536_p2), 72704   ;;  %vm1320_vm15 = vcmask (!%p536_p2), 392192  }
   0xd   : > { %3242 = vmatprep.subr.bf16.mxu1 (!%p536_p2), %v3241_v40  ;;  %s5187_s28 = sld [smem:[#allocation4_spill]] (!%p536_p2) }
   0xe   : > { %3244 = vmatpush3.bf16.msra.mxu1 (!%p536_p2), %v3241_v40 }
  0x10   : > { %s5189_s29 = smov (!%p600_p3, %s2997_s29), 3 }
  0x11   : > { %s3796_s30 = sshll.u32 %s5189_s29, 3 }
  0x12   : > { %s603_s20 = scalar_lea.vmem %s5185_s1, %s3796_s30  ;;  %s3688_s1 = smov 4  }
  0x13   : > { %v623_v0 = vld [vmem:[%s603_s20] sm:$0xff]  ;;  %v624_v1 = vld [vmem:[%s603_s20 + $0x8] sm:$0xff]  ;;  %s3689_s20 = smov 1   ;;  %s3908_s29 = scalar_lea.vmem %s5187_s28, %s3796_s30 }
  0x14   : > { %v625_v2 = vmul.f32 %v623_v0, %v623_v0  ;;  %v626_v3 = vmul.f32 %v624_v1, %v624_v1  ;;  %s621_s23 = scalar_lea.vmem %s5181_s18, %s3796_s30 }
  0x16   : > { %v628_v4 = vsel %vm627_vm0, %v625_v2, 0.0  ;;  %v631_v5 = vsel %vm627_vm0, %v626_v3, 0.0 }
  0x17   : > { %629 = vadd.xlane.f32.xlu0 %v628_v4 }
  0x1b   : > { %632 = vadd.xlane.f32.xlu0 %v631_v5 }
  0xa4   : > { %v630_v7 = vpop.xlane.xlu0 %629 }
  0xa5   : > { %v634_v8 = vmax.f32 %v630_v7, 1e-12  ;;  %v990_v7 = vld [vmem:[%s5172_s9 + $0x8] sm:$0xff] }
  0xa7   : > { %3665 = vrsqrt.f32 %v634_v8  ;;  %vm638_vm1 = vcmp.eq.f32.partialorder %v634_v8, inf  ;;  %v641_v13 = vand.u32 2147483648, %v634_v8  ;;  %vm640_vm2 = vcmp.eq.f32.partialorder %v634_v8, 0.0 }
  0xa8   : > { %v633_v9 = vpop.xlane.xlu0 %632 }
  0xa9   : > { %v635_v10 = vmax.f32 %v633_v9, 1e-12 }
  0xab   : > { %3667 = vrsqrt.f32 %v635_v10  ;;  %vm645_vm3 = vcmp.eq.f32.partialorder %v635_v10, inf  ;;  %v648_v20 = vand.u32 2147483648, %v635_v10  ;;  %vm647_vm4 = vcmp.eq.f32.partialorder %v635_v10, 0.0 }
  0xb1   : > { %v3666_v11 = vpop.eup %3665 }
  0xb2   : > { %v637_v12 = vmul.f32 %v3666_v11, %v634_v8  ;;  %v3245_v11 = vpack.c.bf16 %v990_v7, %v989_v6 }
  0xb4   : > { %v639_v15 = vsel %vm638_vm1, %v634_v8, %v637_v12  ;;  %v987_v8 = vld [vmem:[%s5171_s8] sm:$0xff]  ;;  %3246 = vmatprep.subr.bf16.mxu0 %v3245_v11 }
  0xb5   : > { %v3668_v16 = vpop.eup %3667  ;;  %v642_v17 = vsel %vm640_vm2, %v641_v13, %v639_v15  ;;  %v988_v13 = vld [vmem:[%s5171_s8 + $0x8] sm:$0xff] }
  0xb6   : > { %3669 = vrcp.f32 %v642_v17  ;;  %v644_v18 = vmul.f32 %v3668_v16, %v635_v10  ;;  %v657_v19 = vsub.f32 %v642_v17, %v3005_v14  ;;  %v3249_v15 = vpack.c.bf16 %v988_v13, %v987_v8  ;;  %v1724_v8 = vld [vmem:[%s5178_s15 + $0x10] sm:$0xff] }
  0xb8   : > { %v646_v21 = vsel %vm645_vm3, %v635_v10, %v644_v18  ;;  %v659_v22 = vmul.f32 -0.6805555, %v657_v19 }
  0xb9   : > { %v649_v23 = vsel %vm647_vm4, %v648_v20, %v646_v21 }
  0xba   : > { %v658_v24 = vsub.f32 %v649_v23, %v3005_v14  ;;  %v661_v25 = vmul.f32 %v659_v22, %v657_v19  ;;  %3671 = vrcp.f32 %v649_v23  ;;  %v1153_v22 = vld [vmem:[%s5173_s10] sm:$0xff]  ;;  %v1154_v23 = vld [vmem:[%s5173_s10 + $0x8] sm:$0xff] }
  0xbc   : > { %v660_v26 = vmul.f32 -0.6805555, %v658_v24  ;;  %v663_v27 = vmul.f32 1.442695, %v661_v25  ;;  %v1253_v25 = vld [vmem:[%s5175_s12 + $0x8] sm:$0xff] }
  0xbe   : > { %v662_v28 = vmul.f32 %v660_v26, %v658_v24  ;;  %3673 = vpow2.f32 %v663_v27  ;;  %v3253_v24 = vpack.c.bf16 %v1154_v23, %v1153_v22  ;;  %v1259_v26 = vld [vmem:[%s5175_s12 + $0x38] sm:$0xff]  ;;  %v1252_v27 = vld [vmem:[%s5175_s12] sm:$0xff]  ;;  %v1277_v22 = vld [vmem:[%s5175_s12 + $0xc8] sm:$0xff] }
  0xbf   : > { %v1283_v23 = vld [vmem:[%s5175_s12 + $0xf8] sm:$0xff] }
  0xc0   : > { %v3670_v29 = vpop.eup %3669  ;;  %v665_v30 = vmul.f32 1.442695, %v662_v28  ;;  %v3261_v28 = vpack.c.bf16 %v1259_v26, %v1253_v25  ;;  %v1276_v25 = vld [vmem:[%s5175_s12 + $0xc0] sm:$0xff]  ;;  %v1282_v26 = vld [vmem:[%s5175_s12 + $0xf0] sm:$0xff] }
  0xc1   : > { %v851_v31 = vmul.f32 %v3670_v29, %v623_v0  ;;  %v1258_v29 = vld [vmem:[%s5175_s12 + $0x30] sm:$0xff] }
  0xc2   : > { %3675 = vpow2.f32 %v665_v30  ;;  %v1265_v30 = vld [vmem:[%s5175_s12 + $0x68] sm:$0xff]  ;;  %3262 = vmatprep.subr.bf16.mxu1 %v3261_v28  ;;  %v1255_v28 = vld [vmem:[%s5175_s12 + $0x18] sm:$0xff] }
  0xc3   : > { %862 = vrot.lane.b32.xlu0 %v851_v31, %s3685_s24  ;;  %v3810_v32 = vmul.f32 %v851_v31, %v851_v31  ;;  %v858_v41 = vmul.f32 3.8729835, %v851_v31  ;;  %v856_v53 = vmul.f32 1.7320508, %v851_v31 }
  0xc4   : > { %v3672_v33 = vpop.eup %3671 }
  0xc5   : > { %880 = vrot.lane.b32.xlu1 %v3810_v32, %s3685_s24  ;;  %v853_v34 = vmul.f32 %v3672_v33, %v624_v1 }
  0xc7   : > { %v3813_v35 = vmul.f32 %v853_v34, %v853_v34  ;;  %v857_v57 = vmul.f32 1.7320508, %v853_v34  ;;  %v859_v58 = vmul.f32 3.8729835, %v853_v34 }
  0xc8   : > { %v3674_v36 = vpop.eup %3673 }
  0xc9   : > { %3188 = vmatprep.mubr.msk.f32.mxu0 %vm675_vm5, %v3674_v36  ;;  %904 = vrot.lane.b32.xlu0 %v3813_v35, %s3686_s25 }
  0xca   : > { %882 = vrot.lane.b32.xlu1 %v3813_v35, %s3685_s24 }
  0xcc   : > { %v3676_v37 = vpop.eup %3675 }
  0xcd   : > { %3189 = vmatmul.mubr.msk.f32.vlgmr.msra.gmra.mrb[0].mxu0 %vm675_vm5, %v3676_v37 }
  0xce   : > { %870 = vrot.lane.b32.xlu1 %v851_v31, %s3687_s26  ;;  %3248 = vmatpush3.bf16.msra.mxu0 %v3245_v11  ;;  %v1271_v31 = vld [vmem:[%s5175_s12 + $0x98] sm:$0xff] }
  0xcf   : > { %3250 = vmatprep.subr.bf16.mxu0 %v3249_v15  ;;  %v3265_v33 = vpack.c.bf16 %v1271_v31, %v1265_v30  ;;  %v3692_v31 = vmov 0.0  }
  0xd2   : > { %864 = vrot.lane.b32.xlu1 %v853_v34, %s3685_s24 }
  0xd6   : > { %902 = vrot.lane.b32.xlu1 %v3810_v32, %s3686_s25 }
 0x135   : > { %v863_v42 = vpop.permute.xlu0 %862 }
 0x136   : > { %v868_v43 = vmul.f32 %v863_v42, %v858_v41 }
 0x137   : > { %v881_v44 = vpop.permute.xlu1 %880 }
 0x138   : > { %v886_v45 = vadd.f32 %v881_v44, %v3810_v32  ;;  %922 = vrot.lane.b32.xlu0 %v868_v43, %s3688_s1 }
 0x13a   : > { %v888_v46 = vmul.f32 0.5, %v886_v45 }
 0x13b   : > { %v905_v9 = vpop.permute.xlu0 %904 }
 0x13c   : > { %v883_v47 = vpop.permute.xlu1 %882  ;;  %892 = vrot.lane.b32.xlu1 %v888_v46, %s3689_s20  ;;  %v909_v16 = vsub.f32 %v3813_v35, %v905_v9  ;;  %v1727_v9 = vld [vmem:[%s5178_s15 + $0x28] sm:$0xff] }
 0x13d   : > { %v887_v48 = vadd.f32 %v883_v47, %v3813_v35 }
 0x13e   : > { %v911_v21 = vmul.f32 1.9364917, %v909_v16  ;;  %v1730_v16 = vld [vmem:[%s5178_s15 + $0x40] sm:$0xff] }
 0x13f   : > { %v889_v49 = vmul.f32 0.5, %v887_v48 }
 0x140   : > { %v871_v50 = vpop.permute.xlu1 %870 }
 0x141   : > { %v876_v51 = vmul.f32 %v871_v50, %v858_v41  ;;  %894 = vrot.lane.b32.xlu1 %v889_v49, %s3689_s20  ;;  %v3009_v49 = vld [vmem:[%s5170_s7] ss:$0 sm:$0xff] }
 0x143   : > { %930 = vrot.lane.b32.xlu0 %v876_v51, %s3690_s21 }
 0x144   : > { %v865_v52 = vpop.permute.xlu1 %864 }
 0x145   : > { %872 = vrot.lane.b32.xlu1 %v853_v34, %s3687_s26  ;;  %v869_v59 = vmul.f32 %v865_v52, %v859_v58  ;;  %v1264_v34 = vld [vmem:[%s5175_s12 + $0x60] sm:$0xff]  ;;  %v1155_v52 = vld [vmem:[%s5173_s10 + $0x10] sm:$0xff] }
 0x147   : > { %944 = vrot.lane.b32.xlu0 %v876_v51, %s3691_s22 }
 0x148   : > { %v903_v54 = vpop.permute.xlu1 %902 }
 0x149   : > { %v908_v55 = vsub.f32 %v3810_v32, %v903_v54  ;;  %914 = vrot.lane.b32.xlu1 %v856_v53, %s3689_s20  ;;  %v1156_v53 = vld [vmem:[%s5173_s10 + $0x18] sm:$0xff] }
 0x14b   : > { %v910_v56 = vmul.f32 1.9364917, %v908_v55 }
 0x14d   : > { %916 = vrot.lane.b32.xlu1 %v857_v57, %s3689_s20  ;;  %952 = vrot.lane.b32.xlu0 %v910_v56, %s3691_s22 }
 0x151   : > { %924 = vrot.lane.b32.xlu1 %v869_v59, %s3688_s1  ;;  %s609_s1 = scalar_lea.vmem %s5186_s19, %s3796_s30 }
 0x152   : > { %v983_v12 = vld [vmem:[%s609_s1] sm:$0xff]  ;;  %v984_v18 = vld [vmem:[%s609_s1 + $0x8] sm:$0xff] }
 0x153   : > { %3202 = vmatprep.mubr.msk.f32.mxu0 %vm768_vm6, %v983_v12  ;;  %v3938_v12 = vld [vmem:[%s3908_s29 + $0x8] sm:$0xff] }
 0x154   : > { %3203 = vmatmul.mubr.msk.f32.vlgmr.msra.gmra.mrb[2].mxu0 %vm768_vm6, %v984_v18 }
 0x155   : > { %3252 = vmatpush3.bf16.msra.mxu0 %v3249_v15 }
 0x156   : > { %3254 = vmatprep.subr.bf16.mxu0 %v3253_v24 }
 0x1a0   : > { %v3190_v61 = vpop.f32.mrb[0].mxu0 }
 0x1a1   : > { %v754_v62 = vadd.f32 %v3190_v61, %v3006_v60  ;;  %v748_v63 = vpop.f32.mrb[1].mxu0  ;;  %v3257_v61 = vpack.c.bf16 %v1156_v53, %v1155_v52  ;;  %v1930_v53 = vld [vmem:[%s5179_s16 + $0x130] sm:$0xff] }
 0x1a2   : > { %v749_v0 = vadd.f32 %v3006_v60, %v748_v63 }
 0x1a3   : > { %v758_v2 = vmax.f32 %v754_v62, 0.0  ;;  %v3913_v62 = vld [vmem:[%s3908_s29] sm:$0xff] }
 0x1a4   : > { %v757_v1 = vmax.f32 %v749_v0, 0.0  ;;  %v1560_v0 = vld [vmem:[%s5177_s14 + $0x10] sm:$0xff] }
 0x1a6   : > { %3195 = vmatprep.mubr.msk.f32.mxu1 %vm768_vm6, %v757_v1  ;;  %v1563_v1 = vld [vmem:[%s5177_s14 + $0x28] sm:$0xff] }
 0x1a7   : > { %3196 = vmatmul.mubr.msk.f32.vlgmr.msra.gmra.mrb[0].mxu1 %vm768_vm6, %v758_v2  ;;  %v3301_v7 = vpack.c.bf16 %v1563_v1, %v1560_v0  ;;  %v1254_v1 = vld [vmem:[%s5175_s12 + $0x10] sm:$0xff] }
 0x1a8   : > { %1391 = vmatprep.mubr.f32.mxu1 %v3692_v31 }
 0x1aa   : > { %v923_v39 = vpop.permute.xlu0 %922 }
 0x1ae   : > { %v893_v3 = vpop.permute.xlu1 %892 }
 0x1af   : > { %v898_v4 = vsub.f32 %v3810_v32, %v893_v3  ;;  %v3263_v32 = vpack.c.bf16 %v1258_v29, %v1252_v27  ;;  %v3271_v27 = vpack.c.bf16 %v1282_v26, %v1276_v25  ;;  %v1261_v29 = vld [vmem:[%s5175_s12 + $0x48] sm:$0xff]  ;;  %v1263_v26 = vld [vmem:[%s5175_s12 + $0x58] sm:$0xff] }
 0x1b0   : > { %v3273_v30 = vpack.c.bf16 %v1261_v29, %v1255_v28  ;;  %v1257_v25 = vld [vmem:[%s5175_s12 + $0x28] sm:$0xff] }
 0x1b1   : > { %v900_v5 = vmul.f32 2.236068, %v898_v4  ;;  %3264 = vmatpush1.bf16.msra.mxu1 %v3263_v32  ;;  %v1895_v32 = vld [vmem:[%s5179_s16 + $0x18] sm:$0xff]  ;;  %v3285_v29 = vpack.c.bf16 %v1263_v26, %v1257_v25  ;;  %v1928_v25 = vld [vmem:[%s5179_s16 + $0x120] sm:$0xff]  ;;  %v1934_v26 = vld [vmem:[%s5179_s16 + $0x150] sm:$0xff] }
 0x1b2   : > { %3266 = vmatprep.subr.bf16.mxu1 %v3265_v33  ;;  %v1901_v33 = vld [vmem:[%s5179_s16 + $0x48] sm:$0xff] }
 0x1b3   : > { %v895_v10 = vpop.permute.xlu1 %894  ;;  %938 = vrot.lane.b32.xlu1 %v900_v5, %s3690_s21 }
 0x1b4   : > { %v899_v14 = vsub.f32 %v3813_v35, %v895_v10  ;;  %v1270_v35 = vld [vmem:[%s5175_s12 + $0x90] sm:$0xff] }
 0x1b5   : > { %v3267_v36 = vpack.c.bf16 %v1270_v35, %v1264_v34  ;;  %v931_v41 = vpop.permute.xlu0 %930  ;;  %v3393_v34 = vpack.c.bf16 %v1901_v33, %v1895_v32  ;;  %v1894_v35 = vld [vmem:[%s5179_s16 + $0x10] sm:$0xff] }
 0x1b6   : > { %v901_v17 = vmul.f32 2.236068, %v899_v14  ;;  %v3313_v14 = vpack.c.bf16 %v1727_v9, %v1724_v8  ;;  %v1262_v32 = vld [vmem:[%s5175_s12 + $0x50] sm:$0xff] }
 0x1b7   : > { %v873_v19 = vpop.permute.xlu1 %872  ;;  %3268 = vmatpush1.bf16.msra.mxu1 %v3267_v36  ;;  %v1900_v36 = vld [vmem:[%s5179_s16 + $0x40] sm:$0xff] }
 0x1b8   : > { %v877_v20 = vmul.f32 %v873_v19, %v859_v58  ;;  %940 = vrot.lane.b32.xlu0 %v901_v17, %s3690_s21  ;;  %v1733_v17 = vld [vmem:[%s5178_s15 + $0x58] sm:$0xff] }
 0x1b9   : > { %v945_v47 = vpop.permute.xlu0 %944 }
 0x1ba   : > { %932 = vrot.lane.b32.xlu1 %v877_v20, %s3690_s21 }
 0x1bb   : > { %v915_v37 = vpop.permute.xlu1 %914 }
 0x1bc   : > { %954 = vrot.lane.b32.xlu0 %v911_v21, %s3691_s22  ;;  %v959_v40 = vsel %vm958_vm7, 1.0, %v915_v37 }
 0x1bd   : > { %v962_v43 = vsel %vm961_vm8, %v959_v40, %v915_v37  ;;  %v1906_v40 = vld [vmem:[%s5179_s16 + $0x70] sm:$0xff] }
 0x1be   : > { %946 = vrot.lane.b32.xlu1 %v877_v20, %s3691_s22  ;;  %v964_v45 = vsel %vm627_vm0, %v962_v43, %v915_v37  ;;  %v3317_v20 = vpack.c.bf16 %v1733_v17, %v1730_v16  ;;  %v3395_v37 = vpack.c.bf16 %v1900_v36, %v1894_v35  ;;  %v1279_v16 = vld [vmem:[%s5175_s12 + $0xd8] sm:$0xff]  ;;  %v1285_v17 = vld [vmem:[%s5175_s12 + $0x108] sm:$0xff] }
 0x1bf   : > { %v917_v38 = vpop.permute.xlu1 %916  ;;  %v967_v50 = vsel %vm966_vm9, %v964_v45, %v923_v39  ;;  %v953_v57 = vpop.permute.xlu0 %952  ;;  %v1913_v39 = vld [vmem:[%s5179_s16 + $0xa8] sm:$0xff]  ;;  %v1275_v36 = vld [vmem:[%s5175_s12 + $0xb8] sm:$0xff] }
 0x1c0   : > { %v960_v44 = vsel %vm958_vm7, 1.0, %v917_v38  ;;  %v970_v59 = vsel %vm969_vm10, %v967_v50, %v931_v41  ;;  %v1925_v45 = vld [vmem:[%s5179_s16 + $0x108] sm:$0xff]  ;;  %v1931_v50 = vld [vmem:[%s5179_s16 + $0x138] sm:$0xff] }
 0x1c1   : > { %v963_v48 = vsel %vm961_vm8, %v960_v44, %v917_v38  ;;  %v1919_v44 = vld [vmem:[%s5179_s16 + $0xd8] sm:$0xff]  ;;  %v1269_v35 = vld [vmem:[%s5175_s12 + $0x88] sm:$0xff] }
 0x1c2   : > { %v965_v56 = vsel %vm627_vm0, %v963_v48, %v917_v38  ;;  %v1907_v38 = vld [vmem:[%s5179_s16 + $0x78] sm:$0xff]  ;;  %v3401_v48 = vpack.c.bf16 %v1925_v45, %v1919_v44  ;;  %vm2909_vm0 = vcmask 326656  }
 0x1c3   : > { %v925_v42 = vpop.permute.xlu1 %924  ;;  %v3397_v41 = vpack.c.bf16 %v1913_v39, %v1907_v38  ;;  %v3289_v39 = vpack.c.bf16 %v1275_v36, %v1269_v35  ;;  %v1959_v35 = vld [vmem:[%s5179_s16 + $0x218] sm:$0xff] }
 0x1c4   : > { %v968_v2 = vsel %vm966_vm9, %v965_v56, %v925_v42  ;;  %v1912_v42 = vld [vmem:[%s5179_s16 + $0xa0] sm:$0xff]  ;;  %v1943_v56 = vld [vmem:[%s5179_s16 + $0x198] sm:$0xff] }
 0x1c5   : > { %v3399_v43 = vpack.c.bf16 %v1912_v42, %v1906_v40  ;;  %v1268_v40 = vld [vmem:[%s5175_s12 + $0x80] sm:$0xff]  ;;  %v1281_v42 = vld [vmem:[%s5175_s12 + $0xe8] sm:$0xff] }
 0x225   : > { %v939_v46 = vpop.permute.xlu1 %938 }
 0x226   : > { %v973_v63 = vsel %vm972_vm11, %v970_v59, %v939_v46  ;;  %v1918_v46 = vld [vmem:[%s5179_s16 + $0xd0] sm:$0xff] }
 0x227   : > { %v976_v5 = vsel %vm975_vm13, %v973_v63, %v945_v47  ;;  %v1924_v47 = vld [vmem:[%s5179_s16 + $0x100] sm:$0xff]  ;;  %v1942_v59 = vld [vmem:[%s5179_s16 + $0x190] sm:$0xff] }
 0x228   : > { %v978_v13 = vsel %vm675_vm5, %v976_v5, %v953_v57  ;;  %v1949_v57 = vld [vmem:[%s5179_s16 + $0x1c8] sm:$0xff]  ;;  %v3018_v63 = vld [vmem:[%s5174_s11] ss:$0 sm:$0xff] }
 0x229   : > { %v3950_v19 = vsel %vm980_vm14, %v978_v13, 0.0  ;;  %v1273_v5 = vld [vmem:[%s5175_s12 + $0xa8] sm:$0xff]  ;;  %v1266_v13 = vld [vmem:[%s5175_s12 + $0x70] sm:$0xff] }
 0x22a   : > { %v941_v3 = vpop.permute.xlu0 %940 }
 0x22c   : > { %v933_v54 = vpop.permute.xlu1 %932 }
 0x22d   : > { %v971_v4 = vsel %vm969_vm10, %v968_v2, %v933_v54  ;;  %v1936_v54 = vld [vmem:[%s5179_s16 + $0x160] sm:$0xff] }
 0x22e   : > { %v974_v10 = vsel %vm972_vm11, %v971_v4, %v941_v3  ;;  %v955_v15 = vpop.permute.xlu0 %954  ;;  %v1260_v2 = vld [vmem:[%s5175_s12 + $0x40] sm:$0xff]  ;;  %v1267_v4 = vld [vmem:[%s5175_s12 + $0x78] sm:$0xff] }
 0x230   : > { %v947_v6 = vpop.permute.xlu1 %946 }
 0x231   : > { %v977_v11 = vsel %vm975_vm13, %v974_v10, %v947_v6 }
 0x232   : > { %v979_v18 = vsel %vm675_vm5, %v977_v11, %v955_v15  ;;  %v3277_v11 = vpack.c.bf16 %v1273_v5, %v1267_v4  ;;  %v1899_v4 = vld [vmem:[%s5179_s16 + $0x38] sm:$0xff] }
 0x233   : > { %v3954_v21 = vsel %vm980_vm14, %v979_v18, 0.0 }
 0x27a   : > { %v3197_v51 = vpop.f32.mrb[0].mxu1 }
 0x27b   : > { %v841_v55 = vpop.f32.mrb[1].mxu1  ;;  %v847_v60 = vadd.f32 %v3197_v51, %v3009_v49  ;;  %v1937_v51 = vld [vmem:[%s5179_s16 + $0x168] sm:$0xff] }
 0x27c   : > { %v842_v58 = vadd.f32 %v3009_v49, %v841_v55  ;;  %v3403_v49 = vpack.c.bf16 %v1924_v47, %v1918_v46  ;;  %v3405_v52 = vpack.c.bf16 %v1937_v51, %v1931_v50  ;;  %v3407_v55 = vpack.c.bf16 %v1936_v54, %v1930_v53  ;;  %v1280_v46 = vld [vmem:[%s5175_s12 + $0xe0] sm:$0xff]  ;;  %v1286_v47 = vld [vmem:[%s5175_s12 + $0x110] sm:$0xff]  ;;  %v1561_v53 = vld [vmem:[%s5177_s14 + $0x18] sm:$0xff] }
 0x27d   : > { %v3295_v50 = vpack.c.bf16 %v1286_v47, %v1280_v46  ;;  %v1723_v54 = vld [vmem:[%s5178_s15 + $0x8] sm:$0xff] }
 0x27e   : > { %3209 = vmatprep.mubr.msk.f32.mxu0 %vm768_vm6, %v842_v58  ;;  %v3409_v58 = vpack.c.bf16 %v1949_v57, %v1943_v56 }
 0x27f   : > { %3210 = vmatmul.mubr.msk.f32.vlgmr.msra.gmra.mrb[2].mxu0 %vm768_vm6, %v847_v60  ;;  %v1948_v60 = vld [vmem:[%s5179_s16 + $0x1c0] sm:$0xff] }
 0x280   : > { %3256 = vmatpush3.bf16.msra.mxu0 %v3253_v24  ;;  %3220 = vmatprep.mubr.msk.f32.mxu0 %vm1157_vm12, %v3913_v62  ;;  %v3269_v24 = vpack.c.bf16 %v1283_v23, %v1277_v22  ;;  %v3281_v22 = vpack.c.bf16 %v1285_v17, %v1279_v16  ;;  %v1278_v23 = vld [vmem:[%s5175_s12 + $0xd0] sm:$0xff] }
 0x281   : > { %3258 = vmatprep.subr.bf16.mxu0 %v3257_v61 }
 0x282   : > { %3270 = vmatprep.subr.bf16.mxu1 %v3269_v24  ;;  %v1284_v24 = vld [vmem:[%s5175_s12 + $0x100] sm:$0xff] }
 0x283   : > { %3272 = vmatpush1.bf16.msra.mxu1 %v3271_v27  ;;  %v3283_v27 = vpack.c.bf16 %v1284_v24, %v1278_v23 }
 0x284   : > { %3260 = vmatpush3.bf16.msra.mxu0 %v3257_v61  ;;  %3274 = vmatprep.subr.bf16.mxu1 %v3273_v30  ;;  %v3411_v61 = vpack.c.bf16 %v1948_v60, %v1942_v59  ;;  %v1256_v30 = vld [vmem:[%s5175_s12 + $0x20] sm:$0xff]  ;;  %v1725_v59 = vld [vmem:[%s5178_s15 + $0x18] sm:$0xff] }
 0x285   : > { %3302 = vmatprep.subr.bf16.mxu0 %v3301_v7  ;;  %v3287_v38 = vpack.c.bf16 %v1262_v32, %v1256_v30  ;;  %v1729_v60 = vld [vmem:[%s5178_s15 + $0x38] sm:$0xff]  ;;  %v1940_v30 = vld [vmem:[%s5179_s16 + $0x180] sm:$0xff]  ;;  %v1946_v32 = vld [vmem:[%s5179_s16 + $0x1b0] sm:$0xff] }
 0x286   : > { %v3339_v36 = vpack.c.bf16 %v1946_v32, %v1940_v30 }
 0x287   : > { %3221 = vmatmul.mubr.msk.f32.vlgmr.msra.gmra.mrb[2].mxu0 %vm1157_vm12, %v3938_v12 }
 0x288   : > { %3304 = vmatpush3.bf16.msra.mxu0 %v3301_v7  ;;  %3227 = vmatprep.mubr.msk.f32.mxu0 %vm768_vm6, %v3950_v19  ;;  %v3275_v7 = vpack.c.bf16 %v1260_v2, %v1254_v1  ;;  %v1728_v1 = vld [vmem:[%s5178_s15 + $0x30] sm:$0xff]  ;;  %v1731_v2 = vld [vmem:[%s5178_s15 + $0x48] sm:$0xff] }
 0x289   : > { %3314 = vmatprep.subr.bf16.mxu0 %v3313_v14  ;;  %v3311_v5 = vpack.c.bf16 %v1731_v2, %v1728_v1  ;;  %v1982_v1 = vld [vmem:[%s5179_s16 + $0x2d0] sm:$0xff]  ;;  %v1979_v2 = vld [vmem:[%s5179_s16 + $0x2b8] sm:$0xff] }
 0x28b   : > { %3228 = vmatmul.mubr.msk.f32.vlgmr.msra.gmra.mrb[4].mxu0 %vm768_vm6, %v3954_v21 }
 0x28c   : > { %3316 = vmatpush3.bf16.msra.mxu0 %v3313_v14  ;;  %3238 = vmatprep.mubr.msk.f32.mxu0 %vm1157_vm12, %v3913_v62  ;;  %v1272_v14 = vld [vmem:[%s5175_s12 + $0xa0] sm:$0xff] }
 0x28d   : > { %3318 = vmatprep.subr.bf16.mxu0 %v3317_v20  ;;  %v3279_v18 = vpack.c.bf16 %v1272_v14, %v1266_v13  ;;  %v1904_v13 = vld [vmem:[%s5179_s16 + $0x60] sm:$0xff]  ;;  %v1910_v14 = vld [vmem:[%s5179_s16 + $0x90] sm:$0xff] }
 0x28e   : > { %v3327_v16 = vpack.c.bf16 %v1910_v14, %v1904_v13  ;;  %v1994_v13 = vld [vmem:[%s5179_s16 + $0x330] sm:$0xff]  ;;  %v1991_v14 = vld [vmem:[%s5179_s16 + $0x318] sm:$0xff] }
 0x290   : > { %3320 = vmatpush3.bf16.msra.mxu0 %v3317_v20 }
 0x291   : > { %3394 = vmatprep.subr.bf16.mxu0 %v3393_v34 }
 0x293   : > { %3239 = vmatmul.mubr.msk.f32.vlgmr.msra.gmra.mrb[6].mxu0 %vm1157_vm12, %v3938_v12 }
 0x294   : > { %3396 = vmatpush1.bf16.msra.mxu0 %v3395_v37 }
 0x295   : > { %3398 = vmatprep.subr.bf16.mxu0 %v3397_v41  ;;  %v1274_v41 = vld [vmem:[%s5175_s12 + $0xb0] sm:$0xff] }
 0x296   : > { %v3291_v44 = vpack.c.bf16 %v1274_v41, %v1268_v40  ;;  %v1958_v40 = vld [vmem:[%s5179_s16 + $0x210] sm:$0xff]  ;;  %v1955_v41 = vld [vmem:[%s5179_s16 + $0x1f8] sm:$0xff] }
 0x298   : > { %3400 = vmatpush1.bf16.msra.mxu0 %v3399_v43  ;;  %v1287_v43 = vld [vmem:[%s5175_s12 + $0x118] sm:$0xff] }
 0x299   : > { %3402 = vmatprep.subr.bf16.mxu0 %v3401_v48  ;;  %v3293_v45 = vpack.c.bf16 %v1287_v43, %v1281_v42  ;;  %v1559_v48 = vld [vmem:[%s5177_s14 + $0x8] sm:$0xff] }
 0x29a   : > { %v1961_v43 = vld [vmem:[%s5179_s16 + $0x228] sm:$0xff] }
 0x29b   : > { %v3413_v46 = vpack.c.bf16 %v1961_v43, %v1955_v41  ;;  %v2014_v43 = vld [vmem:[%s5179_s16 + $0x3d0] sm:$0xff] }
 0x29c   : > { %3404 = vmatpush1.bf16.msra.mxu0 %v3403_v49  ;;  %v1562_v49 = vld [vmem:[%s5177_s14 + $0x20] sm:$0xff] }
 0x29d   : > { %3406 = vmatprep.subr.bf16.mxu0 %v3405_v52  ;;  %v3297_v51 = vpack.c.bf16 %v1562_v49, %v1559_v48  ;;  %v1558_v52 = vld [vmem:[%s5177_s14] sm:$0xff]  ;;  %v1965_v48 = vld [vmem:[%s5179_s16 + $0x248] sm:$0xff]  ;;  %v1971_v49 = vld [vmem:[%s5179_s16 + $0x278] sm:$0xff] }
 0x29e   : > { %v3299_v56 = vpack.c.bf16 %v1561_v53, %v1558_v52  ;;  %v1970_v52 = vld [vmem:[%s5179_s16 + $0x270] sm:$0xff]  ;;  %v1967_v53 = vld [vmem:[%s5179_s16 + $0x258] sm:$0xff] }
 0x2a0   : > { %3408 = vmatpush1.bf16.msra.mxu0 %v3407_v55  ;;  %v1726_v55 = vld [vmem:[%s5178_s15 + $0x20] sm:$0xff] }
 0x2a1   : > { %3410 = vmatprep.subr.bf16.mxu0 %v3409_v58  ;;  %v3305_v57 = vpack.c.bf16 %v1726_v55, %v1723_v54  ;;  %v1722_v58 = vld [vmem:[%s5178_s15] sm:$0xff]  ;;  %v1973_v55 = vld [vmem:[%s5179_s16 + $0x288] sm:$0xff] }
 0x2a4   : > { %3412 = vmatpush1.bf16.msra.mxu0 %v3411_v61  ;;  %v1732_v61 = vld [vmem:[%s5178_s15 + $0x50] sm:$0xff] }
 0x2a5   : > { %3414 = vmatprep.subr.bf16.mxu0 %v3413_v46 }
 0x35a   : > { %v3222_v0 = vpop.f32.mrb[2].mxu0 }
 0x35b   : > { %v1230_v3 = vpop.f32.mrb[3].mxu0  ;;  %v1249_v8 = vadd.f32 %v3222_v0, %v3018_v63  ;;  %v3309_v0 = vpack.c.bf16 %v1732_v61, %v1729_v60  ;;  %v1977_v60 = vld [vmem:[%s5179_s16 + $0x2a8] sm:$0xff]  ;;  %v1983_v61 = vld [vmem:[%s5179_s16 + $0x2d8] sm:$0xff] }
 0x35c   : > { %v1248_v6 = vadd.f32 %v3018_v63, %v1230_v3  ;;  %v3307_v63 = vpack.c.bf16 %v1725_v59, %v1722_v58  ;;  %v1893_v3 = vld [vmem:[%s5179_s16 + $0x8] sm:$0xff]  ;;  %v3417_v58 = vpack.c.bf16 %v1973_v55, %v1967_v53  ;;  %v2026_v55 = vld [vmem:[%s5179_s16 + $0x430] sm:$0xff] }
 0x35d   : > { %v1251_v20 = vmax.f32 %v1249_v8, 0.0  ;;  %v1898_v8 = vld [vmem:[%s5179_s16 + $0x30] sm:$0xff] }
 0x35e   : > { %v4056_v9 = vmax.f32 %v1248_v6, 0.0  ;;  %v3229_v10 = vpop.f32.mrb[4].mxu0  ;;  %v3321_v6 = vpack.c.bf16 %v1899_v4, %v1893_v3  ;;  %v1985_v4 = vld [vmem:[%s5179_s16 + $0x2e8] sm:$0xff] }
 0x35f   : > { %v1713_v15 = vpop.f32.mrb[5].mxu0 }
 0x360   : > { %3019 = vmatmul.mubr.msk.f32.vlgmr.msra.gmra.mrb[2].mxu1 %vm1320_vm15, %v4056_v9 }
 0x361   : > { %3276 = vmatpush1.bf16.msra.mxu1 %v3275_v7  ;;  %1397 = vmatprep.mubr.f32.mxu1 %v3692_v31  ;;  %v1892_v7 = vld [vmem:[%s5179_s16] sm:$0xff] }
 0x362   : > { %3278 = vmatprep.subr.bf16.mxu1 %v3277_v11 }
 0x364   : > { %3020 = vmatmul.mubr.msk.f32.gmra.mrb[4].mxu1 %vm1320_vm15, %v1251_v20 }
 0x365   : > { %3280 = vmatpush1.bf16.msra.mxu1 %v3279_v18  ;;  %1468 = vmatprep.mubr.f32.mxu1 %v3692_v31  ;;  %v1916_v18 = vld [vmem:[%s5179_s16 + $0xc0] sm:$0xff] }
 0x366   : > { %v3240_v28 = vpop.f32.mrb[6].mxu0  ;;  %3282 = vmatprep.subr.bf16.mxu1 %v3281_v22  ;;  %v1929_v22 = vld [vmem:[%s5179_s16 + $0x128] sm:$0xff] }
 0x367   : > { %v4093_v33 = vmul.f32 %v3240_v28, %v3229_v10  ;;  %v1877_v34 = vpop.f32.mrb[7].mxu0  ;;  %v3323_v10 = vpack.c.bf16 %v1898_v8, %v1892_v7  ;;  %v3335_v28 = vpack.c.bf16 %v1934_v26, %v1928_v25  ;;  %v3421_v7 = vpack.c.bf16 %v1985_v4, %v1979_v2  ;;  %v2006_v25 = vld [vmem:[%s5179_s16 + $0x390] sm:$0xff]  ;;  %v2003_v26 = vld [vmem:[%s5179_s16 + $0x378] sm:$0xff] }
 0x368   : > { %v4101_v37 = vmul.f32 %v1877_v34, %v1713_v15  ;;  %v1917_v15 = vld [vmem:[%s5179_s16 + $0xc8] sm:$0xff]  ;;  %v2038_v4 = vld [vmem:[%s5179_s16 + $0x490] sm:$0xff] }
 0x369   : > { %3284 = vmatpush1.bf16.msra.mxu1 %v3283_v27  ;;  %v1941_v27 = vld [vmem:[%s5179_s16 + $0x188] sm:$0xff] }
 0x36a   : > { %3286 = vmatprep.subr.bf16.mxu1 %v3285_v29  ;;  %v1953_v34 = vld [vmem:[%s5179_s16 + $0x1e8] sm:$0xff] }
 0x36c   : > { %3021 = vmatmul.mubr.msk.f32.vlgmr.msra.gmra.mrb[6].mxu1 %vm1320_vm15, %v4056_v9 }
 0x36d   : > { %3288 = vmatpush1.bf16.msra.mxu1 %v3287_v38  ;;  %1474 = vmatprep.mubr.f32.mxu1 %v3692_v31  ;;  %v3341_v38 = vpack.c.bf16 %v1959_v35, %v1953_v34  ;;  %v2013_v34 = vld [vmem:[%s5179_s16 + $0x3c8] sm:$0xff]  ;;  %v2019_v35 = vld [vmem:[%s5179_s16 + $0x3f8] sm:$0xff] }
 0x36e   : > { %3290 = vmatprep.subr.bf16.mxu1 %v3289_v39  ;;  %v1952_v39 = vld [vmem:[%s5179_s16 + $0x1e0] sm:$0xff] }
 0x36f   : > { %v3343_v42 = vpack.c.bf16 %v1958_v40, %v1952_v39  ;;  %v2018_v39 = vld [vmem:[%s5179_s16 + $0x3f0] sm:$0xff]  ;;  %v2015_v40 = vld [vmem:[%s5179_s16 + $0x3d8] sm:$0xff] }
 0x370   : > { %3022 = vmatmul.mubr.msk.f32.gmra.mrb[8].mxu1 %vm1320_vm15, %v1251_v20 }
 0x371   : > { %3292 = vmatpush1.bf16.msra.mxu1 %v3291_v44  ;;  %1545 = vmatprep.mubr.f32.mxu1 %v3692_v31  ;;  %v1954_v44 = vld [vmem:[%s5179_s16 + $0x1f0] sm:$0xff] }
 0x372   : > { %3294 = vmatprep.subr.bf16.mxu1 %v3293_v45  ;;  %v1960_v45 = vld [vmem:[%s5179_s16 + $0x220] sm:$0xff] }
 0x373   : > { %v3415_v47 = vpack.c.bf16 %v1960_v45, %v1954_v44  ;;  %v2020_v44 = vld [vmem:[%s5179_s16 + $0x400] sm:$0xff] }
 0x374   : > { %v3435_v46 = vpack.c.bf16 %v2020_v44, %v2014_v43  ;;  %v2080_v43 = vld [vmem:[%s5179_s16 + $0x5e0] sm:$0xff] }
 0x375   : > { %3296 = vmatpush1.bf16.msra.mxu1 %v3295_v50  ;;  %v3345_v50 = vpack.c.bf16 %v1971_v49, %v1965_v48  ;;  %3416 = vmatpush1.bf16.msra.mxu0 %v3415_v47  ;;  %v2025_v47 = vld [vmem:[%s5179_s16 + $0x428] sm:$0xff]  ;;  %v2031_v48 = vld [vmem:[%s5179_s16 + $0x458] sm:$0xff] }
 0x376   : > { %3298 = vmatprep.subr.bf16.mxu1 %v3297_v51  ;;  %v1964_v51 = vld [vmem:[%s5179_s16 + $0x240] sm:$0xff]  ;;  %3418 = vmatprep.subr.bf16.mxu0 %v3417_v58  ;;  %v3365_v49 = vpack.c.bf16 %v2031_v48, %v2025_v47  ;;  %v2091_v47 = vld [vmem:[%s5179_s16 + $0x638] sm:$0xff] }
 0x377   : > { %v3347_v54 = vpack.c.bf16 %v1970_v52, %v1964_v51  ;;  %v2030_v51 = vld [vmem:[%s5179_s16 + $0x450] sm:$0xff]  ;;  %v2027_v52 = vld [vmem:[%s5179_s16 + $0x438] sm:$0xff] }
 0x378   : > { %3023 = vmatmul.mubr.msk.f32.vlgmr.msra.gmra.mrb[10].mxu1 %vm1320_vm15, %v4056_v9  ;;  %v1905_v9 = vld [vmem:[%s5179_s16 + $0x68] sm:$0xff] }
 0x379   : > { %3300 = vmatpush1.bf16.msra.mxu1 %v3299_v56  ;;  %1551 = vmatprep.mubr.f32.mxu1 %v3692_v31  ;;  %v1966_v56 = vld [vmem:[%s5179_s16 + $0x250] sm:$0xff] }
 0x37a   : > { %3306 = vmatprep.subr.bf16.mxu1 %v3305_v57  ;;  %v1972_v57 = vld [vmem:[%s5179_s16 + $0x280] sm:$0xff] }
 0x37b   : > { %v3419_v59 = vpack.c.bf16 %v1972_v57, %v1966_v56  ;;  %v2032_v56 = vld [vmem:[%s5179_s16 + $0x460] sm:$0xff] }
 0x37c   : > { %3024 = vmatmul.mubr.msk.f32.gmra.mrb[12].mxu1 %vm1320_vm15, %v1251_v20  ;;  %v1922_v20 = vld [vmem:[%s5179_s16 + $0xf0] sm:$0xff]  ;;  %v3439_v58 = vpack.c.bf16 %v2032_v56, %v2026_v55 }
 0x37d   : > { %1634 = vmatprep.mubr.f32.mxu1 %v3692_v31  ;;  %v3331_v23 = vpack.c.bf16 %v1922_v20, %v1916_v18  ;;  %3420 = vmatpush1.bf16.msra.mxu0 %v3419_v59  ;;  %v2037_v59 = vld [vmem:[%s5179_s16 + $0x488] sm:$0xff] }
 0x37e   : > { %3422 = vmatprep.subr.bf16.mxu0 %v3421_v7 }
 0x380   : > { %3025 = vmatmul.mubr.msk.f32.vlgmr.msra.gmra.mrb[14].mxu1 %vm768_vm6, %v3950_v19  ;;  %v1911_v19 = vld [vmem:[%s5179_s16 + $0x98] sm:$0xff] }
 0x381   : > { %3308 = vmatpush1.bf16.msra.mxu1 %v3307_v63  ;;  %1640 = vmatprep.mubr.f32.mxu1 %v3692_v31  ;;  %v3325_v11 = vpack.c.bf16 %v1911_v19, %v1905_v9  ;;  %v3349_v63 = vpack.c.bf16 %v1983_v61, %v1977_v60  ;;  %v1989_v9 = vld [vmem:[%s5179_s16 + $0x308] sm:$0xff]  ;;  %v1995_v19 = vld [vmem:[%s5179_s16 + $0x338] sm:$0xff] }
 0x382   : > { %3310 = vmatprep.subr.bf16.mxu1 %v3309_v0  ;;  %v1976_v0 = vld [vmem:[%s5179_s16 + $0x2a0] sm:$0xff]  ;;  %v2043_v60 = vld [vmem:[%s5179_s16 + $0x4b8] sm:$0xff] }
 0x383   : > { %v3351_v3 = vpack.c.bf16 %v1982_v1, %v1976_v0  ;;  %v3369_v61 = vpack.c.bf16 %v2043_v60, %v2037_v59  ;;  %v2042_v0 = vld [vmem:[%s5179_s16 + $0x4b0] sm:$0xff]  ;;  %v2039_v1 = vld [vmem:[%s5179_s16 + $0x498] sm:$0xff] }
 0x384   : > { %3026 = vmatmul.mubr.msk.f32.gmra.mrb[16].mxu1 %vm768_vm6, %v3954_v21  ;;  %v1923_v21 = vld [vmem:[%s5179_s16 + $0xf8] sm:$0xff] }
 0x385   : > { %3312 = vmatpush1.bf16.msra.mxu1 %v3311_v5  ;;  %1798 = vmatprep.mubr.f32.mxu1 %v3692_v31  ;;  %v3329_v17 = vpack.c.bf16 %v1923_v21, %v1917_v15  ;;  %v1978_v5 = vld [vmem:[%s5179_s16 + $0x2b0] sm:$0xff]  ;;  %v1997_v21 = vld [vmem:[%s5179_s16 + $0x348] sm:$0xff] }
 0x386   : > { %3322 = vmatprep.subr.bf16.mxu1 %v3321_v6  ;;  %v1984_v6 = vld [vmem:[%s5179_s16 + $0x2e0] sm:$0xff]  ;;  %v3425_v18 = vpack.c.bf16 %v1997_v21, %v1991_v14  ;;  %v2050_v21 = vld [vmem:[%s5179_s16 + $0x4f0] sm:$0xff] }
 0x387   : > { %v3423_v8 = vpack.c.bf16 %v1984_v6, %v1978_v5  ;;  %v2044_v5 = vld [vmem:[%s5179_s16 + $0x4c0] sm:$0xff] }
 0x388   : > { %3029 = vmatmul.mubr.msk.f32.vlgmr.msra.gmra.mrb[18].mxu1 %vm1157_vm12, %v3913_v62  ;;  %v1935_v62 = vld [vmem:[%s5179_s16 + $0x158] sm:$0xff]  ;;  %v3443_v7 = vpack.c.bf16 %v2044_v5, %v2038_v4  ;;  %v2084_v5 = vld [vmem:[%s5179_s16 + $0x600] sm:$0xff] }
 0x389   : > { %1804 = vmatprep.mubr.f32.mxu1 %v3692_v31  ;;  %3324 = vmatpush1.bf16.msra.mxu1 %v3323_v10  ;;  %v3333_v24 = vpack.c.bf16 %v1935_v62, %v1929_v22  ;;  %v3353_v10 = vpack.c.bf16 %v1995_v19, %v1989_v9  ;;  %v2001_v22 = vld [vmem:[%s5179_s16 + $0x368] sm:$0xff]  ;;  %v2007_v62 = vld [vmem:[%s5179_s16 + $0x398] sm:$0xff] }
 0x38a   : > { %3326 = vmatprep.subr.bf16.mxu1 %v3325_v11  ;;  %v1988_v11 = vld [vmem:[%s5179_s16 + $0x300] sm:$0xff]  ;;  %3424 = vmatpush1.bf16.msra.mxu0 %v3423_v8  ;;  %v2049_v8 = vld [vmem:[%s5179_s16 + $0x4e8] sm:$0xff]  ;;  %v2055_v9 = vld [vmem:[%s5179_s16 + $0x518] sm:$0xff] }
 0x38b   : > { %v3355_v15 = vpack.c.bf16 %v1994_v13, %v1988_v11  ;;  %3426 = vmatprep.subr.bf16.mxu0 %v3425_v18  ;;  %v3373_v19 = vpack.c.bf16 %v2055_v9, %v2049_v8  ;;  %v2054_v11 = vld [vmem:[%s5179_s16 + $0x510] sm:$0xff]  ;;  %v2051_v13 = vld [vmem:[%s5179_s16 + $0x4f8] sm:$0xff]  ;;  %v2092_v8 = vld [vmem:[%s5179_s16 + $0x640] sm:$0xff] }
 0x38c   : > { %3030 = vmatmul.mubr.msk.f32.gmra.mrb[20].mxu1 %vm1157_vm12, %v3938_v12  ;;  %v1947_v12 = vld [vmem:[%s5179_s16 + $0x1b8] sm:$0xff]  ;;  %v2097_v9 = vld [vmem:[%s5179_s16 + $0x668] sm:$0xff] }
 0x38d   : > { %3328 = vmatpush1.bf16.msra.mxu1 %v3327_v16  ;;  %v3337_v29 = vpack.c.bf16 %v1947_v12, %v1941_v27  ;;  %v1990_v16 = vld [vmem:[%s5179_s16 + $0x310] sm:$0xff]  ;;  %v2009_v12 = vld [vmem:[%s5179_s16 + $0x3a8] sm:$0xff] }
 0x38e   : > { %3330 = vmatprep.subr.bf16.mxu1 %v3329_v17  ;;  %v1996_v17 = vld [vmem:[%s5179_s16 + $0x340] sm:$0xff]  ;;  %v3429_v30 = vpack.c.bf16 %v2009_v12, %v2003_v26  ;;  %v2062_v12 = vld [vmem:[%s5179_s16 + $0x550] sm:$0xff] }
 0x38f   : > { %v3427_v20 = vpack.c.bf16 %v1996_v17, %v1990_v16  ;;  %v2056_v16 = vld [vmem:[%s5179_s16 + $0x520] sm:$0xff] }
 0x390   : > { %v3447_v18 = vpack.c.bf16 %v2056_v16, %v2050_v21 }
 0x391   : > { %3332 = vmatpush1.bf16.msra.mxu1 %v3331_v23  ;;  %v3357_v23 = vpack.c.bf16 %v2007_v62, %v2001_v22  ;;  %3428 = vmatpush1.bf16.msra.mxu0 %v3427_v20  ;;  %v2061_v20 = vld [vmem:[%s5179_s16 + $0x548] sm:$0xff]  ;;  %v2067_v22 = vld [vmem:[%s5179_s16 + $0x578] sm:$0xff] }
 0x392   : > { %3334 = vmatprep.subr.bf16.mxu1 %v3333_v24  ;;  %v2000_v24 = vld [vmem:[%s5179_s16 + $0x360] sm:$0xff]  ;;  %3430 = vmatprep.subr.bf16.mxu0 %v3429_v30  ;;  %v3377_v62 = vpack.c.bf16 %v2067_v22, %v2061_v20  ;;  %v2102_v22 = vld [vmem:[%s5179_s16 + $0x690] sm:$0xff] }
 0x393   : > { %v3359_v27 = vpack.c.bf16 %v2006_v25, %v2000_v24  ;;  %v2066_v24 = vld [vmem:[%s5179_s16 + $0x570] sm:$0xff]  ;;  %v2063_v25 = vld [vmem:[%s5179_s16 + $0x558] sm:$0xff] }
 0x395   : > { %3336 = vmatpush1.bf16.msra.mxu1 %v3335_v28  ;;  %v2002_v28 = vld [vmem:[%s5179_s16 + $0x370] sm:$0xff] }
 0x396   : > { %3338 = vmatprep.subr.bf16.mxu1 %v3337_v29  ;;  %v2008_v29 = vld [vmem:[%s5179_s16 + $0x3a0] sm:$0xff] }
 0x397   : > { %v3431_v32 = vpack.c.bf16 %v2008_v29, %v2002_v28  ;;  %v2068_v28 = vld [vmem:[%s5179_s16 + $0x580] sm:$0xff] }
 0x398   : > { %v3451_v30 = vpack.c.bf16 %v2068_v28, %v2062_v12  ;;  %v1903_v28 = vld [vmem:[%s5179_s16 + $0x58] sm:$0xff] }
 0x399   : > { %3340 = vmatpush1.bf16.msra.mxu1 %v3339_v36  ;;  %v3361_v36 = vpack.c.bf16 %v2019_v35, %v2013_v34  ;;  %3432 = vmatpush1.bf16.msra.mxu0 %v3431_v32  ;;  %v2073_v32 = vld [vmem:[%s5179_s16 + $0x5a8] sm:$0xff]  ;;  %v2079_v34 = vld [vmem:[%s5179_s16 + $0x5d8] sm:$0xff] }
 0x39a   : > { %3342 = vmatprep.subr.bf16.mxu1 %v3341_v38  ;;  %v2012_v38 = vld [vmem:[%s5179_s16 + $0x3c0] sm:$0xff]  ;;  %v3381_v35 = vpack.c.bf16 %v2079_v34, %v2073_v32 }
 0x39b   : > { %v3363_v41 = vpack.c.bf16 %v2018_v39, %v2012_v38  ;;  %v2078_v38 = vld [vmem:[%s5179_s16 + $0x5d0] sm:$0xff]  ;;  %v2075_v39 = vld [vmem:[%s5179_s16 + $0x5b8] sm:$0xff] }
 0x39d   : > { %3344 = vmatpush1.bf16.msra.mxu1 %v3343_v42  ;;  %v2021_v42 = vld [vmem:[%s5179_s16 + $0x408] sm:$0xff] }
 0x39e   : > { %3346 = vmatprep.subr.bf16.mxu1 %v3345_v50  ;;  %v3433_v45 = vpack.c.bf16 %v2021_v42, %v2015_v40  ;;  %v2024_v50 = vld [vmem:[%s5179_s16 + $0x420] sm:$0xff]  ;;  %v2074_v42 = vld [vmem:[%s5179_s16 + $0x5b0] sm:$0xff] }
 0x39f   : > { %v3367_v53 = vpack.c.bf16 %v2030_v51, %v2024_v50  ;;  %v2093_v50 = vld [vmem:[%s5179_s16 + $0x648] sm:$0xff] }
 0x3a0   : > { %3434 = vmatprep.subr.bf16.mxu0 %v3433_v45  ;;  %v3455_v45 = vpack.c.bf16 %v2080_v43, %v2074_v42  ;;  %v2588_v43 = vld [vmem:[%s5180_s17] sm:$0xff] }
 0x3a1   : > { %3348 = vmatpush1.bf16.msra.mxu1 %v3347_v54  ;;  %3436 = vmatpush1.bf16.msra.mxu0 %v3435_v46  ;;  %v2033_v54 = vld [vmem:[%s5179_s16 + $0x468] sm:$0xff] }
 0x3a2   : > { %3350 = vmatprep.subr.bf16.mxu1 %v3349_v63  ;;  %v3437_v57 = vpack.c.bf16 %v2033_v54, %v2027_v52  ;;  %v2036_v63 = vld [vmem:[%s5179_s16 + $0x480] sm:$0xff]  ;;  %v2085_v46 = vld [vmem:[%s5179_s16 + $0x608] sm:$0xff] }
 0x3a3   : > { %v3371_v2 = vpack.c.bf16 %v2042_v0, %v2036_v63  ;;  %v3385_v48 = vpack.c.bf16 %v2091_v47, %v2085_v46  ;;  %v1908_v47 = vld [vmem:[%s5179_s16 + $0x80] sm:$0xff] }
 0x3a4   : > { %3438 = vmatprep.subr.bf16.mxu0 %v3437_v57 }
 0x3a5   : > { %3352 = vmatpush1.bf16.msra.mxu1 %v3351_v3  ;;  %3440 = vmatpush1.bf16.msra.mxu0 %v3439_v58  ;;  %v2045_v3 = vld [vmem:[%s5179_s16 + $0x4c8] sm:$0xff] }
 0x3a6   : > { %3354 = vmatprep.subr.bf16.mxu1 %v3353_v10  ;;  %v3441_v6 = vpack.c.bf16 %v2045_v3, %v2039_v1  ;;  %v2048_v10 = vld [vmem:[%s5179_s16 + $0x4e0] sm:$0xff] }
 0x3a7   : > { %v3375_v14 = vpack.c.bf16 %v2054_v11, %v2048_v10  ;;  %v2103_v10 = vld [vmem:[%s5179_s16 + $0x698] sm:$0xff] }
 0x3a8   : > { %3442 = vmatprep.subr.bf16.mxu0 %v3441_v6  ;;  %v2090_v6 = vld [vmem:[%s5179_s16 + $0x630] sm:$0xff]  ;;  %v2099_v11 = vld [vmem:[%s5179_s16 + $0x678] sm:$0xff]  ;;  %v3389_v20 = vpack.c.bf16 %v2103_v10, %v2097_v9  ;;  %v1920_v9 = vld [vmem:[%s5179_s16 + $0xe0] sm:$0xff] }
 0x3a9   : > { %3356 = vmatpush1.bf16.msra.mxu1 %v3355_v15  ;;  %3444 = vmatpush1.bf16.msra.mxu0 %v3443_v7  ;;  %v2057_v15 = vld [vmem:[%s5179_s16 + $0x528] sm:$0xff]  ;;  %v2086_v7 = vld [vmem:[%s5179_s16 + $0x610] sm:$0xff]  ;;  %v3387_v16 = vpack.c.bf16 %v2090_v6, %v2084_v5  ;;  %v2608_v6 = vld [vmem:[%s5180_s17 + $0xa0] sm:$0xff] }
 0x3aa   : > { %3358 = vmatprep.subr.bf16.mxu1 %v3357_v23  ;;  %v3445_v17 = vpack.c.bf16 %v2057_v15, %v2051_v13  ;;  %v2060_v23 = vld [vmem:[%s5179_s16 + $0x540] sm:$0xff]  ;;  %v2105_v13 = vld [vmem:[%s5179_s16 + $0x6a8] sm:$0xff] }
 0x3ab   : > { %v3379_v26 = vpack.c.bf16 %v2066_v24, %v2060_v23  ;;  %v2098_v23 = vld [vmem:[%s5179_s16 + $0x670] sm:$0xff]  ;;  %v2104_v24 = vld [vmem:[%s5179_s16 + $0x6a0] sm:$0xff] }
 0x3ac   : > { %3446 = vmatprep.subr.bf16.mxu0 %v3445_v17  ;;  %v3459_v17 = vpack.c.bf16 %v2092_v8, %v2086_v7  ;;  %v2609_v7 = vld [vmem:[%s5180_s17 + $0xa8] sm:$0xff] }
 0x3ad   : > { %3360 = vmatpush1.bf16.msra.mxu1 %v3359_v27  ;;  %3448 = vmatpush1.bf16.msra.mxu0 %v3447_v18  ;;  %v2069_v27 = vld [vmem:[%s5179_s16 + $0x588] sm:$0xff]  ;;  %v2096_v18 = vld [vmem:[%s5179_s16 + $0x660] sm:$0xff] }
 0x3ae   : > { %3362 = vmatprep.subr.bf16.mxu1 %v3361_v36  ;;  %v3449_v29 = vpack.c.bf16 %v2069_v27, %v2063_v25  ;;  %v2072_v36 = vld [vmem:[%s5179_s16 + $0x5a0] sm:$0xff]  ;;  %v3391_v34 = vpack.c.bf16 %v2102_v22, %v2096_v18  ;;  %v2593_v18 = vld [vmem:[%s5180_s17 + $0x28] sm:$0xff]  ;;  %v2610_v22 = vld [vmem:[%s5180_s17 + $0xb0] sm:$0xff] }
 0x3af   : > { %v3383_v40 = vpack.c.bf16 %v2078_v38, %v2072_v36  ;;  %v1896_v36 = vld [vmem:[%s5179_s16 + $0x20] sm:$0xff]  ;;  %v1902_v38 = vld [vmem:[%s5179_s16 + $0x50] sm:$0xff] }
 0x3b0   : > { %3450 = vmatprep.subr.bf16.mxu0 %v3449_v29  ;;  %v2604_v29 = vld [vmem:[%s5180_s17 + $0x80] sm:$0xff] }
 0x3b1   : > { %3364 = vmatpush1.bf16.msra.mxu1 %v3363_v41  ;;  %3452 = vmatpush1.bf16.msra.mxu0 %v3451_v30  ;;  %v2081_v41 = vld [vmem:[%s5179_s16 + $0x5e8] sm:$0xff] }
 0x3b2   : > { %3366 = vmatprep.subr.bf16.mxu1 %v3365_v49  ;;  %v3453_v44 = vpack.c.bf16 %v2081_v41, %v2075_v39  ;;  %v2087_v49 = vld [vmem:[%s5179_s16 + $0x618] sm:$0xff]  ;;  %v2605_v30 = vld [vmem:[%s5180_s17 + $0x88] sm:$0xff] }
 0x3b3   : > { %v3457_v51 = vpack.c.bf16 %v2093_v50, %v2087_v49  ;;  %v1915_v41 = vld [vmem:[%s5179_s16 + $0xb8] sm:$0xff]  ;;  %v3537_v42 = vpack.c.bf16 %v2605_v30, %v2604_v29  ;;  %v1921_v49 = vld [vmem:[%s5179_s16 + $0xe8] sm:$0xff]  ;;  %v2594_v29 = vld [vmem:[%s5180_s17 + $0x30] sm:$0xff] }
 0x3b4   : > { %3454 = vmatprep.subr.bf16.mxu0 %v3453_v44  ;;  %v2589_v44 = vld [vmem:[%s5180_s17 + $0x8] sm:$0xff]  ;;  %v1927_v50 = vld [vmem:[%s5179_s16 + $0x118] sm:$0xff] }
 0x3b5   : > { %3368 = vmatpush1.bf16.msra.mxu1 %v3367_v53  ;;  %3456 = vmatpush1.bf16.msra.mxu0 %v3455_v45  ;;  %v3467_v45 = vpack.c.bf16 %v1902_v38, %v1896_v36  ;;  %v3473_v8 = vpack.c.bf16 %v1927_v50, %v1921_v49  ;;  %v2595_v30 = vld [vmem:[%s5180_s17 + $0x38] sm:$0xff]  ;;  %v2613_v36 = vld [vmem:[%s5180_s17 + $0xc8] sm:$0xff] }
 0x3b6   : > { %3370 = vmatprep.subr.bf16.mxu1 %v3369_v61  ;;  %3458 = vmatprep.subr.bf16.mxu0 %v3457_v51  ;;  %v3539_v51 = vpack.c.bf16 %v2589_v44, %v2588_v43  ;;  %v3551_v43 = vpack.c.bf16 %v2595_v30, %v2594_v29  ;;  %v2615_v49 = vld [vmem:[%s5180_s17 + $0xd8] sm:$0xff]  ;;  %v1992_v30 = vld [vmem:[%s5179_s16 + $0x320] sm:$0xff] }
 0x3b9   : > { %3372 = vmatpush1.bf16.msra.mxu1 %v3371_v2 }
 0x3ba   : > { %3374 = vmatprep.subr.bf16.mxu1 %v3373_v19 }
 0x3bd   : > { %3376 = vmatpush1.bf16.msra.mxu1 %v3375_v14 }
 0x3be   : > { %3378 = vmatprep.subr.bf16.mxu1 %v3377_v62  ;;  %v3461_v62 = vpack.c.bf16 %v2105_v13, %v2099_v11  ;;  %v1933_v11 = vld [vmem:[%s5179_s16 + $0x148] sm:$0xff]  ;;  %v1939_v13 = vld [vmem:[%s5179_s16 + $0x178] sm:$0xff] }
 0x3c1   : > { %3380 = vmatpush1.bf16.msra.mxu1 %v3379_v26  ;;  %v1897_v26 = vld [vmem:[%s5179_s16 + $0x28] sm:$0xff] }
 0x3c2   : > { %3382 = vmatprep.subr.bf16.mxu1 %v3381_v35  ;;  %v3463_v35 = vpack.c.bf16 %v2104_v24, %v2098_v23  ;;  %v3465_v39 = vpack.c.bf16 %v1903_v28, %v1897_v26  ;;  %v3477_v23 = vpack.c.bf16 %v1939_v13, %v1933_v11  ;;  %v1932_v24 = vld [vmem:[%s5179_s16 + $0x140] sm:$0xff]  ;;  %v1951_v26 = vld [vmem:[%s5179_s16 + $0x1d8] sm:$0xff]  ;;  %v1974_v13 = vld [vmem:[%s5179_s16 + $0x290] sm:$0xff] }
 0x3c3   : > { %v1968_v11 = vld [vmem:[%s5179_s16 + $0x260] sm:$0xff] }
 0x3c5   : > { %3384 = vmatpush1.bf16.msra.mxu1 %v3383_v40  ;;  %v1909_v40 = vld [vmem:[%s5179_s16 + $0x88] sm:$0xff] }
 0x3c6   : > { %3386 = vmatprep.subr.bf16.mxu1 %v3385_v48  ;;  %v3469_v46 = vpack.c.bf16 %v1915_v41, %v1909_v40  ;;  %v1914_v48 = vld [vmem:[%s5179_s16 + $0xb0] sm:$0xff]  ;;  %v1957_v41 = vld [vmem:[%s5179_s16 + $0x208] sm:$0xff] }
 0x3c7   : > { %v3471_v5 = vpack.c.bf16 %v1914_v48, %v1908_v47  ;;  %v1950_v40 = vld [vmem:[%s5179_s16 + $0x1d0] sm:$0xff] }
 0x3c8   : > { %v2614_v48 = vld [vmem:[%s5180_s17 + $0xd0] sm:$0xff] }
 0x433   : > { %v4514_v52 = vpop.f32.mrb[2].mxu1 }
 0x434   : > { %v4516_v53 = vpop.f32.mrb[3].mxu1 }
 0x437   : > { %v4518_v54 = vpop.f32.mrb[4].mxu1 }
 0x438   : > { %v4520_v55 = vpop.f32.mrb[5].mxu1 }
 0x43f   : > { %v4522_v56 = vpop.f32.mrb[6].mxu1 }
 0x440   : > { %v4524_v57 = vpop.f32.mrb[7].mxu1 }
 0x443   : > { %v4526_v58 = vpop.f32.mrb[8].mxu1 }
 0x444   : > { %v4528_v59 = vpop.f32.mrb[9].mxu1 }
 0x44b   : > { %v4530_v60 = vpop.f32.mrb[10].mxu1 }
 0x44c   : > { %v4532_v61 = vpop.f32.mrb[11].mxu1 }
 0x44f   : > { %v4534_v63 = vpop.f32.mrb[12].mxu1 }
 0x450   : > { %v4536_v0 = vpop.f32.mrb[13].mxu1 }
 0x453   : > { %v1636_v1 = vpop.f32.mrb[14].mxu1 }
 0x454   : > { %v1638_v2 = vpop.f32.mrb[15].mxu1 }
 0x457   : > { %v1642_v3 = vpop.f32.mrb[16].mxu1 }
 0x458   : > { %v1644_v4 = vpop.f32.mrb[17].mxu1 }
 0x45b   : > { %v1800_v19 = vpop.f32.mrb[18].mxu1 }
 0x45c   : > { %v4562_v14 = vmul.f32 %v1800_v19, %v1636_v1  ;;  %v1802_v15 = vpop.f32.mrb[19].mxu1  ;;  %v2606_v1 = vld [vmem:[%s5180_s17 + $0x90] sm:$0xff] }
 0x45d   : > { %v4564_v21 = vmul.f32 %v1802_v15, %v1638_v2  ;;  %v2607_v2 = vld [vmem:[%s5180_s17 + $0x98] sm:$0xff]  ;;  %v1926_v19 = vld [vmem:[%s5179_s16 + $0x110] sm:$0xff] }
 0x45e   : > { %v3541_v10 = vpack.c.bf16 %v2607_v2, %v2606_v1  ;;  %v1962_v1 = vld [vmem:[%s5179_s16 + $0x230] sm:$0xff]  ;;  %v1969_v2 = vld [vmem:[%s5179_s16 + $0x268] sm:$0xff] }
 0x45f   : > { %v1806_v25 = vpop.f32.mrb[20].mxu1  ;;  %2178 = vmatprep.mubr.f32.mxu1 %v4564_v21  ;;  %2332 = vmatprep.mubr.f32.mxu0 %v4564_v21 }
 0x460   : > { %v4583_v27 = vmul.f32 %v1806_v25, %v1642_v3  ;;  %v1808_v12 = vpop.f32.mrb[21].mxu1  ;;  %2179 = vmatmul.mubr.f32.vlgmr.msra.gmra.mrb[22].mxu1 %v4562_v14  ;;  %2333 = vmatmul.mubr.f32.vlgmr.msra.gmra.mrb[8].mxu0 %v4562_v14  ;;  %v2590_v3 = vld [vmem:[%s5180_s17 + $0x10] sm:$0xff] }
 0x461   : > { %v4596_v32 = vmul.f32 %v1808_v12, %v1644_v4  ;;  %3388 = vmatpush1.bf16.msra.mxu1 %v3387_v16  ;;  %3460 = vmatpush1.bf16.msra.mxu0 %v3459_v17  ;;  %v2591_v4 = vld [vmem:[%s5180_s17 + $0x18] sm:$0xff]  ;;  %v3545_v16 = vpack.c.bf16 %v2609_v7, %v2608_v6  ;;  %v2592_v17 = vld [vmem:[%s5180_s17 + $0x20] sm:$0xff]  ;;  %v1938_v25 = vld [vmem:[%s5179_s16 + $0x170] sm:$0xff] }
 0x462   : > { %3390 = vmatprep.subr.bf16.mxu1 %v3389_v20  ;;  %3462 = vmatprep.subr.bf16.mxu0 %v3461_v62  ;;  %v3543_v15 = vpack.c.bf16 %v2591_v4, %v2590_v3  ;;  %v3475_v20 = vpack.c.bf16 %v1926_v19, %v1920_v9  ;;  %v2611_v62 = vld [vmem:[%s5180_s17 + $0xb8] sm:$0xff]  ;;  %v3547_v12 = vpack.c.bf16 %v2593_v18, %v2592_v17  ;;  %v2598_v6 = vld [vmem:[%s5180_s17 + $0x50] sm:$0xff]  ;;  %v2616_v9 = vld [vmem:[%s5180_s17 + $0xe0] sm:$0xff] }
 0x463   : > { %2184 = vmatprep.mubr.f32.mxu1 %v4596_v32  ;;  %2338 = vmatprep.mubr.f32.mxu0 %v4596_v32  ;;  %v3549_v28 = vpack.c.bf16 %v2611_v62, %v2610_v22  ;;  %v1975_v3 = vld [vmem:[%s5179_s16 + $0x298] sm:$0xff]  ;;  %v2617_v19 = vld [vmem:[%s5180_s17 + $0xe8] sm:$0xff]  ;;  %v3491_v62 = vpack.c.bf16 %v1974_v13, %v1968_v11  ;;  %v2052_v13 = vld [vmem:[%s5179_s16 + $0x500] sm:$0xff] }
 0x464   : > { %2185 = vmatmul.mubr.f32.gmra.mrb[24].mxu1 %v4583_v27  ;;  %2339 = vmatmul.mubr.f32.gmra.mrb[10].mxu0 %v4583_v27  ;;  %v2599_v7 = vld [vmem:[%s5180_s17 + $0x58] sm:$0xff]  ;;  %v3561_v18 = vpack.c.bf16 %v2617_v19, %v2616_v9  ;;  %v2601_v22 = vld [vmem:[%s5180_s17 + $0x68] sm:$0xff] }
 0x465   : > { %3392 = vmatpush1.bf16.msra.mxu1 %v3391_v34  ;;  %3464 = vmatpush1.bf16.msra.mxu0 %v3463_v35  ;;  %v3479_v34 = vpack.c.bf16 %v1938_v25, %v1932_v24  ;;  %v2612_v35 = vld [vmem:[%s5180_s17 + $0xc0] sm:$0xff]  ;;  %v3559_v17 = vpack.c.bf16 %v2599_v7, %v2598_v6  ;;  %v1986_v25 = vld [vmem:[%s5179_s16 + $0x2f0] sm:$0xff]  ;;  %v2053_v9 = vld [vmem:[%s5179_s16 + $0x508] sm:$0xff] }
 0x466   : > { %2255 = vmatprep.mubr.f32.mxu1 %v3692_v31  ;;  %2409 = vmatprep.mubr.f32.mxu0 %v3692_v31  ;;  %v3553_v44 = vpack.c.bf16 %v2613_v36, %v2612_v35  ;;  %v1980_v24 = vld [vmem:[%s5179_s16 + $0x2c0] sm:$0xff]  ;;  %v2005_v35 = vld [vmem:[%s5179_s16 + $0x388] sm:$0xff]  ;;  %v2011_v36 = vld [vmem:[%s5179_s16 + $0x3b8] sm:$0xff] }
 0x467   : > { %3466 = vmatprep.subr.bf16.mxu1 %v3465_v39  ;;  %3538 = vmatprep.subr.bf16.mxu0 %v3537_v42  ;;  %v1944_v39 = vld [vmem:[%s5179_s16 + $0x1a0] sm:$0xff]  ;;  %v1963_v42 = vld [vmem:[%s5179_s16 + $0x238] sm:$0xff] }
 0x468   : > { %3033 = vmatmul.mubr.msk.f32.vlgmr.msra.gmra.mrb[22].mxu1 %vm1157_vm12, %v4101_v37  ;;  %3035 = vmatmul.mubr.msk.f32.vlgmr.msra.gmra.mrb[8].mxu0 %vm1157_vm12, %v4101_v37  ;;  %v3483_v47 = vpack.c.bf16 %v1950_v40, %v1944_v39  ;;  %v3485_v50 = vpack.c.bf16 %v1963_v42, %v1957_v41  ;;  %v3501_v39 = vpack.c.bf16 %v2011_v36, %v2005_v35  ;;  %v2004_v40 = vld [vmem:[%s5179_s16 + $0x380] sm:$0xff]  ;;  %v2010_v41 = vld [vmem:[%s5179_s16 + $0x3b0] sm:$0xff]  ;;  %v2017_v42 = vld [vmem:[%s5179_s16 + $0x3e8] sm:$0xff] }
 0x469   : > { %3468 = vmatpush1.bf16.msra.mxu1 %v3467_v45  ;;  %2261 = vmatprep.mubr.f32.mxu1 %v3692_v31  ;;  %v2596_v45 = vld [vmem:[%s5180_s17 + $0x40] sm:$0xff]  ;;  %v2059_v19 = vld [vmem:[%s5179_s16 + $0x538] sm:$0xff]  ;;  %v2094_v36 = vld [vmem:[%s5179_s16 + $0x650] sm:$0xff] }
 0x46a   : > { %2415 = vmatprep.mubr.f32.mxu0 %v3692_v31  ;;  %3470 = vmatprep.subr.bf16.mxu1 %v3469_v46  ;;  %v2597_v46 = vld [vmem:[%s5180_s17 + $0x48] sm:$0xff]  ;;  %v2040_v7 = vld [vmem:[%s5179_s16 + $0x4a0] sm:$0xff]  ;;  %v3517_v11 = vpack.c.bf16 %v2059_v19, %v2053_v9 }
 0x46b   : > { %3540 = vmatpush3.bf16.msra.mxu0 %v3539_v51  ;;  %v1956_v51 = vld [vmem:[%s5179_s16 + $0x200] sm:$0xff]  ;;  %v3555_v4 = vpack.c.bf16 %v2597_v46, %v2596_v45 }
 0x46c   : > { %3034 = vmatmul.mubr.msk.f32.gmra.mrb[24].mxu1 %vm1157_vm12, %v4093_v33  ;;  %3036 = vmatmul.mubr.msk.f32.gmra.mrb[10].mxu0 %vm1157_vm12, %v4093_v33  ;;  %v2016_v46 = vld [vmem:[%s5179_s16 + $0x3e0] sm:$0xff] }
 0x46d   : > { %3472 = vmatpush1.bf16.msra.mxu1 %v3471_v5  ;;  %2486 = vmatprep.mubr.f32.mxu1 %v4564_v21  ;;  %v1945_v21 = vld [vmem:[%s5179_s16 + $0x1a8] sm:$0xff]  ;;  %v3557_v5 = vpack.c.bf16 %v2615_v49, %v2614_v48  ;;  %v2035_v49 = vld [vmem:[%s5179_s16 + $0x478] sm:$0xff]  ;;  %v2088_v35 = vld [vmem:[%s5179_s16 + $0x620] sm:$0xff] }
 0x46e   : > { %3474 = vmatprep.subr.bf16.mxu1 %v3473_v8  ;;  %3542 = vmatprep.subr.bf16.mxu0 %v3541_v10  ;;  %v3481_v38 = vpack.c.bf16 %v1951_v26, %v1945_v21  ;;  %v3487_v8 = vpack.c.bf16 %v1962_v1, %v1956_v51  ;;  %v3489_v10 = vpack.c.bf16 %v1975_v3, %v1969_v2  ;;  %v1993_v21 = vld [vmem:[%s5179_s16 + $0x328] sm:$0xff]  ;;  %v1999_v26 = vld [vmem:[%s5179_s16 + $0x358] sm:$0xff]  ;;  %v2028_v1 = vld [vmem:[%s5179_s16 + $0x440] sm:$0xff] }
 0x46f   : > { %3544 = vmatpush3.bf16.msra.mxu0 %v3543_v15  ;;  %v1981_v15 = vld [vmem:[%s5179_s16 + $0x2c8] sm:$0xff]  ;;  %v3497_v29 = vpack.c.bf16 %v1999_v26, %v1993_v21  ;;  %v2034_v2 = vld [vmem:[%s5179_s16 + $0x470] sm:$0xff]  ;;  %v2076_v26 = vld [vmem:[%s5179_s16 + $0x5c0] sm:$0xff] }
 0x470   : > { %3546 = vmatprep.subr.bf16.mxu0 %v3545_v16  ;;  %v1987_v16 = vld [vmem:[%s5179_s16 + $0x2f8] sm:$0xff]  ;;  %v2029_v48 = vld [vmem:[%s5179_s16 + $0x448] sm:$0xff]  ;;  %v2620_v19 = vld [vmem:[%s5180_s17 + $0x100] sm:$0xff] }
 0x471   : > { %3476 = vmatpush1.bf16.msra.mxu1 %v3475_v20  ;;  %v2600_v20 = vld [vmem:[%s5180_s17 + $0x60] sm:$0xff]  ;;  %v3509_v51 = vpack.c.bf16 %v2035_v49, %v2029_v48  ;;  %v2041_v3 = vld [vmem:[%s5179_s16 + $0x4a8] sm:$0xff]  ;;  %v1290_v48 = vlaneseq }
 0x472   : > { %3478 = vmatprep.subr.bf16.mxu1 %v3477_v23  ;;  %v3493_v23 = vpack.c.bf16 %v1987_v16, %v1981_v15  ;;  %v2058_v15 = vld [vmem:[%s5179_s16 + $0x530] sm:$0xff]  ;;  %v2065_v16 = vld [vmem:[%s5179_s16 + $0x568] sm:$0xff] }
 0x473   : > { %3548 = vmatpush3.bf16.msra.mxu0 %v3547_v12  ;;  %v3563_v12 = vpack.c.bf16 %v2601_v22, %v2600_v20  ;;  %v2064_v22 = vld [vmem:[%s5179_s16 + $0x560] sm:$0xff]  ;;  %v4930_v49 = vshrl.u32 %v1290_v48, 7  ;;  %v2629_v48 = vld [vmem:[%s5180_s17 + $0x148] sm:$0xff] }
 0x474   : > { %3550 = vmatprep.subr.bf16.mxu0 %v3549_v28  ;;  %v3495_v28 = vpack.c.bf16 %v1986_v25, %v1980_v24  ;;  %v2083_v24 = vld [vmem:[%s5179_s16 + $0x5f8] sm:$0xff] }
 0x475   : > { %3480 = vmatpush1.bf16.msra.mxu1 %v3479_v34  ;;  %v1998_v34 = vld [vmem:[%s5179_s16 + $0x350] sm:$0xff] }
 0x476   : > { %3482 = vmatprep.subr.bf16.mxu1 %v3481_v38  ;;  %v3499_v38 = vpack.c.bf16 %v1998_v34, %v1992_v30 }
 0x477   : > { %3552 = vmatpush3.bf16.msra.mxu0 %v3551_v43  ;;  %v2023_v43 = vld [vmem:[%s5179_s16 + $0x418] sm:$0xff] }
 0x478   : > { %3554 = vmatprep.subr.bf16.mxu0 %v3553_v44  ;;  %v3503_v44 = vpack.c.bf16 %v2010_v41, %v2004_v40  ;;  %v3505_v45 = vpack.c.bf16 %v2023_v43, %v2017_v42  ;;  %v3531_v40 = vpack.c.bf16 %v2094_v36, %v2088_v35  ;;  %v2100_v42 = vld [vmem:[%s5179_s16 + $0x680] sm:$0xff]  ;;  %v2106_v43 = vld [vmem:[%s5179_s16 + $0x6b0] sm:$0xff] }
 0x479   : > { %3484 = vmatpush1.bf16.msra.mxu1 %v3483_v47  ;;  %v2022_v47 = vld [vmem:[%s5179_s16 + $0x410] sm:$0xff] }
 0x47a   : > { %3486 = vmatprep.subr.bf16.mxu1 %v3485_v50  ;;  %v3507_v50 = vpack.c.bf16 %v2022_v47, %v2016_v46  ;;  %v2637_v46 = vld [vmem:[%s5180_s17 + $0x188] sm:$0xff] }
 0x47b   : > { %3556 = vmatpush3.bf16.msra.mxu0 %v3555_v4  ;;  %v2047_v4 = vld [vmem:[%s5179_s16 + $0x4d8] sm:$0xff] }
 0x47c   : > { %3558 = vmatprep.subr.bf16.mxu0 %v3557_v5  ;;  %v3511_v5 = vpack.c.bf16 %v2034_v2, %v2028_v1  ;;  %v3513_v6 = vpack.c.bf16 %v2047_v4, %v2041_v3  ;;  %v4937_v1 = vld [vmem:[%s5176_s13] sm:$0x3f]  ;;  %v1296_v2 = vsub.s32 1, %v4930_v49  ;;  %v1304_v3 = vsub.s32 3, %v4930_v49 }
 0x47d   : > { %3488 = vmatpush1.bf16.msra.mxu1 %v3487_v8  ;;  %v2046_v8 = vld [vmem:[%s5179_s16 + $0x4d0] sm:$0xff] }
 0x47e   : > { %3490 = vmatprep.subr.bf16.mxu1 %v3489_v10  ;;  %v3515_v10 = vpack.c.bf16 %v2046_v8, %v2040_v7  ;;  %v1305_v7 = vrot.slane %v4937_v1, %v1304_v3 }
 0x47f   : > { %3560 = vmatpush3.bf16.msra.mxu0 %v3559_v17  ;;  %v2071_v17 = vld [vmem:[%s5179_s16 + $0x598] sm:$0xff] }
 0x480   : > { %3562 = vmatprep.subr.bf16.mxu0 %v3561_v18  ;;  %v3519_v18 = vpack.c.bf16 %v2058_v15, %v2052_v13  ;;  %v3521_v20 = vpack.c.bf16 %v2071_v17, %v2065_v16  ;;  %v1473_v13 = vadd.f32 %v4524_v57, %v1305_v7 }
 0x481   : > { %3492 = vmatpush1.bf16.msra.mxu1 %v3491_v62  ;;  %v2070_v62 = vld [vmem:[%s5179_s16 + $0x590] sm:$0xff] }
 0x482   : > { %3494 = vmatprep.subr.bf16.mxu1 %v3493_v23  ;;  %v2077_v23 = vld [vmem:[%s5179_s16 + $0x5c8] sm:$0xff]  ;;  %v3523_v25 = vpack.c.bf16 %v2070_v62, %v2064_v22 }
 0x483   : > { %3564 = vmatpush3.bf16.msra.mxu0 %v3563_v12  ;;  %v3525_v21 = vpack.c.bf16 %v2083_v24, %v2077_v23  ;;  %v2082_v12 = vld [vmem:[%s5179_s16 + $0x5f0] sm:$0xff] }
 0x484   : > { %v3527_v30 = vpack.c.bf16 %v2082_v12, %v2076_v26  ;;  %v2623_v26 = vld [vmem:[%s5180_s17 + $0x118] sm:$0xff] }
 0x485   : > { %3496 = vmatpush1.bf16.msra.mxu1 %v3495_v28  ;;  %v2089_v28 = vld [vmem:[%s5179_s16 + $0x628] sm:$0xff] }
 0x486   : > { %3498 = vmatprep.subr.bf16.mxu1 %v3497_v29  ;;  %v2095_v29 = vld [vmem:[%s5179_s16 + $0x658] sm:$0xff] }
 0x487   : > { %v3529_v34 = vpack.c.bf16 %v2095_v29, %v2089_v28  ;;  %v1479_v28 = vadd.f32 %v4528_v59, %v1305_v7  ;;  %v2649_v7 = vld [vmem:[%s5180_s17 + $0x1e8] sm:$0xff] }
 0x489   : > { %3500 = vmatpush1.bf16.msra.mxu1 %v3499_v38  ;;  %v2101_v38 = vld [vmem:[%s5179_s16 + $0x688] sm:$0xff] }
 0x48a   : > { %3502 = vmatprep.subr.bf16.mxu1 %v3501_v39  ;;  %v2107_v39 = vld [vmem:[%s5179_s16 + $0x6b8] sm:$0xff] }
 0x48b   : > { %v3533_v41 = vpack.c.bf16 %v2107_v39, %v2101_v38 }
 0x48d   : > { %3504 = vmatpush1.bf16.msra.mxu1 %v3503_v44  ;;  %v3535_v44 = vpack.c.bf16 %v2106_v43, %v2100_v42  ;;  %v2625_v42 = vld [vmem:[%s5180_s17 + $0x128] sm:$0xff]  ;;  %v2642_v43 = vld [vmem:[%s5180_s17 + $0x1b0] sm:$0xff] }
 0x48e   : > { %3506 = vmatprep.subr.bf16.mxu1 %v3505_v45  ;;  %v2602_v45 = vld [vmem:[%s5180_s17 + $0x70] sm:$0xff] }
 0x491   : > { %3508 = vmatpush1.bf16.msra.mxu1 %v3507_v50  ;;  %v1292_v50 = vsub.s32 0, %v4930_v49 }
 0x492   : > { %3510 = vmatprep.subr.bf16.mxu1 %v3509_v51  ;;  %v1300_v51 = vsub.s32 2, %v4930_v49 }
 0x493   : > { %v1293_v4 = vrot.slane %v4937_v1, %v1292_v50  ;;  %v2646_v50 = vld [vmem:[%s5180_s17 + $0x1d0] sm:$0xff] }
 0x495   : > { %3512 = vmatpush1.bf16.msra.mxu1 %v3511_v5  ;;  %v1301_v5 = vrot.slane %v4937_v1, %v1300_v51  ;;  %v1394_v8 = vadd.f32 %v4514_v52, %v1293_v4  ;;  %v2638_v52 = vld [vmem:[%s5180_s17 + $0x190] sm:$0xff]  ;;  %v1400_v57 = vadd.f32 %v4518_v54, %v1293_v4  ;;  %v2640_v54 = vld [vmem:[%s5180_s17 + $0x1a0] sm:$0xff]  ;;  %v2647_v51 = vld [vmem:[%s5180_s17 + $0x1d8] sm:$0xff] }
 0x496   : > { %3514 = vmatprep.subr.bf16.mxu1 %v3513_v6  ;;  %v1297_v6 = vrot.slane %v4937_v1, %v1296_v2  ;;  %v3589_v3 = vpack.c.bf16 %v2647_v51, %v2646_v50  ;;  %v2630_v4 = vld [vmem:[%s5180_s17 + $0x150] sm:$0xff]  ;;  %v2664_v50 = vld [vmem:[%s5180_s17 + $0x260] sm:$0xff]  ;;  %v2665_v51 = vld [vmem:[%s5180_s17 + $0x268] sm:$0xff] }
 0x497   : > { %v1471_v9 = vadd.f32 %v4522_v56, %v1301_v5  ;;  %v2639_v56 = vld [vmem:[%s5180_s17 + $0x198] sm:$0xff]  ;;  %v1477_v24 = vadd.f32 %v4526_v58, %v1301_v5  ;;  %v2641_v58 = vld [vmem:[%s5180_s17 + $0x1a8] sm:$0xff] }
 0x498   : > { %v1402_v12 = vadd.f32 %v4520_v55, %v1297_v6  ;;  %v2631_v5 = vld [vmem:[%s5180_s17 + $0x158] sm:$0xff] }
 0x499   : > { %3516 = vmatpush1.bf16.msra.mxu1 %v3515_v10  ;;  %v2621_v10 = vld [vmem:[%s5180_s17 + $0x108] sm:$0xff] }
 0x49a   : > { %3518 = vmatprep.subr.bf16.mxu1 %v3517_v11  ;;  %v1396_v11 = vadd.f32 %v4516_v53, %v1297_v6  ;;  %v3571_v53 = vpack.c.bf16 %v2621_v10, %v2620_v19  ;;  %v2648_v6 = vld [vmem:[%s5180_s17 + $0x1e0] sm:$0xff]  ;;  %v2633_v10 = vld [vmem:[%s5180_s17 + $0x168] sm:$0xff] }
 0x49b   : > { %v2632_v19 = vld [vmem:[%s5180_s17 + $0x160] sm:$0xff] }
 0x49d   : > { %3520 = vmatpush1.bf16.msra.mxu1 %v3519_v18 }
 0x49e   : > { %3522 = vmatprep.subr.bf16.mxu1 %v3521_v20 }
 0x4a1   : > { %3524 = vmatpush1.bf16.msra.mxu1 %v3523_v25  ;;  %v3573_v25 = vpack.c.bf16 %v2639_v56, %v2638_v52  ;;  %v2634_v52 = vld [vmem:[%s5180_s17 + $0x170] sm:$0xff]  ;;  %v2635_v56 = vld [vmem:[%s5180_s17 + $0x178] sm:$0xff] }
 0x4a2   : > { %3526 = vmatprep.subr.bf16.mxu1 %v3525_v21  ;;  %v2622_v21 = vld [vmem:[%s5180_s17 + $0x110] sm:$0xff] }
 0x4a3   : > { %v3575_v59 = vpack.c.bf16 %v2623_v26, %v2622_v21  ;;  %v2654_v26 = vld [vmem:[%s5180_s17 + $0x210] sm:$0xff] }
 0x4a5   : > { %3528 = vmatpush1.bf16.msra.mxu1 %v3527_v30 }
 0x4a6   : > { %3530 = vmatprep.subr.bf16.mxu1 %v3529_v34 }
 0x4a8   : > { %2487 = vmatmul.mubr.f32.vlgmr.msra.gmra.mrb[26].mxu1 %v4562_v14  ;;  %v2618_v14 = vld [vmem:[%s5180_s17 + $0xf0] sm:$0xff] }
 0x4a9   : > { %2492 = vmatprep.mubr.f32.mxu1 %v4596_v32  ;;  %3532 = vmatpush1.bf16.msra.mxu1 %v3531_v40  ;;  %v2619_v32 = vld [vmem:[%s5180_s17 + $0xf8] sm:$0xff]  ;;  %v3577_v40 = vpack.c.bf16 %v2641_v58, %v2640_v54  ;;  %v2656_v58 = vld [vmem:[%s5180_s17 + $0x220] sm:$0xff] }
 0x4aa   : > { %3534 = vmatprep.subr.bf16.mxu1 %v3533_v41  ;;  %v2624_v41 = vld [vmem:[%s5180_s17 + $0x120] sm:$0xff] }
 0x4ac   : > { %2493 = vmatmul.mubr.f32.gmra.mrb[28].mxu1 %v4583_v27  ;;  %v3565_v27 = vpack.c.bf16 %v2619_v32, %v2618_v14  ;;  %v3579_v14 = vpack.c.bf16 %v2625_v42, %v2624_v41 }
 0x4ad   : > { %3536 = vmatpush1.bf16.msra.mxu1 %v3535_v44  ;;  %2563 = vmatprep.mubr.f32.mxu1 %v3692_v31  ;;  %v2643_v44 = vld [vmem:[%s5180_s17 + $0x1b8] sm:$0xff] }
 0x4ae   : > { %3566 = vmatprep.subr.bf16.mxu0 %v3565_v27  ;;  %v3581_v32 = vpack.c.bf16 %v2643_v44, %v2642_v43  ;;  %v2626_v27 = vld [vmem:[%s5180_s17 + $0x130] sm:$0xff]  ;;  %v2660_v43 = vld [vmem:[%s5180_s17 + $0x240] sm:$0xff]  ;;  %v2661_v44 = vld [vmem:[%s5180_s17 + $0x248] sm:$0xff] }
 0x4b0   : > { %3037 = vmatmul.mubr.msk.f32.vlgmr.msra.gmra.mrb[26].mxu1 %vm1157_vm12, %v4101_v37 }
 0x4b1   : > { %2569 = vmatprep.mubr.f32.mxu1 %v3692_v31  ;;  %v2603_v31 = vld [vmem:[%s5180_s17 + $0x78] sm:$0xff] }
 0x4b2   : > { %v3567_v37 = vpack.c.bf16 %v2603_v31, %v2602_v45  ;;  %v2627_v45 = vld [vmem:[%s5180_s17 + $0x138] sm:$0xff]  ;;  %v2644_v31 = vld [vmem:[%s5180_s17 + $0x1c0] sm:$0xff] }
 0x4b4   : > { %3038 = vmatmul.mubr.msk.f32.gmra.mrb[28].mxu1 %vm1157_vm12, %v4093_v33  ;;  %3568 = vmatpush3.bf16.msra.mxu0 %v3567_v37  ;;  %v2636_v33 = vld [vmem:[%s5180_s17 + $0x180] sm:$0xff]  ;;  %v2645_v37 = vld [vmem:[%s5180_s17 + $0x1c8] sm:$0xff] }
 0x4b5   : > { %v3569_v47 = vpack.c.bf16 %v2637_v46, %v2636_v33  ;;  %v3583_v33 = vpack.c.bf16 %v2627_v45, %v2626_v27  ;;  %v3585_v46 = vpack.c.bf16 %v2645_v37, %v2644_v31  ;;  %v3619_v27 = vpack.c.bf16 %v2661_v44, %v2660_v43  ;;  %v2662_v31 = vld [vmem:[%s5180_s17 + $0x250] sm:$0xff]  ;;  %v2663_v37 = vld [vmem:[%s5180_s17 + $0x258] sm:$0xff] }
 0x4b7   : > { %3570 = vmatprep.subr.bf16.mxu0 %v3569_v47  ;;  %v2628_v47 = vld [vmem:[%s5180_s17 + $0x140] sm:$0xff] }
 0x4b8   : > { %v3587_v2 = vpack.c.bf16 %v2629_v48, %v2628_v47  ;;  %v3623_v47 = vpack.c.bf16 %v2663_v37, %v2662_v31 }
 0x53b   : > { %v2257_v15 = vpop.f32.mrb[22].mxu1  ;;  %v2411_v16 = vpop.f32.mrb[8].mxu0 }
 0x53c   : > { %v2576_v17 = vmul.f32 %v2257_v15, %v1394_v8  ;;  %v4961_v18 = vmul.f32 %v2411_v16, %v1471_v9  ;;  %v2259_v20 = vpop.f32.mrb[23].mxu1  ;;  %v2413_v22 = vpop.f32.mrb[9].mxu0  ;;  %v3591_v8 = vpack.c.bf16 %v2631_v5, %v2630_v4  ;;  %v3593_v9 = vpack.c.bf16 %v2649_v7, %v2648_v6  ;;  %v2666_v6 = vld [vmem:[%s5180_s17 + $0x270] sm:$0xff]  ;;  %v2667_v7 = vld [vmem:[%s5180_s17 + $0x278] sm:$0xff] }
 0x53d   : > { %v2577_v62 = vmul.f32 %v2259_v20, %v1396_v11  ;;  %v2579_v23 = vmul.f32 %v2413_v22, %v1473_v13  ;;  %v2650_v11 = vld [vmem:[%s5180_s17 + $0x1f0] sm:$0xff]  ;;  %v2651_v13 = vld [vmem:[%s5180_s17 + $0x1f8] sm:$0xff]  ;;  %v3595_v15 = vpack.c.bf16 %v2633_v10, %v2632_v19  ;;  %v2669_v20 = vld [vmem:[%s5180_s17 + $0x288] sm:$0xff]  ;;  %v3599_v22 = vpack.c.bf16 %v2635_v56, %v2634_v52 }
 0x53e   : > { %v3597_v16 = vpack.c.bf16 %v2651_v13, %v2650_v11  ;;  %v3627_v4 = vpack.c.bf16 %v2665_v51, %v2664_v50  ;;  %v1312_v19 = vsub.s32 5, %v4930_v49 }
 0x53f   : > { %v2263_v29 = vpop.f32.mrb[24].mxu1  ;;  %v2417_v30 = vpop.f32.mrb[10].mxu0  ;;  %2748 = vmatprep.mubr.f32.mxu0 %v2577_v62 }
 0x540   : > { %v2582_v34 = vmul.f32 %v2263_v29, %v1400_v57  ;;  %v4979_v35 = vmul.f32 %v2417_v30, %v1477_v24  ;;  %v2265_v36 = vpop.f32.mrb[25].mxu1  ;;  %v2419_v38 = vpop.f32.mrb[11].mxu0  ;;  %2749 = vmatmul.mubr.f32.vlgmr.msra.gmra.mrb[12].mxu0 %v2576_v17  ;;  %v2668_v17 = vld [vmem:[%s5180_s17 + $0x280] sm:$0xff]  ;;  %v2670_v57 = vld [vmem:[%s5180_s17 + $0x290] sm:$0xff]  ;;  %v2671_v24 = vld [vmem:[%s5180_s17 + $0x298] sm:$0xff]  ;;  %v1313_v11 = vrot.slane %v4937_v1, %v1312_v19 }
 0x541   : > { %v2583_v55 = vmul.f32 %v2265_v36, %v1402_v12  ;;  %v4981_v39 = vmul.f32 %v2419_v38, %v1479_v28  ;;  %3572 = vmatpush3.bf16.msra.mxu0 %v3571_v53  ;;  %v3601_v62 = vpack.c.bf16 %v2669_v20, %v2668_v17  ;;  %v2653_v53 = vld [vmem:[%s5180_s17 + $0x208] sm:$0xff]  ;;  %v3605_v21 = vpack.c.bf16 %v2671_v24, %v2670_v57  ;;  %v2655_v12 = vld [vmem:[%s5180_s17 + $0x218] sm:$0xff]  ;;  %v2672_v28 = vld [vmem:[%s5180_s17 + $0x2a0] sm:$0xff] }
 0x542   : > { %3574 = vmatprep.subr.bf16.mxu0 %v3573_v25  ;;  %v2673_v29 = vld [vmem:[%s5180_s17 + $0x2a8] sm:$0xff]  ;;  %v3607_v30 = vpack.c.bf16 %v2655_v12, %v2654_v26  ;;  %v2674_v36 = vld [vmem:[%s5180_s17 + $0x2b0] sm:$0xff] }
 0x543   : > { %2753 = vmatprep.mubr.f32.mxu0 %v2583_v55  ;;  %v3609_v54 = vpack.c.bf16 %v2673_v29, %v2672_v28 }
 0x544   : > { %2754 = vmatmul.mubr.f32.gmra.mrb[14].mxu0 %v2582_v34  ;;  %v2657_v34 = vld [vmem:[%s5180_s17 + $0x228] sm:$0xff] }
 0x545   : > { %3576 = vmatpush3.bf16.msra.mxu0 %v3575_v59  ;;  %2823 = vmatprep.mubr.f32.mxu0 %v2579_v23  ;;  %v2652_v23 = vld [vmem:[%s5180_s17 + $0x200] sm:$0xff]  ;;  %v3611_v38 = vpack.c.bf16 %v2657_v34, %v2656_v58  ;;  %v2659_v59 = vld [vmem:[%s5180_s17 + $0x238] sm:$0xff] }
 0x546   : > { %3578 = vmatprep.subr.bf16.mxu0 %v3577_v40  ;;  %v3603_v25 = vpack.c.bf16 %v2653_v53, %v2652_v23  ;;  %v2676_v40 = vld [vmem:[%s5180_s17 + $0x2c0] sm:$0xff] }
 0x549   : > { %3580 = vmatpush3.bf16.msra.mxu0 %v3579_v14  ;;  %v2678_v14 = vld [vmem:[%s5180_s17 + $0x2d0] sm:$0xff] }
 0x54a   : > { %3582 = vmatprep.subr.bf16.mxu0 %v3581_v32  ;;  %v2679_v32 = vld [vmem:[%s5180_s17 + $0x2d8] sm:$0xff] }
 0x54b   : > { %v3621_v45 = vpack.c.bf16 %v2679_v32, %v2678_v14 }
 0x54d   : > { %3584 = vmatpush3.bf16.msra.mxu0 %v3583_v33  ;;  %v2680_v33 = vld [vmem:[%s5180_s17 + $0x2e0] sm:$0xff] }
 0x54e   : > { %3586 = vmatprep.subr.bf16.mxu0 %v3585_v46  ;;  %v2681_v46 = vld [vmem:[%s5180_s17 + $0x2e8] sm:$0xff] }
 0x54f   : > { %v3625_v48 = vpack.c.bf16 %v2681_v46, %v2680_v33 }
 0x551   : > { %3588 = vmatpush3.bf16.msra.mxu0 %v3587_v2  ;;  %v2682_v2 = vld [vmem:[%s5180_s17 + $0x2f0] sm:$0xff] }
 0x552   : > { %3590 = vmatprep.subr.bf16.mxu0 %v3589_v3  ;;  %v2683_v3 = vld [vmem:[%s5180_s17 + $0x2f8] sm:$0xff] }
 0x553   : > { %v3629_v5 = vpack.c.bf16 %v2683_v3, %v2682_v2 }
 0x555   : > { %3592 = vmatpush3.bf16.msra.mxu0 %v3591_v8  ;;  %v3631_v8 = vpack.c.bf16 %v2667_v7, %v2666_v6 }
 0x556   : > { %3594 = vmatprep.subr.bf16.mxu0 %v3593_v9  ;;  %v1308_v9 = vsub.s32 4, %v4930_v49 }
 0x558   : > { %v1309_v10 = vrot.slane %v4937_v1, %v1308_v9 }
 0x559   : > { %3596 = vmatpush3.bf16.msra.mxu0 %v3595_v15  ;;  %v1550_v15 = vadd.f32 %v4532_v61, %v1313_v11 }
 0x55a   : > { %3598 = vmatprep.subr.bf16.mxu0 %v3597_v16  ;;  %v1548_v13 = vadd.f32 %v4530_v60, %v1309_v10  ;;  %v1554_v20 = vadd.f32 %v4534_v63, %v1309_v10 }
 0x55d   : > { %3600 = vmatpush3.bf16.msra.mxu0 %v3599_v22  ;;  %v1556_v22 = vadd.f32 %v4536_v0, %v1313_v11 }
 0x55e   : > { %3602 = vmatprep.subr.bf16.mxu0 %v3601_v62 }
 0x560   : > { %2824 = vmatmul.mubr.f32.vlgmr.msra.gmra.mrb[16].mxu0 %v4961_v18  ;;  %v2675_v18 = vld [vmem:[%s5180_s17 + $0x2b8] sm:$0xff] }
 0x561   : > { %2828 = vmatprep.mubr.f32.mxu0 %v4981_v39  ;;  %3604 = vmatpush3.bf16.msra.mxu0 %v3603_v25  ;;  %v3613_v55 = vpack.c.bf16 %v2675_v18, %v2674_v36  ;;  %v2658_v39 = vld [vmem:[%s5180_s17 + $0x230] sm:$0xff] }
 0x562   : > { %3606 = vmatprep.subr.bf16.mxu0 %v3605_v21  ;;  %v3615_v41 = vpack.c.bf16 %v2659_v59, %v2658_v39 }
 0x564   : > { %2829 = vmatmul.mubr.f32.gmra.mrb[18].mxu0 %v4979_v35  ;;  %v2677_v35 = vld [vmem:[%s5180_s17 + $0x2c8] sm:$0xff] }
 0x565   : > { %3608 = vmatpush3.bf16.msra.mxu0 %v3607_v30  ;;  %v3617_v42 = vpack.c.bf16 %v2677_v35, %v2676_v40 }
 0x566   : > { %3610 = vmatprep.subr.bf16.mxu0 %v3609_v54 }
 0x569   : > { %3612 = vmatpush3.bf16.msra.mxu0 %v3611_v38 }
 0x56a   : > { %3614 = vmatprep.subr.bf16.mxu0 %v3613_v55 }
 0x56d   : > { %3616 = vmatpush3.bf16.msra.mxu0 %v3615_v41 }
 0x56e   : > { %3618 = vmatprep.subr.bf16.mxu0 %v3617_v42 }
 0x571   : > { %3620 = vmatpush3.bf16.msra.mxu0 %v3619_v27 }
 0x572   : > { %3622 = vmatprep.subr.bf16.mxu0 %v3621_v45 }
 0x575   : > { %3624 = vmatpush3.bf16.msra.mxu0 %v3623_v47 }
 0x576   : > { %3626 = vmatprep.subr.bf16.mxu0 %v3625_v48 }
 0x579   : > { %3628 = vmatpush3.bf16.msra.mxu0 %v3627_v4 }
 0x57a   : > { %3630 = vmatprep.subr.bf16.mxu0 %v3629_v5 }
 0x57d   : > { %3632 = vmatpush3.bf16.msra.mxu0 %v3631_v8 }
 0x583   : > { %v2565_v16 = vpop.f32.mrb[26].mxu1 }
 0x584   : > { %v2580_v52 = vmul.f32 %v2565_v16, %v1548_v13  ;;  %v2567_v56 = vpop.f32.mrb[27].mxu1 }
 0x585   : > { %v2581_v17 = vmul.f32 %v2567_v56, %v1550_v15 }
 0x587   : > { %v2571_v62 = vpop.f32.mrb[28].mxu1  ;;  %2898 = vmatprep.mubr.f32.mxu0 %v2581_v17 }
 0x588   : > { %v2586_v49 = vmul.f32 %v2571_v62, %v1554_v20  ;;  %v2573_v23 = vpop.f32.mrb[29].mxu1  ;;  %2899 = vmatmul.mubr.f32.vlgmr.msra.gmra.mrb[20].mxu0 %v2580_v52 }
 0x589   : > { %v2587_v53 = vmul.f32 %v2573_v23, %v1556_v22 }
 0x58b   : > { %2903 = vmatprep.mubr.f32.mxu0 %v2587_v53 }
 0x58c   : > { %2904 = vmatmul.mubr.f32.gmra.mrb[22].mxu0 %v2586_v49 }
 0x613   : > { %v3104_v1 = vpop.f32.mrb[12].mxu0 }
 0x614   : > { %v3105_v60 = vpop.f32.mrb[13].mxu0 }
 0x615   : > { %v3106_v61 = vadd.f32 %v3105_v60, %v3104_v1 }
 0x617   : > { %v3107_v57 = vpop.f32.mrb[14].mxu0 }
 0x618   : > { %v3108_v24 = vpop.f32.mrb[15].mxu0 }
 0x619   : > { %v3109_v25 = vadd.f32 %v3108_v24, %v3107_v57 }
 0x633   : > { %v3142_v21 = vpop.f32.mrb[16].mxu0 }
 0x634   : > { %v3143_v26 = vpop.f32.mrb[17].mxu0 }
 0x635   : > { %v3144_v63 = vadd.f32 %v3143_v26, %v3142_v21 }
 0x637   : > { %v2826_v12 = vadd.f32 %v3144_v63, %v3106_v61  ;;  %v3145_v0 = vpop.f32.mrb[18].mxu0 }
 0x638   : > { %v3146_v28 = vpop.f32.mrb[19].mxu0 }
 0x639   : > { %v3147_v29 = vadd.f32 %v3146_v28, %v3145_v0 }
 0x63b   : > { %v2831_v30 = vadd.f32 %v3147_v29, %v3109_v25 }
 0x65b   : > { %v3180_v54 = vpop.f32.mrb[20].mxu0 }
 0x65c   : > { %v3181_v58 = vpop.f32.mrb[21].mxu0 }
 0x65d   : > { %v3182_v34 = vadd.f32 %v3181_v58, %v3180_v54 }
 0x65f   : > { %v2901_v36 = vadd.f32 %v3182_v34, %v2826_v12  ;;  %v3183_v18 = vpop.f32.mrb[22].mxu0 }
 0x660   : > { %v3184_v38 = vpop.f32.mrb[23].mxu0 }
 0x661   : > { %2910 = vst.msk [vmem:[%s621_s23] sm:$0xff] %vm2909_vm0, %v2901_v36  ;;  %v3185_v55 = vadd.f32 %v3184_v38, %v3183_v18 }
 0x663   : > { %v2906_v39 = vadd.f32 %v3185_v55, %v2831_v30 }
 0x665   : > { %2911 = vst.msk [vmem:[%s621_s23 + $0x8] sm:$0xff] %vm2909_vm0, %v2906_v39 }
 0x666 PF: > { %s28_s27 = sadd.s32 1, %s3683_s27  }
 0x667   : > { %p25_p4 = scmp.ge.s32.totalorder %s28_s27, 4  }
 0x669   :  { %27 = sbr.rel (!%p25_p4) target bundleno = 4 (0x4), region = 128 }

</bundles_post_ra>
